<compile_context>
chip_gen: v6e
topology: v6e:2x2x1
jax: 0.10.0
libtpu: 0.0.40
codegen_flags: <defaults>
</compile_context>

<pallas_src>
import functools

import jax
import jax.numpy as jnp
from jax.experimental import pallas as pl
from jax.experimental.pallas import tpu as pltpu

_VMEM_LIMIT = 32 * 1024 * 1024  # safe on v5e (128 MiB phys), v6e (128), v7x (64)


# ---------------- Pallas kernels ----------------

def _mm_epilogue_kernel(*refs, apply_relu, has_residual):
    """(tm,K)@(K,N) on the MXU in bf16, f32 epilogue: scale/bias (+res) (+ReLU)."""
    if has_residual:
        x_ref, w_ref, s_ref, b_ref, r_ref, o_ref = refs
    else:
        x_ref, w_ref, s_ref, b_ref, o_ref = refs
    y = jnp.dot(x_ref[...], w_ref[...], preferred_element_type=jnp.float32)
    y = y * s_ref[...] + b_ref[...]
    if has_residual:
        y = y + r_ref[...].astype(jnp.float32)
    if apply_relu:
        y = jnp.maximum(y, 0.0)
    o_ref[...] = y.astype(o_ref.dtype)


def _pool_fc_kernel(x_ref, w_ref, b_ref, o_ref):
    """Fused global average pool + fc: (N,HW,C) -> (N,num_classes)."""
    pooled = jnp.mean(x_ref[...].astype(jnp.float32), axis=1)          # (N, C)
    logits = jnp.dot(pooled.astype(jnp.bfloat16), w_ref[...],
                     preferred_element_type=jnp.float32)
    o_ref[...] = logits + b_ref[...]


# ---------------- kernel wrappers ----------------

def _pick_tile(m):
    # prefer >=2 M tiles (pipelining + megacore sharding on v7x); fall back to a
    # single full-extent block when the shape does not allow an aligned split.
    for tm in (256, 128, 64, 32, 16, 8):
        if m % tm == 0 and m // tm >= 2:
            return tm
    return m


def fused_matmul(x, w, scale, bias, residual=None, relu=False):
    """y = relu?((x @ w) * scale + bias + residual); x,w,residual bf16, epilogue f32."""
    M, K = x.shape
    _, N = w.shape
    tm = _pick_tile(M)
    has_res = residual is not None

    in_specs = [
        pl.BlockSpec((tm, K), lambda i: (i, 0)),   # im2col tile (M tiled, K resident)
        pl.BlockSpec((K, N), lambda i: (0, 0)),    # full weight, stays resident
        pl.BlockSpec((1, N), lambda i: (0, 0)),    # folded-BN scale
        pl.BlockSpec((1, N), lambda i: (0, 0)),    # folded-BN bias
    ]
    args = [x, w, scale, bias]
    if has_res:
        in_specs.append(pl.BlockSpec((tm, N), lambda i: (i, 0)))
        args.append(residual)

    return pl.pallas_call(
        functools.partial(_mm_epilogue_kernel, apply_relu=relu, has_residual=has_res),
        out_shape=jax.ShapeDtypeStruct((M, N), jnp.bfloat16),
        grid=(M // tm,),
        in_specs=in_specs,
        out_specs=pl.BlockSpec((tm, N), lambda i: (i, 0)),
        compiler_params=pltpu.CompilerParams(
            dimension_semantics=("parallel",),
            vmem_limit_bytes=_VMEM_LIMIT),
    )(*args)


def pool_fc(x, fc_w, fc_b):
    """AdaptiveAvgPool2d((1,1)) + Linear fused: NHWC -> (N, num_classes) f32."""
    N, H, W, C = x.shape
    NC = fc_w.shape[1]
    x3 = x.reshape(N, H * W, C)
    return pl.pallas_call(
        _pool_fc_kernel,
        out_shape=jax.ShapeDtypeStruct((N, NC), jnp.float32),
        grid=(1,),
        in_specs=[pl.BlockSpec((N, H * W, C), lambda i: (0, 0, 0)),
                  pl.BlockSpec((C, NC), lambda i: (0, 0)),
                  pl.BlockSpec((1, NC), lambda i: (0, 0))],
        out_specs=pl.BlockSpec((N, NC), lambda i: (0, 0)),
        compiler_params=pltpu.CompilerParams(
            dimension_semantics=("arbitrary",),
            vmem_limit_bytes=_VMEM_LIMIT),
    )(x3, fc_w, fc_b)


# ---------------- conv = im2col (glue) + fused Pallas matmul ----------------

def _im2col(x, kh, kw, stride, pad, dilation):
    # x: NHWC bf16. Returns (N, Ho, Wo, kh*kw*Cin), patch order (i, j, c), c fastest.
    N, H, W, C = x.shape
    xp = jnp.pad(x, ((0, 0), (pad, pad), (pad, pad), (0, 0)))
    Ho = (H + 2 * pad - dilation * (kh - 1) - 1) // stride + 1
    Wo = (W + 2 * pad - dilation * (kw - 1) - 1) // stride + 1
    cols = []
    for i in range(kh):
        for j in range(kw):
            r0 = i * dilation
            c0 = j * dilation
            cols.append(xp[:, r0:r0 + (Ho - 1) * stride + 1:stride,
                              c0:c0 + (Wo - 1) * stride + 1:stride, :])
    return jnp.concatenate(cols, axis=-1), Ho, Wo


def conv_bn(x, conv, stride, padding, dilation, relu, residual=None):
    """x: NHWC bf16; conv: dict with pre-reshaped (K,Cout) bf16 weight + folded BN."""
    kh, kw = conv['kh'], conv['kw']
    cout = conv['w'].shape[1]
    cols, Ho, Wo = _im2col(x, kh, kw, stride, padding, dilation)
    N = x.shape[0]
    xm = cols.reshape(N * Ho * Wo, cols.shape[-1])
    res_m = residual.reshape(N * Ho * Wo, cout) if residual is not None else None
    y = fused_matmul(xm, conv['w'], conv['scale'], conv['bias'],
                     residual=res_m, relu=relu)
    return y.reshape(N, Ho, Wo, cout)


# ---------------- ResNet (BasicBlock, expansion = 1) ----------------

def basic_block(x, p):
    s, d = p['stride'], p['dilation']
    out = conv_bn(x, p['conv1'], stride=s, padding=d, dilation=d, relu=True)
    if p['downsample'] is not None:
        identity = conv_bn(x, p['downsample'], stride=s, padding=0, dilation=1,
                           relu=False)
    else:
        identity = x
    # residual add + ReLU fused into conv2's matmul epilogue
    return conv_bn(out, p['conv2'], stride=1, padding=d, dilation=d, relu=True,
                   residual=identity)


def _init_bn_folded(key, c, eps=1e-5):
    k1, k2, k3, k4 = jax.random.split(key, 4)
    gamma = 1.0 + 0.1 * jax.random.normal(k1, (c,), jnp.float32)
    beta = 0.1 * jax.random.normal(k2, (c,), jnp.float32)
    mean = 0.1 * jax.random.normal(k3, (c,), jnp.float32)
    var = 0.5 + jnp.abs(jax.random.normal(k4, (c,), jnp.float32))
    scale = gamma / jnp.sqrt(var + eps)
    bias = beta - mean * scale
    return scale.reshape(1, c), bias.reshape(1, c)


def _make_conv_bn(keys, cout, cin, kh, kw):
    fan_in = cin * kh * kw
    w = jax.random.normal(next(keys), (cout, cin, kh, kw), jnp.float32) / (fan_in ** 0.5)
    # weight matmul layout matches im2col patch ordering (i, j, c):
    wm = jnp.transpose(w, (2, 3, 1, 0)).reshape(kh * kw * cin, cout).astype(jnp.bfloat16)
    scale, bias = _init_bn_folded(next(keys), cout)
    return {'w': wm, 'kh': kh, 'kw': kw, 'scale': scale, 'bias': bias}


def make_resnet_params(key, channels=16, layers=(1, 1, 1, 1), num_classes=100):
    keys = iter(jax.random.split(key, 256))
    params = {'conv1': _make_conv_bn(keys, channels, 3, 3, 3)}
    inplanes = channels
    # mirrors _make_layer calls: strides (2,2,2,1), dilations (1,1,1,2)
    layer_specs = [(channels, layers[0], 2, 1),
                   (channels * 2, layers[1], 2, 1),
                   (channels * 4, layers[2], 2, 1),
                   (channels * 8, layers[3], 1, 2)]
    blocks = []
    for planes, nblocks, stride, dilation in layer_specs:
        for b in range(nblocks):
            s = stride if b == 0 else 1
            has_ds = (b == 0) and (s != 1 or inplanes != planes)
            p = {'stride': s, 'dilation': dilation}
            p['conv1'] = _make_conv_bn(keys, planes, inplanes, 3, 3)
            p['conv2'] = _make_conv_bn(keys, planes, planes, 3, 3)
            p['downsample'] = (_make_conv_bn(keys, planes, inplanes, 1, 1)
                               if has_ds else None)
            blocks.append(p)
            inplanes = planes
    params['blocks'] = blocks
    fc_w = jax.random.normal(next(keys), (num_classes, inplanes),
                             jnp.float32) / (inplanes ** 0.5)
    params['fc_w'] = fc_w.T.astype(jnp.bfloat16)                     # (C, num_classes)
    params['fc_b'] = (0.1 * jax.random.normal(next(keys), (num_classes,),
                                              jnp.float32)).reshape(1, num_classes)
    return params


def resnet_forward(params, x_nchw):
    x = jnp.transpose(x_nchw, (0, 2, 3, 1)).astype(jnp.bfloat16)     # NCHW -> NHWC bf16
    out = conv_bn(x, params['conv1'], stride=1, padding=1, dilation=1, relu=True)
    for p in params['blocks']:                                       # layer1..layer4
        out = basic_block(out, p)
    return pool_fc(out, params['fc_w'], params['fc_b'])              # avgpool + fc fused


if __name__ == "__main__":
    key = jax.random.PRNGKey(0)
    kp, kx = jax.random.split(key)
    params = make_resnet_params(kp, channels=16, layers=(1, 1, 1, 1), num_classes=100)
    x = jax.random.normal(kx, (2, 3, 16, 16), jnp.float32)  # NCHW, like the PyTorch module
    fwd = jax.jit(lambda inp: resnet_forward(params, inp))
    out = fwd(x)
    jax.block_until_ready(out)
    assert out.shape == (2, 100)
    print("KERNEL_OK")
</pallas_src>

<mosaic_0001>
module attributes {stable_mosaic.version = 11 : i64} {
  func.func @_mm_epilogue_kernel(%arg0: i32, %arg1: memref<64x16xbf16, #tpu.memory_space<vmem>>, %arg2: memref<16x16xbf16, #tpu.memory_space<vmem>>, %arg3: memref<1x16xf32, #tpu.memory_space<vmem>>, %arg4: memref<1x16xf32, #tpu.memory_space<vmem>>, %arg5: memref<64x16xbf16, #tpu.memory_space<vmem>>) attributes {dimension_semantics = [#tpu.dimension_semantics<parallel>], iteration_bounds = array<i64: 2>, scalar_prefetch = 0 : i64, scratch_operands = 0 : i64, tpu.core_type = #tpu.core_type<tc>, window_params = [{transform_indices = @transform_0, window_bounds = array<i64: 64, 16>}, {pipeline_mode = #tpu.pipeline_mode<synchronous>, transform_indices = @transform_1, window_bounds = array<i64: 16, 16>}, {pipeline_mode = #tpu.pipeline_mode<synchronous>, transform_indices = @transform_2, window_bounds = array<i64: 1, 16>}, {pipeline_mode = #tpu.pipeline_mode<synchronous>, transform_indices = @transform_3, window_bounds = array<i64: 1, 16>}, {transform_indices = @transform_4, window_bounds = array<i64: 64, 16>}]} {
    %c0 = arith.constant 0 : index
    %c0_0 = arith.constant 0 : index
    %0 = vector.load %arg1[%c0, %c0_0] : memref<64x16xbf16, #tpu.memory_space<vmem>>, vector<64x16xbf16>
    %c0_1 = arith.constant 0 : index
    %c0_2 = arith.constant 0 : index
    %1 = vector.load %arg2[%c0_1, %c0_2] : memref<16x16xbf16, #tpu.memory_space<vmem>>, vector<16x16xbf16>
    %cst = arith.constant dense<0.000000e+00> : vector<64x16xf32>
    %2 = tpu.matmul %0, %1, %cst {dimension_numbers = #tpu.dot_dimension_numbers<[1], [0], [0], [1], [0, 0, 1, 1], [], []>} : vector<64x16xbf16>, vector<16x16xbf16>, vector<64x16xf32> -> vector<64x16xf32>
    %c0_3 = arith.constant 0 : index
    %c0_4 = arith.constant 0 : index
    %3 = vector.load %arg3[%c0_3, %c0_4] : memref<1x16xf32, #tpu.memory_space<vmem>>, vector<1x16xf32>
    %4 = vector.broadcast %3 : vector<1x16xf32> to vector<64x16xf32>
    %5 = arith.mulf %2, %4 : vector<64x16xf32>
    %c0_5 = arith.constant 0 : index
    %c0_6 = arith.constant 0 : index
    %6 = vector.load %arg4[%c0_5, %c0_6] : memref<1x16xf32, #tpu.memory_space<vmem>>, vector<1x16xf32>
    %7 = vector.broadcast %6 : vector<1x16xf32> to vector<64x16xf32>
    %8 = arith.addf %5, %7 : vector<64x16xf32>
    %9 = arith.truncf %8 : vector<64x16xf32> to vector<64x16xbf16>
    %c0_7 = arith.constant 0 : index
    %c0_8 = arith.constant 0 : index
    %10 = vector.load %arg5[%c0_7, %c0_8] : memref<64x16xbf16, #tpu.memory_space<vmem>>, vector<64x16xbf16>
    tpu.vector_store %arg5[%c0_7, %c0_8], %9 {strides = array<i32>} : memref<64x16xbf16, #tpu.memory_space<vmem>>, vector<64x16xbf16>,
    return
  }
  func.func @transform_0(%arg0: i32) -> (i32, i32) {
    %c0_i32 = arith.constant 0 : i32
    %c0_i32_0 = arith.constant 0 : i32
    return %arg0, %c0_i32 : i32, i32
  }
  func.func @transform_1(%arg0: i32) -> (i32, i32) {
    %c0_i32 = arith.constant 0 : i32
    %c0_i32_0 = arith.constant 0 : i32
    %c0_i32_1 = arith.constant 0 : i32
    return %c0_i32, %c0_i32_0 : i32, i32
  }
  func.func @transform_2(%arg0: i32) -> (i32, i32) {
    %c0_i32 = arith.constant 0 : i32
    %c0_i32_0 = arith.constant 0 : i32
    %c0_i32_1 = arith.constant 0 : i32
    return %c0_i32, %c0_i32_0 : i32, i32
  }
  func.func @transform_3(%arg0: i32) -> (i32, i32) {
    %c0_i32 = arith.constant 0 : i32
    %c0_i32_0 = arith.constant 0 : i32
    %c0_i32_1 = arith.constant 0 : i32
    return %c0_i32, %c0_i32_0 : i32, i32
  }
  func.func @transform_4(%arg0: i32) -> (i32, i32) {
    %c0_i32 = arith.constant 0 : i32
    %c0_i32_0 = arith.constant 0 : i32
    return %arg0, %c0_i32 : i32, i32
  }
}

module attributes {stable_mosaic.version = 11 : i64} {
  func.func @_mm_epilogue_kernel(%arg0: i32, %arg1: memref<256x27xbf16, #tpu.memory_space<vmem>>, %arg2: memref<27x16xbf16, #tpu.memory_space<vmem>>, %arg3: memref<1x16xf32, #tpu.memory_space<vmem>>, %arg4: memref<1x16xf32, #tpu.memory_space<vmem>>, %arg5: memref<256x16xbf16, #tpu.memory_space<vmem>>) attributes {dimension_semantics = [#tpu.dimension_semantics<parallel>], iteration_bounds = array<i64: 2>, scalar_prefetch = 0 : i64, scratch_operands = 0 : i64, tpu.core_type = #tpu.core_type<tc>, window_params = [{transform_indices = @transform_0, window_bounds = array<i64: 256, 27>}, {pipeline_mode = #tpu.pipeline_mode<synchronous>, transform_indices = @transform_1, window_bounds = array<i64: 27, 16>}, {pipeline_mode = #tpu.pipeline_mode<synchronous>, transform_indices = @transform_2, window_bounds = array<i64: 1, 16>}, {pipeline_mode = #tpu.pipeline_mode<synchronous>, transform_indices = @transform_3, window_bounds = array<i64: 1, 16>}, {transform_indices = @transform_4, window_bounds = array<i64: 256, 16>}]} {
    %c0 = arith.constant 0 : index
    %c0_0 = arith.constant 0 : index
    %0 = vector.load %arg1[%c0, %c0_0] : memref<256x27xbf16, #tpu.memory_space<vmem>>, vector<256x27xbf16>
    %c0_1 = arith.constant 0 : index
    %c0_2 = arith.constant 0 : index
    %1 = vector.load %arg2[%c0_1, %c0_2] : memref<27x16xbf16, #tpu.memory_space<vmem>>, vector<27x16xbf16>
    %cst = arith.constant dense<0.000000e+00> : vector<256x16xf32>
    %2 = tpu.matmul %0, %1, %cst {dimension_numbers = #tpu.dot_dimension_numbers<[1], [0], [0], [1], [0, 0, 1, 1], [], []>} : vector<256x27xbf16>, vector<27x16xbf16>, vector<256x16xf32> -> vector<256x16xf32>
    %c0_3 = arith.constant 0 : index
    %c0_4 = arith.constant 0 : index
    %3 = vector.load %arg3[%c0_3, %c0_4] : memref<1x16xf32, #tpu.memory_space<vmem>>, vector<1x16xf32>
    %4 = vector.broadcast %3 : vector<1x16xf32> to vector<256x16xf32>
    %5 = arith.mulf %2, %4 : vector<256x16xf32>
    %c0_5 = arith.constant 0 : index
    %c0_6 = arith.constant 0 : index
    %6 = vector.load %arg4[%c0_5, %c0_6] : memref<1x16xf32, #tpu.memory_space<vmem>>, vector<1x16xf32>
    %7 = vector.broadcast %6 : vector<1x16xf32> to vector<256x16xf32>
    %8 = arith.addf %5, %7 : vector<256x16xf32>
    %cst_7 = arith.constant 0.000000e+00 : f32
    %9 = vector.broadcast %cst_7 : f32 to vector<256x16xf32>
    %10 = arith.maximumf %8, %9 : vector<256x16xf32>
    %11 = arith.truncf %10 : vector<256x16xf32> to vector<256x16xbf16>
    %c0_8 = arith.constant 0 : index
    %c0_9 = arith.constant 0 : index
    %12 = vector.load %arg5[%c0_8, %c0_9] : memref<256x16xbf16, #tpu.memory_space<vmem>>, vector<256x16xbf16>
    tpu.vector_store %arg5[%c0_8, %c0_9], %11 {strides = array<i32>} : memref<256x16xbf16, #tpu.memory_space<vmem>>, vector<256x16xbf16>,
    return
  }
  func.func @transform_0(%arg0: i32) -> (i32, i32) {
    %c0_i32 = arith.constant 0 : i32
    %c0_i32_0 = arith.constant 0 : i32
    return %arg0, %c0_i32 : i32, i32
  }
  func.func @transform_1(%arg0: i32) -> (i32, i32) {
    %c0_i32 = arith.constant 0 : i32
    %c0_i32_0 = arith.constant 0 : i32
    %c0_i32_1 = arith.constant 0 : i32
    return %c0_i32, %c0_i32_0 : i32, i32
  }
  func.func @transform_2(%arg0: i32) -> (i32, i32) {
    %c0_i32 = arith.constant 0 : i32
    %c0_i32_0 = arith.constant 0 : i32
    %c0_i32_1 = arith.constant 0 : i32
    return %c0_i32, %c0_i32_0 : i32, i32
  }
  func.func @transform_3(%arg0: i32) -> (i32, i32) {
    %c0_i32 = arith.constant 0 : i32
    %c0_i32_0 = arith.constant 0 : i32
    %c0_i32_1 = arith.constant 0 : i32
    return %c0_i32, %c0_i32_0 : i32, i32
  }
  func.func @transform_4(%arg0: i32) -> (i32, i32) {
    %c0_i32 = arith.constant 0 : i32
    %c0_i32_0 = arith.constant 0 : i32
    return %arg0, %c0_i32 : i32, i32
  }
}

module attributes {stable_mosaic.version = 11 : i64} {
  func.func @_mm_epilogue_kernel(%arg0: i32, %arg1: memref<64x144xbf16, #tpu.memory_space<vmem>>, %arg2: memref<144x16xbf16, #tpu.memory_space<vmem>>, %arg3: memref<1x16xf32, #tpu.memory_space<vmem>>, %arg4: memref<1x16xf32, #tpu.memory_space<vmem>>, %arg5: memref<64x16xbf16, #tpu.memory_space<vmem>>) attributes {dimension_semantics = [#tpu.dimension_semantics<parallel>], iteration_bounds = array<i64: 2>, scalar_prefetch = 0 : i64, scratch_operands = 0 : i64, tpu.core_type = #tpu.core_type<tc>, window_params = [{transform_indices = @transform_0, window_bounds = array<i64: 64, 144>}, {pipeline_mode = #tpu.pipeline_mode<synchronous>, transform_indices = @transform_1, window_bounds = array<i64: 144, 16>}, {pipeline_mode = #tpu.pipeline_mode<synchronous>, transform_indices = @transform_2, window_bounds = array<i64: 1, 16>}, {pipeline_mode = #tpu.pipeline_mode<synchronous>, transform_indices = @transform_3, window_bounds = array<i64: 1, 16>}, {transform_indices = @transform_4, window_bounds = array<i64: 64, 16>}]} {
    %c0 = arith.constant 0 : index
    %c0_0 = arith.constant 0 : index
    %0 = vector.load %arg1[%c0, %c0_0] : memref<64x144xbf16, #tpu.memory_space<vmem>>, vector<64x144xbf16>
    %c0_1 = arith.constant 0 : index
    %c0_2 = arith.constant 0 : index
    %1 = vector.load %arg2[%c0_1, %c0_2] : memref<144x16xbf16, #tpu.memory_space<vmem>>, vector<144x16xbf16>
    %cst = arith.constant dense<0.000000e+00> : vector<64x16xf32>
    %2 = tpu.matmul %0, %1, %cst {dimension_numbers = #tpu.dot_dimension_numbers<[1], [0], [0], [1], [0, 0, 1, 1], [], []>} : vector<64x144xbf16>, vector<144x16xbf16>, vector<64x16xf32> -> vector<64x16xf32>
    %c0_3 = arith.constant 0 : index
    %c0_4 = arith.constant 0 : index
    %3 = vector.load %arg3[%c0_3, %c0_4] : memref<1x16xf32, #tpu.memory_space<vmem>>, vector<1x16xf32>
    %4 = vector.broadcast %3 : vector<1x16xf32> to vector<64x16xf32>
    %5 = arith.mulf %2, %4 : vector<64x16xf32>
    %c0_5 = arith.constant 0 : index
    %c0_6 = arith.constant 0 : index
    %6 = vector.load %arg4[%c0_5, %c0_6] : memref<1x16xf32, #tpu.memory_space<vmem>>, vector<1x16xf32>
    %7 = vector.broadcast %6 : vector<1x16xf32> to vector<64x16xf32>
    %8 = arith.addf %5, %7 : vector<64x16xf32>
    %cst_7 = arith.constant 0.000000e+00 : f32
    %9 = vector.broadcast %cst_7 : f32 to vector<64x16xf32>
    %10 = arith.maximumf %8, %9 : vector<64x16xf32>
    %11 = arith.truncf %10 : vector<64x16xf32> to vector<64x16xbf16>
    %c0_8 = arith.constant 0 : index
    %c0_9 = arith.constant 0 : index
    %12 = vector.load %arg5[%c0_8, %c0_9] : memref<64x16xbf16, #tpu.memory_space<vmem>>, vector<64x16xbf16>
    tpu.vector_store %arg5[%c0_8, %c0_9], %11 {strides = array<i32>} : memref<64x16xbf16, #tpu.memory_space<vmem>>, vector<64x16xbf16>,
    return
  }
  func.func @transform_0(%arg0: i32) -> (i32, i32) {
    %c0_i32 = arith.constant 0 : i32
    %c0_i32_0 = arith.constant 0 : i32
    return %arg0, %c0_i32 : i32, i32
  }
  func.func @transform_1(%arg0: i32) -> (i32, i32) {
    %c0_i32 = arith.constant 0 : i32
    %c0_i32_0 = arith.constant 0 : i32
    %c0_i32_1 = arith.constant 0 : i32
    return %c0_i32, %c0_i32_0 : i32, i32
  }
  func.func @transform_2(%arg0: i32) -> (i32, i32) {
    %c0_i32 = arith.constant 0 : i32
    %c0_i32_0 = arith.constant 0 : i32
    %c0_i32_1 = arith.constant 0 : i32
    return %c0_i32, %c0_i32_0 : i32, i32
  }
  func.func @transform_3(%arg0: i32) -> (i32, i32) {
    %c0_i32 = arith.constant 0 : i32
    %c0_i32_0 = arith.constant 0 : i32
    %c0_i32_1 = arith.constant 0 : i32
    return %c0_i32, %c0_i32_0 : i32, i32
  }
  func.func @transform_4(%arg0: i32) -> (i32, i32) {
    %c0_i32 = arith.constant 0 : i32
    %c0_i32_0 = arith.constant 0 : i32
    return %arg0, %c0_i32 : i32, i32
  }
}

module attributes {stable_mosaic.version = 11 : i64} {
  func.func @_mm_epilogue_kernel(%arg0: i32, %arg1: memref<16x16xbf16, #tpu.memory_space<vmem>>, %arg2: memref<16x32xbf16, #tpu.memory_space<vmem>>, %arg3: memref<1x32xf32, #tpu.memory_space<vmem>>, %arg4: memref<1x32xf32, #tpu.memory_space<vmem>>, %arg5: memref<16x32xbf16, #tpu.memory_space<vmem>>) attributes {dimension_semantics = [#tpu.dimension_semantics<parallel>], iteration_bounds = array<i64: 2>, scalar_prefetch = 0 : i64, scratch_operands = 0 : i64, tpu.core_type = #tpu.core_type<tc>, window_params = [{transform_indices = @transform_0, window_bounds = array<i64: 16, 16>}, {pipeline_mode = #tpu.pipeline_mode<synchronous>, transform_indices = @transform_1, window_bounds = array<i64: 16, 32>}, {pipeline_mode = #tpu.pipeline_mode<synchronous>, transform_indices = @transform_2, window_bounds = array<i64: 1, 32>}, {pipeline_mode = #tpu.pipeline_mode<synchronous>, transform_indices = @transform_3, window_bounds = array<i64: 1, 32>}, {transform_indices = @transform_4, window_bounds = array<i64: 16, 32>}]} {
    %c0 = arith.constant 0 : index
    %c0_0 = arith.constant 0 : index
    %0 = vector.load %arg1[%c0, %c0_0] : memref<16x16xbf16, #tpu.memory_space<vmem>>, vector<16x16xbf16>
    %c0_1 = arith.constant 0 : index
    %c0_2 = arith.constant 0 : index
    %1 = vector.load %arg2[%c0_1, %c0_2] : memref<16x32xbf16, #tpu.memory_space<vmem>>, vector<16x32xbf16>
    %cst = arith.constant dense<0.000000e+00> : vector<16x32xf32>
    %2 = tpu.matmul %0, %1, %cst {dimension_numbers = #tpu.dot_dimension_numbers<[1], [0], [0], [1], [0, 0, 1, 1], [], []>} : vector<16x16xbf16>, vector<16x32xbf16>, vector<16x32xf32> -> vector<16x32xf32>
    %c0_3 = arith.constant 0 : index
    %c0_4 = arith.constant 0 : index
    %3 = vector.load %arg3[%c0_3, %c0_4] : memref<1x32xf32, #tpu.memory_space<vmem>>, vector<1x32xf32>
    %4 = vector.broadcast %3 : vector<1x32xf32> to vector<16x32xf32>
    %5 = arith.mulf %2, %4 : vector<16x32xf32>
    %c0_5 = arith.constant 0 : index
    %c0_6 = arith.constant 0 : index
    %6 = vector.load %arg4[%c0_5, %c0_6] : memref<1x32xf32, #tpu.memory_space<vmem>>, vector<1x32xf32>
    %7 = vector.broadcast %6 : vector<1x32xf32> to vector<16x32xf32>
    %8 = arith.addf %5, %7 : vector<16x32xf32>
    %9 = arith.truncf %8 : vector<16x32xf32> to vector<16x32xbf16>
    %c0_7 = arith.constant 0 : index
    %c0_8 = arith.constant 0 : index
    %10 = vector.load %arg5[%c0_7, %c0_8] : memref<16x32xbf16, #tpu.memory_space<vmem>>, vector<16x32xbf16>
    tpu.vector_store %arg5[%c0_7, %c0_8], %9 {strides = array<i32>} : memref<16x32xbf16, #tpu.memory_space<vmem>>, vector<16x32xbf16>,
    return
  }
  func.func @transform_0(%arg0: i32) -> (i32, i32) {
    %c0_i32 = arith.constant 0 : i32
    %c0_i32_0 = arith.constant 0 : i32
    return %arg0, %c0_i32 : i32, i32
  }
  func.func @transform_1(%arg0: i32) -> (i32, i32) {
    %c0_i32 = arith.constant 0 : i32
    %c0_i32_0 = arith.constant 0 : i32
    %c0_i32_1 = arith.constant 0 : i32
    return %c0_i32, %c0_i32_0 : i32, i32
  }
  func.func @transform_2(%arg0: i32) -> (i32, i32) {
    %c0_i32 = arith.constant 0 : i32
    %c0_i32_0 = arith.constant 0 : i32
    %c0_i32_1 = arith.constant 0 : i32
    return %c0_i32, %c0_i32_0 : i32, i32
  }
  func.func @transform_3(%arg0: i32) -> (i32, i32) {
    %c0_i32 = arith.constant 0 : i32
    %c0_i32_0 = arith.constant 0 : i32
    %c0_i32_1 = arith.constant 0 : i32
    return %c0_i32, %c0_i32_0 : i32, i32
  }
  func.func @transform_4(%arg0: i32) -> (i32, i32) {
    %c0_i32 = arith.constant 0 : i32
    %c0_i32_0 = arith.constant 0 : i32
    return %arg0, %c0_i32 : i32, i32
  }
}

module attributes {stable_mosaic.version = 11 : i64} {
  func.func @_mm_epilogue_kernel(%arg0: i32, %arg1: memref<64x144xbf16, #tpu.memory_space<vmem>>, %arg2: memref<144x16xbf16, #tpu.memory_space<vmem>>, %arg3: memref<1x16xf32, #tpu.memory_space<vmem>>, %arg4: memref<1x16xf32, #tpu.memory_space<vmem>>, %arg5: memref<64x16xbf16, #tpu.memory_space<vmem>>, %arg6: memref<64x16xbf16, #tpu.memory_space<vmem>>) attributes {dimension_semantics = [#tpu.dimension_semantics<parallel>], iteration_bounds = array<i64: 2>, scalar_prefetch = 0 : i64, scratch_operands = 0 : i64, tpu.core_type = #tpu.core_type<tc>, window_params = [{transform_indices = @transform_0, window_bounds = array<i64: 64, 144>}, {pipeline_mode = #tpu.pipeline_mode<synchronous>, transform_indices = @transform_1, window_bounds = array<i64: 144, 16>}, {pipeline_mode = #tpu.pipeline_mode<synchronous>, transform_indices = @transform_2, window_bounds = array<i64: 1, 16>}, {pipeline_mode = #tpu.pipeline_mode<synchronous>, transform_indices = @transform_3, window_bounds = array<i64: 1, 16>}, {transform_indices = @transform_4, window_bounds = array<i64: 64, 16>}, {transform_indices = @transform_5, window_bounds = array<i64: 64, 16>}]} {
    %c0 = arith.constant 0 : index
    %c0_0 = arith.constant 0 : index
    %0 = vector.load %arg1[%c0, %c0_0] : memref<64x144xbf16, #tpu.memory_space<vmem>>, vector<64x144xbf16>
    %c0_1 = arith.constant 0 : index
    %c0_2 = arith.constant 0 : index
    %1 = vector.load %arg2[%c0_1, %c0_2] : memref<144x16xbf16, #tpu.memory_space<vmem>>, vector<144x16xbf16>
    %cst = arith.constant dense<0.000000e+00> : vector<64x16xf32>
    %2 = tpu.matmul %0, %1, %cst {dimension_numbers = #tpu.dot_dimension_numbers<[1], [0], [0], [1], [0, 0, 1, 1], [], []>} : vector<64x144xbf16>, vector<144x16xbf16>, vector<64x16xf32> -> vector<64x16xf32>
    %c0_3 = arith.constant 0 : index
    %c0_4 = arith.constant 0 : index
    %3 = vector.load %arg3[%c0_3, %c0_4] : memref<1x16xf32, #tpu.memory_space<vmem>>, vector<1x16xf32>
    %4 = vector.broadcast %3 : vector<1x16xf32> to vector<64x16xf32>
    %5 = arith.mulf %2, %4 : vector<64x16xf32>
    %c0_5 = arith.constant 0 : index
    %c0_6 = arith.constant 0 : index
    %6 = vector.load %arg4[%c0_5, %c0_6] : memref<1x16xf32, #tpu.memory_space<vmem>>, vector<1x16xf32>
    %7 = vector.broadcast %6 : vector<1x16xf32> to vector<64x16xf32>
    %8 = arith.addf %5, %7 : vector<64x16xf32>
    %c0_7 = arith.constant 0 : index
    %c0_8 = arith.constant 0 : index
    %9 = vector.load %arg5[%c0_7, %c0_8] : memref<64x16xbf16, #tpu.memory_space<vmem>>, vector<64x16xbf16>
    %10 = arith.extf %9 : vector<64x16xbf16> to vector<64x16xf32>
    %11 = arith.addf %8, %10 : vector<64x16xf32>
    %cst_9 = arith.constant 0.000000e+00 : f32
    %12 = vector.broadcast %cst_9 : f32 to vector<64x16xf32>
    %13 = arith.maximumf %11, %12 : vector<64x16xf32>
    %14 = arith.truncf %13 : vector<64x16xf32> to vector<64x16xbf16>
    %c0_10 = arith.constant 0 : index
    %c0_11 = arith.constant 0 : index
    %15 = vector.load %arg6[%c0_10, %c0_11] : memref<64x16xbf16, #tpu.memory_space<vmem>>, vector<64x16xbf16>
    tpu.vector_store %arg6[%c0_10, %c0_11], %14 {strides = array<i32>} : memref<64x16xbf16, #tpu.memory_space<vmem>>, vector<64x16xbf16>,
    return
  }
  func.func @transform_0(%arg0: i32) -> (i32, i32) {
    %c0_i32 = arith.constant 0 : i32
    %c0_i32_0 = arith.constant 0 : i32
    return %arg0, %c0_i32 : i32, i32
  }
  func.func @transform_1(%arg0: i32) -> (i32, i32) {
    %c0_i32 = arith.constant 0 : i32
    %c0_i32_0 = arith.constant 0 : i32
    %c0_i32_1 = arith.constant 0 : i32
    return %c0_i32, %c0_i32_0 : i32, i32
  }
  func.func @transform_2(%arg0: i32) -> (i32, i32) {
    %c0_i32 = arith.constant 0 : i32
    %c0_i32_0 = arith.constant 0 : i32
    %c0_i32_1 = arith.constant 0 : i32
    return %c0_i32, %c0_i32_0 : i32, i32
  }
  func.func @transform_3(%arg0: i32) -> (i32, i32) {
    %c0_i32 = arith.constant 0 : i32
    %c0_i32_0 = arith.constant 0 : i32
    %c0_i32_1 = arith.constant 0 : i32
    return %c0_i32, %c0_i32_0 : i32, i32
  }
  func.func @transform_4(%arg0: i32) -> (i32, i32) {
    %c0_i32 = arith.constant 0 : i32
    %c0_i32_0 = arith.constant 0 : i32
    return %arg0, %c0_i32 : i32, i32
  }
  func.func @transform_5(%arg0: i32) -> (i32, i32) {
    %c0_i32 = arith.constant 0 : i32
    %c0_i32_0 = arith.constant 0 : i32
    return %arg0, %c0_i32 : i32, i32
  }
}

module attributes {stable_mosaic.version = 11 : i64} {
  func.func @_mm_epilogue_kernel(%arg0: i32, %arg1: memref<16x144xbf16, #tpu.memory_space<vmem>>, %arg2: memref<144x32xbf16, #tpu.memory_space<vmem>>, %arg3: memref<1x32xf32, #tpu.memory_space<vmem>>, %arg4: memref<1x32xf32, #tpu.memory_space<vmem>>, %arg5: memref<16x32xbf16, #tpu.memory_space<vmem>>) attributes {dimension_semantics = [#tpu.dimension_semantics<parallel>], iteration_bounds = array<i64: 2>, scalar_prefetch = 0 : i64, scratch_operands = 0 : i64, tpu.core_type = #tpu.core_type<tc>, window_params = [{transform_indices = @transform_0, window_bounds = array<i64: 16, 144>}, {pipeline_mode = #tpu.pipeline_mode<synchronous>, transform_indices = @transform_1, window_bounds = array<i64: 144, 32>}, {pipeline_mode = #tpu.pipeline_mode<synchronous>, transform_indices = @transform_2, window_bounds = array<i64: 1, 32>}, {pipeline_mode = #tpu.pipeline_mode<synchronous>, transform_indices = @transform_3, window_bounds = array<i64: 1, 32>}, {transform_indices = @transform_4, window_bounds = array<i64: 16, 32>}]} {
    %c0 = arith.constant 0 : index
    %c0_0 = arith.constant 0 : index
    %0 = vector.load %arg1[%c0, %c0_0] : memref<16x144xbf16, #tpu.memory_space<vmem>>, vector<16x144xbf16>
    %c0_1 = arith.constant 0 : index
    %c0_2 = arith.constant 0 : index
    %1 = vector.load %arg2[%c0_1, %c0_2] : memref<144x32xbf16, #tpu.memory_space<vmem>>, vector<144x32xbf16>
    %cst = arith.constant dense<0.000000e+00> : vector<16x32xf32>
    %2 = tpu.matmul %0, %1, %cst {dimension_numbers = #tpu.dot_dimension_numbers<[1], [0], [0], [1], [0, 0, 1, 1], [], []>} : vector<16x144xbf16>, vector<144x32xbf16>, vector<16x32xf32> -> vector<16x32xf32>
    %c0_3 = arith.constant 0 : index
    %c0_4 = arith.constant 0 : index
    %3 = vector.load %arg3[%c0_3, %c0_4] : memref<1x32xf32, #tpu.memory_space<vmem>>, vector<1x32xf32>
    %4 = vector.broadcast %3 : vector<1x32xf32> to vector<16x32xf32>
    %5 = arith.mulf %2, %4 : vector<16x32xf32>
    %c0_5 = arith.constant 0 : index
    %c0_6 = arith.constant 0 : index
    %6 = vector.load %arg4[%c0_5, %c0_6] : memref<1x32xf32, #tpu.memory_space<vmem>>, vector<1x32xf32>
    %7 = vector.broadcast %6 : vector<1x32xf32> to vector<16x32xf32>
    %8 = arith.addf %5, %7 : vector<16x32xf32>
    %cst_7 = arith.constant 0.000000e+00 : f32
    %9 = vector.broadcast %cst_7 : f32 to vector<16x32xf32>
    %10 = arith.maximumf %8, %9 : vector<16x32xf32>
    %11 = arith.truncf %10 : vector<16x32xf32> to vector<16x32xbf16>
    %c0_8 = arith.constant 0 : index
    %c0_9 = arith.constant 0 : index
    %12 = vector.load %arg5[%c0_8, %c0_9] : memref<16x32xbf16, #tpu.memory_space<vmem>>, vector<16x32xbf16>
    tpu.vector_store %arg5[%c0_8, %c0_9], %11 {strides = array<i32>} : memref<16x32xbf16, #tpu.memory_space<vmem>>, vector<16x32xbf16>,
    return
  }
  func.func @transform_0(%arg0: i32) -> (i32, i32) {
    %c0_i32 = arith.constant 0 : i32
    %c0_i32_0 = arith.constant 0 : i32
    return %arg0, %c0_i32 : i32, i32
  }
  func.func @transform_1(%arg0: i32) -> (i32, i32) {
    %c0_i32 = arith.constant 0 : i32
    %c0_i32_0 = arith.constant 0 : i32
    %c0_i32_1 = arith.constant 0 : i32
    return %c0_i32, %c0_i32_0 : i32, i32
  }
  func.func @transform_2(%arg0: i32) -> (i32, i32) {
    %c0_i32 = arith.constant 0 : i32
    %c0_i32_0 = arith.constant 0 : i32
    %c0_i32_1 = arith.constant 0 : i32
    return %c0_i32, %c0_i32_0 : i32, i32
  }
  func.func @transform_3(%arg0: i32) -> (i32, i32) {
    %c0_i32 = arith.constant 0 : i32
    %c0_i32_0 = arith.constant 0 : i32
    %c0_i32_1 = arith.constant 0 : i32
    return %c0_i32, %c0_i32_0 : i32, i32
  }
  func.func @transform_4(%arg0: i32) -> (i32, i32) {
    %c0_i32 = arith.constant 0 : i32
    %c0_i32_0 = arith.constant 0 : i32
    return %arg0, %c0_i32 : i32, i32
  }
}

module attributes {stable_mosaic.version = 11 : i64} {
  func.func @_mm_epilogue_kernel(%arg0: i32, %arg1: memref<8x32xbf16, #tpu.memory_space<vmem>>, %arg2: memref<32x64xbf16, #tpu.memory_space<vmem>>, %arg3: memref<1x64xf32, #tpu.memory_space<vmem>>, %arg4: memref<1x64xf32, #tpu.memory_space<vmem>>, %arg5: memref<8x64xbf16, #tpu.memory_space<vmem>>) attributes {dimension_semantics = [#tpu.dimension_semantics<parallel>], iteration_bounds = array<i64: 1>, scalar_prefetch = 0 : i64, scratch_operands = 0 : i64, tpu.core_type = #tpu.core_type<tc>, window_params = [{transform_indices = @transform_0, window_bounds = array<i64: 8, 32>}, {pipeline_mode = #tpu.pipeline_mode<synchronous>, transform_indices = @transform_1, window_bounds = array<i64: 32, 64>}, {pipeline_mode = #tpu.pipeline_mode<synchronous>, transform_indices = @transform_2, window_bounds = array<i64: 1, 64>}, {pipeline_mode = #tpu.pipeline_mode<synchronous>, transform_indices = @transform_3, window_bounds = array<i64: 1, 64>}, {transform_indices = @transform_4, window_bounds = array<i64: 8, 64>}]} {
    %c0 = arith.constant 0 : index
    %c0_0 = arith.constant 0 : index
    %0 = vector.load %arg1[%c0, %c0_0] : memref<8x32xbf16, #tpu.memory_space<vmem>>, vector<8x32xbf16>
    %c0_1 = arith.constant 0 : index
    %c0_2 = arith.constant 0 : index
    %1 = vector.load %arg2[%c0_1, %c0_2] : memref<32x64xbf16, #tpu.memory_space<vmem>>, vector<32x64xbf16>
    %cst = arith.constant dense<0.000000e+00> : vector<8x64xf32>
    %2 = tpu.matmul %0, %1, %cst {dimension_numbers = #tpu.dot_dimension_numbers<[1], [0], [0], [1], [0, 0, 1, 1], [], []>} : vector<8x32xbf16>, vector<32x64xbf16>, vector<8x64xf32> -> vector<8x64xf32>
    %c0_3 = arith.constant 0 : index
    %c0_4 = arith.constant 0 : index
    %3 = vector.load %arg3[%c0_3, %c0_4] : memref<1x64xf32, #tpu.memory_space<vmem>>, vector<1x64xf32>
    %4 = vector.broadcast %3 : vector<1x64xf32> to vector<8x64xf32>
    %5 = arith.mulf %2, %4 : vector<8x64xf32>
    %c0_5 = arith.constant 0 : index
    %c0_6 = arith.constant 0 : index
    %6 = vector.load %arg4[%c0_5, %c0_6] : memref<1x64xf32, #tpu.memory_space<vmem>>, vector<1x64xf32>
    %7 = vector.broadcast %6 : vector<1x64xf32> to vector<8x64xf32>
    %8 = arith.addf %5, %7 : vector<8x64xf32>
    %9 = arith.truncf %8 : vector<8x64xf32> to vector<8x64xbf16>
    %c0_7 = arith.constant 0 : index
    %c0_8 = arith.constant 0 : index
    %10 = vector.load %arg5[%c0_7, %c0_8] : memref<8x64xbf16, #tpu.memory_space<vmem>>, vector<8x64xbf16>
    tpu.vector_store %arg5[%c0_7, %c0_8], %9 {strides = array<i32>} : memref<8x64xbf16, #tpu.memory_space<vmem>>, vector<8x64xbf16>,
    return
  }
  func.func @transform_0(%arg0: i32) -> (i32, i32) {
    %c0_i32 = arith.constant 0 : i32
    %c0_i32_0 = arith.constant 0 : i32
    return %arg0, %c0_i32 : i32, i32
  }
  func.func @transform_1(%arg0: i32) -> (i32, i32) {
    %c0_i32 = arith.constant 0 : i32
    %c0_i32_0 = arith.constant 0 : i32
    %c0_i32_1 = arith.constant 0 : i32
    return %c0_i32, %c0_i32_0 : i32, i32
  }
  func.func @transform_2(%arg0: i32) -> (i32, i32) {
    %c0_i32 = arith.constant 0 : i32
    %c0_i32_0 = arith.constant 0 : i32
    %c0_i32_1 = arith.constant 0 : i32
    return %c0_i32, %c0_i32_0 : i32, i32
  }
  func.func @transform_3(%arg0: i32) -> (i32, i32) {
    %c0_i32 = arith.constant 0 : i32
    %c0_i32_0 = arith.constant 0 : i32
    %c0_i32_1 = arith.constant 0 : i32
    return %c0_i32, %c0_i32_0 : i32, i32
  }
  func.func @transform_4(%arg0: i32) -> (i32, i32) {
    %c0_i32 = arith.constant 0 : i32
    %c0_i32_0 = arith.constant 0 : i32
    return %arg0, %c0_i32 : i32, i32
  }
}

module attributes {stable_mosaic.version = 11 : i64} {
  func.func @_mm_epilogue_kernel(%arg0: i32, %arg1: memref<16x288xbf16, #tpu.memory_space<vmem>>, %arg2: memref<288x32xbf16, #tpu.memory_space<vmem>>, %arg3: memref<1x32xf32, #tpu.memory_space<vmem>>, %arg4: memref<1x32xf32, #tpu.memory_space<vmem>>, %arg5: memref<16x32xbf16, #tpu.memory_space<vmem>>, %arg6: memref<16x32xbf16, #tpu.memory_space<vmem>>) attributes {dimension_semantics = [#tpu.dimension_semantics<parallel>], iteration_bounds = array<i64: 2>, scalar_prefetch = 0 : i64, scratch_operands = 0 : i64, tpu.core_type = #tpu.core_type<tc>, window_params = [{transform_indices = @transform_0, window_bounds = array<i64: 16, 288>}, {pipeline_mode = #tpu.pipeline_mode<synchronous>, transform_indices = @transform_1, window_bounds = array<i64: 288, 32>}, {pipeline_mode = #tpu.pipeline_mode<synchronous>, transform_indices = @transform_2, window_bounds = array<i64: 1, 32>}, {pipeline_mode = #tpu.pipeline_mode<synchronous>, transform_indices = @transform_3, window_bounds = array<i64: 1, 32>}, {transform_indices = @transform_4, window_bounds = array<i64: 16, 32>}, {transform_indices = @transform_5, window_bounds = array<i64: 16, 32>}]} {
    %c0 = arith.constant 0 : index
    %c0_0 = arith.constant 0 : index
    %0 = vector.load %arg1[%c0, %c0_0] : memref<16x288xbf16, #tpu.memory_space<vmem>>, vector<16x288xbf16>
    %c0_1 = arith.constant 0 : index
    %c0_2 = arith.constant 0 : index
    %1 = vector.load %arg2[%c0_1, %c0_2] : memref<288x32xbf16, #tpu.memory_space<vmem>>, vector<288x32xbf16>
    %cst = arith.constant dense<0.000000e+00> : vector<16x32xf32>
    %2 = tpu.matmul %0, %1, %cst {dimension_numbers = #tpu.dot_dimension_numbers<[1], [0], [0], [1], [0, 0, 1, 1], [], []>} : vector<16x288xbf16>, vector<288x32xbf16>, vector<16x32xf32> -> vector<16x32xf32>
    %c0_3 = arith.constant 0 : index
    %c0_4 = arith.constant 0 : index
    %3 = vector.load %arg3[%c0_3, %c0_4] : memref<1x32xf32, #tpu.memory_space<vmem>>, vector<1x32xf32>
    %4 = vector.broadcast %3 : vector<1x32xf32> to vector<16x32xf32>
    %5 = arith.mulf %2, %4 : vector<16x32xf32>
    %c0_5 = arith.constant 0 : index
    %c0_6 = arith.constant 0 : index
    %6 = vector.load %arg4[%c0_5, %c0_6] : memref<1x32xf32, #tpu.memory_space<vmem>>, vector<1x32xf32>
    %7 = vector.broadcast %6 : vector<1x32xf32> to vector<16x32xf32>
    %8 = arith.addf %5, %7 : vector<16x32xf32>
    %c0_7 = arith.constant 0 : index
    %c0_8 = arith.constant 0 : index
    %9 = vector.load %arg5[%c0_7, %c0_8] : memref<16x32xbf16, #tpu.memory_space<vmem>>, vector<16x32xbf16>
    %10 = arith.extf %9 : vector<16x32xbf16> to vector<16x32xf32>
    %11 = arith.addf %8, %10 : vector<16x32xf32>
    %cst_9 = arith.constant 0.000000e+00 : f32
    %12 = vector.broadcast %cst_9 : f32 to vector<16x32xf32>
    %13 = arith.maximumf %11, %12 : vector<16x32xf32>
    %14 = arith.truncf %13 : vector<16x32xf32> to vector<16x32xbf16>
    %c0_10 = arith.constant 0 : index
    %c0_11 = arith.constant 0 : index
    %15 = vector.load %arg6[%c0_10, %c0_11] : memref<16x32xbf16, #tpu.memory_space<vmem>>, vector<16x32xbf16>
    tpu.vector_store %arg6[%c0_10, %c0_11], %14 {strides = array<i32>} : memref<16x32xbf16, #tpu.memory_space<vmem>>, vector<16x32xbf16>,
    return
  }
  func.func @transform_0(%arg0: i32) -> (i32, i32) {
    %c0_i32 = arith.constant 0 : i32
    %c0_i32_0 = arith.constant 0 : i32
    return %arg0, %c0_i32 : i32, i32
  }
  func.func @transform_1(%arg0: i32) -> (i32, i32) {
    %c0_i32 = arith.constant 0 : i32
    %c0_i32_0 = arith.constant 0 : i32
    %c0_i32_1 = arith.constant 0 : i32
    return %c0_i32, %c0_i32_0 : i32, i32
  }
  func.func @transform_2(%arg0: i32) -> (i32, i32) {
    %c0_i32 = arith.constant 0 : i32
    %c0_i32_0 = arith.constant 0 : i32
    %c0_i32_1 = arith.constant 0 : i32
    return %c0_i32, %c0_i32_0 : i32, i32
  }
  func.func @transform_3(%arg0: i32) -> (i32, i32) {
    %c0_i32 = arith.constant 0 : i32
    %c0_i32_0 = arith.constant 0 : i32
    %c0_i32_1 = arith.constant 0 : i32
    return %c0_i32, %c0_i32_0 : i32, i32
  }
  func.func @transform_4(%arg0: i32) -> (i32, i32) {
    %c0_i32 = arith.constant 0 : i32
    %c0_i32_0 = arith.constant 0 : i32
    return %arg0, %c0_i32 : i32, i32
  }
  func.func @transform_5(%arg0: i32) -> (i32, i32) {
    %c0_i32 = arith.constant 0 : i32
    %c0_i32_0 = arith.constant 0 : i32
    return %arg0, %c0_i32 : i32, i32
  }
}

module attributes {stable_mosaic.version = 11 : i64} {
  func.func @_mm_epilogue_kernel(%arg0: i32, %arg1: memref<8x288xbf16, #tpu.memory_space<vmem>>, %arg2: memref<288x64xbf16, #tpu.memory_space<vmem>>, %arg3: memref<1x64xf32, #tpu.memory_space<vmem>>, %arg4: memref<1x64xf32, #tpu.memory_space<vmem>>, %arg5: memref<8x64xbf16, #tpu.memory_space<vmem>>) attributes {dimension_semantics = [#tpu.dimension_semantics<parallel>], iteration_bounds = array<i64: 1>, scalar_prefetch = 0 : i64, scratch_operands = 0 : i64, tpu.core_type = #tpu.core_type<tc>, window_params = [{transform_indices = @transform_0, window_bounds = array<i64: 8, 288>}, {pipeline_mode = #tpu.pipeline_mode<synchronous>, transform_indices = @transform_1, window_bounds = array<i64: 288, 64>}, {pipeline_mode = #tpu.pipeline_mode<synchronous>, transform_indices = @transform_2, window_bounds = array<i64: 1, 64>}, {pipeline_mode = #tpu.pipeline_mode<synchronous>, transform_indices = @transform_3, window_bounds = array<i64: 1, 64>}, {transform_indices = @transform_4, window_bounds = array<i64: 8, 64>}]} {
    %c0 = arith.constant 0 : index
    %c0_0 = arith.constant 0 : index
    %0 = vector.load %arg1[%c0, %c0_0] : memref<8x288xbf16, #tpu.memory_space<vmem>>, vector<8x288xbf16>
    %c0_1 = arith.constant 0 : index
    %c0_2 = arith.constant 0 : index
    %1 = vector.load %arg2[%c0_1, %c0_2] : memref<288x64xbf16, #tpu.memory_space<vmem>>, vector<288x64xbf16>
    %cst = arith.constant dense<0.000000e+00> : vector<8x64xf32>
    %2 = tpu.matmul %0, %1, %cst {dimension_numbers = #tpu.dot_dimension_numbers<[1], [0], [0], [1], [0, 0, 1, 1], [], []>} : vector<8x288xbf16>, vector<288x64xbf16>, vector<8x64xf32> -> vector<8x64xf32>
    %c0_3 = arith.constant 0 : index
    %c0_4 = arith.constant 0 : index
    %3 = vector.load %arg3[%c0_3, %c0_4] : memref<1x64xf32, #tpu.memory_space<vmem>>, vector<1x64xf32>
    %4 = vector.broadcast %3 : vector<1x64xf32> to vector<8x64xf32>
    %5 = arith.mulf %2, %4 : vector<8x64xf32>
    %c0_5 = arith.constant 0 : index
    %c0_6 = arith.constant 0 : index
    %6 = vector.load %arg4[%c0_5, %c0_6] : memref<1x64xf32, #tpu.memory_space<vmem>>, vector<1x64xf32>
    %7 = vector.broadcast %6 : vector<1x64xf32> to vector<8x64xf32>
    %8 = arith.addf %5, %7 : vector<8x64xf32>
    %cst_7 = arith.constant 0.000000e+00 : f32
    %9 = vector.broadcast %cst_7 : f32 to vector<8x64xf32>
    %10 = arith.maximumf %8, %9 : vector<8x64xf32>
    %11 = arith.truncf %10 : vector<8x64xf32> to vector<8x64xbf16>
    %c0_8 = arith.constant 0 : index
    %c0_9 = arith.constant 0 : index
    %12 = vector.load %arg5[%c0_8, %c0_9] : memref<8x64xbf16, #tpu.memory_space<vmem>>, vector<8x64xbf16>
    tpu.vector_store %arg5[%c0_8, %c0_9], %11 {strides = array<i32>} : memref<8x64xbf16, #tpu.memory_space<vmem>>, vector<8x64xbf16>,
    return
  }
  func.func @transform_0(%arg0: i32) -> (i32, i32) {
    %c0_i32 = arith.constant 0 : i32
    %c0_i32_0 = arith.constant 0 : i32
    return %arg0, %c0_i32 : i32, i32
  }
  func.func @transform_1(%arg0: i32) -> (i32, i32) {
    %c0_i32 = arith.constant 0 : i32
    %c0_i32_0 = arith.constant 0 : i32
    %c0_i32_1 = arith.constant 0 : i32
    return %c0_i32, %c0_i32_0 : i32, i32
  }
  func.func @transform_2(%arg0: i32) -> (i32, i32) {
    %c0_i32 = arith.constant 0 : i32
    %c0_i32_0 = arith.constant 0 : i32
    %c0_i32_1 = arith.constant 0 : i32
    return %c0_i32, %c0_i32_0 : i32, i32
  }
  func.func @transform_3(%arg0: i32) -> (i32, i32) {
    %c0_i32 = arith.constant 0 : i32
    %c0_i32_0 = arith.constant 0 : i32
    %c0_i32_1 = arith.constant 0 : i32
    return %c0_i32, %c0_i32_0 : i32, i32
  }
  func.func @transform_4(%arg0: i32) -> (i32, i32) {
    %c0_i32 = arith.constant 0 : i32
    %c0_i32_0 = arith.constant 0 : i32
    return %arg0, %c0_i32 : i32, i32
  }
}

module attributes {stable_mosaic.version = 11 : i64} {
  func.func @_mm_epilogue_kernel(%arg0: i32, %arg1: memref<8x576xbf16, #tpu.memory_space<vmem>>, %arg2: memref<576x64xbf16, #tpu.memory_space<vmem>>, %arg3: memref<1x64xf32, #tpu.memory_space<vmem>>, %arg4: memref<1x64xf32, #tpu.memory_space<vmem>>, %arg5: memref<8x64xbf16, #tpu.memory_space<vmem>>, %arg6: memref<8x64xbf16, #tpu.memory_space<vmem>>) attributes {dimension_semantics = [#tpu.dimension_semantics<parallel>], iteration_bounds = array<i64: 1>, scalar_prefetch = 0 : i64, scratch_operands = 0 : i64, tpu.core_type = #tpu.core_type<tc>, window_params = [{transform_indices = @transform_0, window_bounds = array<i64: 8, 576>}, {pipeline_mode = #tpu.pipeline_mode<synchronous>, transform_indices = @transform_1, window_bounds = array<i64: 576, 64>}, {pipeline_mode = #tpu.pipeline_mode<synchronous>, transform_indices = @transform_2, window_bounds = array<i64: 1, 64>}, {pipeline_mode = #tpu.pipeline_mode<synchronous>, transform_indices = @transform_3, window_bounds = array<i64: 1, 64>}, {transform_indices = @transform_4, window_bounds = array<i64: 8, 64>}, {transform_indices = @transform_5, window_bounds = array<i64: 8, 64>}]} {
    %c0 = arith.constant 0 : index
    %c0_0 = arith.constant 0 : index
    %0 = vector.load %arg1[%c0, %c0_0] : memref<8x576xbf16, #tpu.memory_space<vmem>>, vector<8x576xbf16>
    %c0_1 = arith.constant 0 : index
    %c0_2 = arith.constant 0 : index
    %1 = vector.load %arg2[%c0_1, %c0_2] : memref<576x64xbf16, #tpu.memory_space<vmem>>, vector<576x64xbf16>
    %cst = arith.constant dense<0.000000e+00> : vector<8x64xf32>
    %2 = tpu.matmul %0, %1, %cst {dimension_numbers = #tpu.dot_dimension_numbers<[1], [0], [0], [1], [0, 0, 1, 1], [], []>} : vector<8x576xbf16>, vector<576x64xbf16>, vector<8x64xf32> -> vector<8x64xf32>
    %c0_3 = arith.constant 0 : index
    %c0_4 = arith.constant 0 : index
    %3 = vector.load %arg3[%c0_3, %c0_4] : memref<1x64xf32, #tpu.memory_space<vmem>>, vector<1x64xf32>
    %4 = vector.broadcast %3 : vector<1x64xf32> to vector<8x64xf32>
    %5 = arith.mulf %2, %4 : vector<8x64xf32>
    %c0_5 = arith.constant 0 : index
    %c0_6 = arith.constant 0 : index
    %6 = vector.load %arg4[%c0_5, %c0_6] : memref<1x64xf32, #tpu.memory_space<vmem>>, vector<1x64xf32>
    %7 = vector.broadcast %6 : vector<1x64xf32> to vector<8x64xf32>
    %8 = arith.addf %5, %7 : vector<8x64xf32>
    %c0_7 = arith.constant 0 : index
    %c0_8 = arith.constant 0 : index
    %9 = vector.load %arg5[%c0_7, %c0_8] : memref<8x64xbf16, #tpu.memory_space<vmem>>, vector<8x64xbf16>
    %10 = arith.extf %9 : vector<8x64xbf16> to vector<8x64xf32>
    %11 = arith.addf %8, %10 : vector<8x64xf32>
    %cst_9 = arith.constant 0.000000e+00 : f32
    %12 = vector.broadcast %cst_9 : f32 to vector<8x64xf32>
    %13 = arith.maximumf %11, %12 : vector<8x64xf32>
    %14 = arith.truncf %13 : vector<8x64xf32> to vector<8x64xbf16>
    %c0_10 = arith.constant 0 : index
    %c0_11 = arith.constant 0 : index
    %15 = vector.load %arg6[%c0_10, %c0_11] : memref<8x64xbf16, #tpu.memory_space<vmem>>, vector<8x64xbf16>
    tpu.vector_store %arg6[%c0_10, %c0_11], %14 {strides = array<i32>} : memref<8x64xbf16, #tpu.memory_space<vmem>>, vector<8x64xbf16>,
    return
  }
  func.func @transform_0(%arg0: i32) -> (i32, i32) {
    %c0_i32 = arith.constant 0 : i32
    %c0_i32_0 = arith.constant 0 : i32
    return %arg0, %c0_i32 : i32, i32
  }
  func.func @transform_1(%arg0: i32) -> (i32, i32) {
    %c0_i32 = arith.constant 0 : i32
    %c0_i32_0 = arith.constant 0 : i32
    %c0_i32_1 = arith.constant 0 : i32
    return %c0_i32, %c0_i32_0 : i32, i32
  }
  func.func @transform_2(%arg0: i32) -> (i32, i32) {
    %c0_i32 = arith.constant 0 : i32
    %c0_i32_0 = arith.constant 0 : i32
    %c0_i32_1 = arith.constant 0 : i32
    return %c0_i32, %c0_i32_0 : i32, i32
  }
  func.func @transform_3(%arg0: i32) -> (i32, i32) {
    %c0_i32 = arith.constant 0 : i32
    %c0_i32_0 = arith.constant 0 : i32
    %c0_i32_1 = arith.constant 0 : i32
    return %c0_i32, %c0_i32_0 : i32, i32
  }
  func.func @transform_4(%arg0: i32) -> (i32, i32) {
    %c0_i32 = arith.constant 0 : i32
    %c0_i32_0 = arith.constant 0 : i32
    return %arg0, %c0_i32 : i32, i32
  }
  func.func @transform_5(%arg0: i32) -> (i32, i32) {
    %c0_i32 = arith.constant 0 : i32
    %c0_i32_0 = arith.constant 0 : i32
    return %arg0, %c0_i32 : i32, i32
  }
}

module attributes {stable_mosaic.version = 11 : i64} {
  func.func @_mm_epilogue_kernel(%arg0: i32, %arg1: memref<8x64xbf16, #tpu.memory_space<vmem>>, %arg2: memref<64x128xbf16, #tpu.memory_space<vmem>>, %arg3: memref<1x128xf32, #tpu.memory_space<vmem>>, %arg4: memref<1x128xf32, #tpu.memory_space<vmem>>, %arg5: memref<8x128xbf16, #tpu.memory_space<vmem>>) attributes {dimension_semantics = [#tpu.dimension_semantics<parallel>], iteration_bounds = array<i64: 1>, scalar_prefetch = 0 : i64, scratch_operands = 0 : i64, tpu.core_type = #tpu.core_type<tc>, window_params = [{transform_indices = @transform_0, window_bounds = array<i64: 8, 64>}, {pipeline_mode = #tpu.pipeline_mode<synchronous>, transform_indices = @transform_1, window_bounds = array<i64: 64, 128>}, {pipeline_mode = #tpu.pipeline_mode<synchronous>, transform_indices = @transform_2, window_bounds = array<i64: 1, 128>}, {pipeline_mode = #tpu.pipeline_mode<synchronous>, transform_indices = @transform_3, window_bounds = array<i64: 1, 128>}, {transform_indices = @transform_4, window_bounds = array<i64: 8, 128>}]} {
    %c0 = arith.constant 0 : index
    %c0_0 = arith.constant 0 : index
    %0 = vector.load %arg1[%c0, %c0_0] : memref<8x64xbf16, #tpu.memory_space<vmem>>, vector<8x64xbf16>
    %c0_1 = arith.constant 0 : index
    %c0_2 = arith.constant 0 : index
    %1 = vector.load %arg2[%c0_1, %c0_2] : memref<64x128xbf16, #tpu.memory_space<vmem>>, vector<64x128xbf16>
    %cst = arith.constant dense<0.000000e+00> : vector<8x128xf32>
    %2 = tpu.matmul %0, %1, %cst {dimension_numbers = #tpu.dot_dimension_numbers<[1], [0], [0], [1], [0, 0, 1, 1], [], []>} : vector<8x64xbf16>, vector<64x128xbf16>, vector<8x128xf32> -> vector<8x128xf32>
    %c0_3 = arith.constant 0 : index
    %c0_4 = arith.constant 0 : index
    %3 = vector.load %arg3[%c0_3, %c0_4] : memref<1x128xf32, #tpu.memory_space<vmem>>, vector<1x128xf32>
    %4 = vector.broadcast %3 : vector<1x128xf32> to vector<8x128xf32>
    %5 = arith.mulf %2, %4 : vector<8x128xf32>
    %c0_5 = arith.constant 0 : index
    %c0_6 = arith.constant 0 : index
    %6 = vector.load %arg4[%c0_5, %c0_6] : memref<1x128xf32, #tpu.memory_space<vmem>>, vector<1x128xf32>
    %7 = vector.broadcast %6 : vector<1x128xf32> to vector<8x128xf32>
    %8 = arith.addf %5, %7 : vector<8x128xf32>
    %9 = arith.truncf %8 : vector<8x128xf32> to vector<8x128xbf16>
    %c0_7 = arith.constant 0 : index
    %c0_8 = arith.constant 0 : index
    %10 = vector.load %arg5[%c0_7, %c0_8] : memref<8x128xbf16, #tpu.memory_space<vmem>>, vector<8x128xbf16>
    tpu.vector_store %arg5[%c0_7, %c0_8], %9 {strides = array<i32>} : memref<8x128xbf16, #tpu.memory_space<vmem>>, vector<8x128xbf16>,
    return
  }
  func.func @transform_0(%arg0: i32) -> (i32, i32) {
    %c0_i32 = arith.constant 0 : i32
    %c0_i32_0 = arith.constant 0 : i32
    return %arg0, %c0_i32 : i32, i32
  }
  func.func @transform_1(%arg0: i32) -> (i32, i32) {
    %c0_i32 = arith.constant 0 : i32
    %c0_i32_0 = arith.constant 0 : i32
    %c0_i32_1 = arith.constant 0 : i32
    return %c0_i32, %c0_i32_0 : i32, i32
  }
  func.func @transform_2(%arg0: i32) -> (i32, i32) {
    %c0_i32 = arith.constant 0 : i32
    %c0_i32_0 = arith.constant 0 : i32
    %c0_i32_1 = arith.constant 0 : i32
    return %c0_i32, %c0_i32_0 : i32, i32
  }
  func.func @transform_3(%arg0: i32) -> (i32, i32) {
    %c0_i32 = arith.constant 0 : i32
    %c0_i32_0 = arith.constant 0 : i32
    %c0_i32_1 = arith.constant 0 : i32
    return %c0_i32, %c0_i32_0 : i32, i32
  }
  func.func @transform_4(%arg0: i32) -> (i32, i32) {
    %c0_i32 = arith.constant 0 : i32
    %c0_i32_0 = arith.constant 0 : i32
    return %arg0, %c0_i32 : i32, i32
  }
}

module attributes {stable_mosaic.version = 11 : i64} {
  func.func @_mm_epilogue_kernel(%arg0: i32, %arg1: memref<8x576xbf16, #tpu.memory_space<vmem>>, %arg2: memref<576x128xbf16, #tpu.memory_space<vmem>>, %arg3: memref<1x128xf32, #tpu.memory_space<vmem>>, %arg4: memref<1x128xf32, #tpu.memory_space<vmem>>, %arg5: memref<8x128xbf16, #tpu.memory_space<vmem>>) attributes {dimension_semantics = [#tpu.dimension_semantics<parallel>], iteration_bounds = array<i64: 1>, scalar_prefetch = 0 : i64, scratch_operands = 0 : i64, tpu.core_type = #tpu.core_type<tc>, window_params = [{transform_indices = @transform_0, window_bounds = array<i64: 8, 576>}, {pipeline_mode = #tpu.pipeline_mode<synchronous>, transform_indices = @transform_1, window_bounds = array<i64: 576, 128>}, {pipeline_mode = #tpu.pipeline_mode<synchronous>, transform_indices = @transform_2, window_bounds = array<i64: 1, 128>}, {pipeline_mode = #tpu.pipeline_mode<synchronous>, transform_indices = @transform_3, window_bounds = array<i64: 1, 128>}, {transform_indices = @transform_4, window_bounds = array<i64: 8, 128>}]} {
    %c0 = arith.constant 0 : index
    %c0_0 = arith.constant 0 : index
    %0 = vector.load %arg1[%c0, %c0_0] : memref<8x576xbf16, #tpu.memory_space<vmem>>, vector<8x576xbf16>
    %c0_1 = arith.constant 0 : index
    %c0_2 = arith.constant 0 : index
    %1 = vector.load %arg2[%c0_1, %c0_2] : memref<576x128xbf16, #tpu.memory_space<vmem>>, vector<576x128xbf16>
    %cst = arith.constant dense<0.000000e+00> : vector<8x128xf32>
    %2 = tpu.matmul %0, %1, %cst {dimension_numbers = #tpu.dot_dimension_numbers<[1], [0], [0], [1], [0, 0, 1, 1], [], []>} : vector<8x576xbf16>, vector<576x128xbf16>, vector<8x128xf32> -> vector<8x128xf32>
    %c0_3 = arith.constant 0 : index
    %c0_4 = arith.constant 0 : index
    %3 = vector.load %arg3[%c0_3, %c0_4] : memref<1x128xf32, #tpu.memory_space<vmem>>, vector<1x128xf32>
    %4 = vector.broadcast %3 : vector<1x128xf32> to vector<8x128xf32>
    %5 = arith.mulf %2, %4 : vector<8x128xf32>
    %c0_5 = arith.constant 0 : index
    %c0_6 = arith.constant 0 : index
    %6 = vector.load %arg4[%c0_5, %c0_6] : memref<1x128xf32, #tpu.memory_space<vmem>>, vector<1x128xf32>
    %7 = vector.broadcast %6 : vector<1x128xf32> to vector<8x128xf32>
    %8 = arith.addf %5, %7 : vector<8x128xf32>
    %cst_7 = arith.constant 0.000000e+00 : f32
    %9 = vector.broadcast %cst_7 : f32 to vector<8x128xf32>
    %10 = arith.maximumf %8, %9 : vector<8x128xf32>
    %11 = arith.truncf %10 : vector<8x128xf32> to vector<8x128xbf16>
    %c0_8 = arith.constant 0 : index
    %c0_9 = arith.constant 0 : index
    %12 = vector.load %arg5[%c0_8, %c0_9] : memref<8x128xbf16, #tpu.memory_space<vmem>>, vector<8x128xbf16>
    tpu.vector_store %arg5[%c0_8, %c0_9], %11 {strides = array<i32>} : memref<8x128xbf16, #tpu.memory_space<vmem>>, vector<8x128xbf16>,
    return
  }
  func.func @transform_0(%arg0: i32) -> (i32, i32) {
    %c0_i32 = arith.constant 0 : i32
    %c0_i32_0 = arith.constant 0 : i32
    return %arg0, %c0_i32 : i32, i32
  }
  func.func @transform_1(%arg0: i32) -> (i32, i32) {
    %c0_i32 = arith.constant 0 : i32
    %c0_i32_0 = arith.constant 0 : i32
    %c0_i32_1 = arith.constant 0 : i32
    return %c0_i32, %c0_i32_0 : i32, i32
  }
  func.func @transform_2(%arg0: i32) -> (i32, i32) {
    %c0_i32 = arith.constant 0 : i32
    %c0_i32_0 = arith.constant 0 : i32
    %c0_i32_1 = arith.constant 0 : i32
    return %c0_i32, %c0_i32_0 : i32, i32
  }
  func.func @transform_3(%arg0: i32) -> (i32, i32) {
    %c0_i32 = arith.constant 0 : i32
    %c0_i32_0 = arith.constant 0 : i32
    %c0_i32_1 = arith.constant 0 : i32
    return %c0_i32, %c0_i32_0 : i32, i32
  }
  func.func @transform_4(%arg0: i32) -> (i32, i32) {
    %c0_i32 = arith.constant 0 : i32
    %c0_i32_0 = arith.constant 0 : i32
    return %arg0, %c0_i32 : i32, i32
  }
}

module attributes {stable_mosaic.version = 11 : i64} {
  func.func @_mm_epilogue_kernel(%arg0: i32, %arg1: memref<8x1152xbf16, #tpu.memory_space<vmem>>, %arg2: memref<1152x128xbf16, #tpu.memory_space<vmem>>, %arg3: memref<1x128xf32, #tpu.memory_space<vmem>>, %arg4: memref<1x128xf32, #tpu.memory_space<vmem>>, %arg5: memref<8x128xbf16, #tpu.memory_space<vmem>>, %arg6: memref<8x128xbf16, #tpu.memory_space<vmem>>) attributes {dimension_semantics = [#tpu.dimension_semantics<parallel>], iteration_bounds = array<i64: 1>, scalar_prefetch = 0 : i64, scratch_operands = 0 : i64, tpu.core_type = #tpu.core_type<tc>, window_params = [{transform_indices = @transform_0, window_bounds = array<i64: 8, 1152>}, {pipeline_mode = #tpu.pipeline_mode<synchronous>, transform_indices = @transform_1, window_bounds = array<i64: 1152, 128>}, {pipeline_mode = #tpu.pipeline_mode<synchronous>, transform_indices = @transform_2, window_bounds = array<i64: 1, 128>}, {pipeline_mode = #tpu.pipeline_mode<synchronous>, transform_indices = @transform_3, window_bounds = array<i64: 1, 128>}, {transform_indices = @transform_4, window_bounds = array<i64: 8, 128>}, {transform_indices = @transform_5, window_bounds = array<i64: 8, 128>}]} {
    %c0 = arith.constant 0 : index
    %c0_0 = arith.constant 0 : index
    %0 = vector.load %arg1[%c0, %c0_0] : memref<8x1152xbf16, #tpu.memory_space<vmem>>, vector<8x1152xbf16>
    %c0_1 = arith.constant 0 : index
    %c0_2 = arith.constant 0 : index
    %1 = vector.load %arg2[%c0_1, %c0_2] : memref<1152x128xbf16, #tpu.memory_space<vmem>>, vector<1152x128xbf16>
    %cst = arith.constant dense<0.000000e+00> : vector<8x128xf32>
    %2 = tpu.matmul %0, %1, %cst {dimension_numbers = #tpu.dot_dimension_numbers<[1], [0], [0], [1], [0, 0, 1, 1], [], []>} : vector<8x1152xbf16>, vector<1152x128xbf16>, vector<8x128xf32> -> vector<8x128xf32>
    %c0_3 = arith.constant 0 : index
    %c0_4 = arith.constant 0 : index
    %3 = vector.load %arg3[%c0_3, %c0_4] : memref<1x128xf32, #tpu.memory_space<vmem>>, vector<1x128xf32>
    %4 = vector.broadcast %3 : vector<1x128xf32> to vector<8x128xf32>
    %5 = arith.mulf %2, %4 : vector<8x128xf32>
    %c0_5 = arith.constant 0 : index
    %c0_6 = arith.constant 0 : index
    %6 = vector.load %arg4[%c0_5, %c0_6] : memref<1x128xf32, #tpu.memory_space<vmem>>, vector<1x128xf32>
    %7 = vector.broadcast %6 : vector<1x128xf32> to vector<8x128xf32>
    %8 = arith.addf %5, %7 : vector<8x128xf32>
    %c0_7 = arith.constant 0 : index
    %c0_8 = arith.constant 0 : index
    %9 = vector.load %arg5[%c0_7, %c0_8] : memref<8x128xbf16, #tpu.memory_space<vmem>>, vector<8x128xbf16>
    %10 = arith.extf %9 : vector<8x128xbf16> to vector<8x128xf32>
    %11 = arith.addf %8, %10 : vector<8x128xf32>
    %cst_9 = arith.constant 0.000000e+00 : f32
    %12 = vector.broadcast %cst_9 : f32 to vector<8x128xf32>
    %13 = arith.maximumf %11, %12 : vector<8x128xf32>
    %14 = arith.truncf %13 : vector<8x128xf32> to vector<8x128xbf16>
    %c0_10 = arith.constant 0 : index
    %c0_11 = arith.constant 0 : index
    %15 = vector.load %arg6[%c0_10, %c0_11] : memref<8x128xbf16, #tpu.memory_space<vmem>>, vector<8x128xbf16>
    tpu.vector_store %arg6[%c0_10, %c0_11], %14 {strides = array<i32>} : memref<8x128xbf16, #tpu.memory_space<vmem>>, vector<8x128xbf16>,
    return
  }
  func.func @transform_0(%arg0: i32) -> (i32, i32) {
    %c0_i32 = arith.constant 0 : i32
    %c0_i32_0 = arith.constant 0 : i32
    return %arg0, %c0_i32 : i32, i32
  }
  func.func @transform_1(%arg0: i32) -> (i32, i32) {
    %c0_i32 = arith.constant 0 : i32
    %c0_i32_0 = arith.constant 0 : i32
    %c0_i32_1 = arith.constant 0 : i32
    return %c0_i32, %c0_i32_0 : i32, i32
  }
  func.func @transform_2(%arg0: i32) -> (i32, i32) {
    %c0_i32 = arith.constant 0 : i32
    %c0_i32_0 = arith.constant 0 : i32
    %c0_i32_1 = arith.constant 0 : i32
    return %c0_i32, %c0_i32_0 : i32, i32
  }
  func.func @transform_3(%arg0: i32) -> (i32, i32) {
    %c0_i32 = arith.constant 0 : i32
    %c0_i32_0 = arith.constant 0 : i32
    %c0_i32_1 = arith.constant 0 : i32
    return %c0_i32, %c0_i32_0 : i32, i32
  }
  func.func @transform_4(%arg0: i32) -> (i32, i32) {
    %c0_i32 = arith.constant 0 : i32
    %c0_i32_0 = arith.constant 0 : i32
    return %arg0, %c0_i32 : i32, i32
  }
  func.func @transform_5(%arg0: i32) -> (i32, i32) {
    %c0_i32 = arith.constant 0 : i32
    %c0_i32_0 = arith.constant 0 : i32
    return %arg0, %c0_i32 : i32, i32
  }
}

module attributes {stable_mosaic.version = 11 : i64} {
  func.func @_pool_fc_kernel(%arg0: i32, %arg1: memref<2x4x128xbf16, #tpu.memory_space<vmem>>, %arg2: memref<128x100xbf16, #tpu.memory_space<vmem>>, %arg3: memref<1x100xf32, #tpu.memory_space<vmem>>, %arg4: memref<2x100xf32, #tpu.memory_space<vmem>>) attributes {dimension_semantics = [#tpu.dimension_semantics<arbitrary>], iteration_bounds = array<i64: 1>, scalar_prefetch = 0 : i64, scratch_operands = 0 : i64, tpu.core_type = #tpu.core_type<tc>, window_params = [{pipeline_mode = #tpu.pipeline_mode<synchronous>, transform_indices = @transform_0, window_bounds = array<i64: 2, 4, 128>}, {pipeline_mode = #tpu.pipeline_mode<synchronous>, transform_indices = @transform_1, window_bounds = array<i64: 128, 100>}, {pipeline_mode = #tpu.pipeline_mode<synchronous>, transform_indices = @transform_2, window_bounds = array<i64: 1, 100>}, {pipeline_mode = #tpu.pipeline_mode<synchronous>, transform_indices = @transform_3, window_bounds = array<i64: 2, 100>}]} {
    %c0 = arith.constant 0 : index
    %c0_0 = arith.constant 0 : index
    %c0_1 = arith.constant 0 : index
    %0 = vector.load %arg1[%c0, %c0_0, %c0_1] : memref<2x4x128xbf16, #tpu.memory_space<vmem>>, vector<2x4x128xbf16>
    %1 = arith.extf %0 : vector<2x4x128xbf16> to vector<2x4x128xf32>
    %cst = arith.constant dense<0.000000e+00> : vector<2x128xf32>
    %2 = vector.multi_reduction <add>, %1, %cst [1] : vector<2x4x128xf32> to vector<2x128xf32>
    %cst_2 = arith.constant 4.000000e+00 : f32
    %3 = vector.broadcast %cst_2 : f32 to vector<2x128xf32>
    %4 = arith.divf %2, %3 : vector<2x128xf32>
    %5 = arith.truncf %4 : vector<2x128xf32> to vector<2x128xbf16>
    %c0_3 = arith.constant 0 : index
    %c0_4 = arith.constant 0 : index
    %6 = vector.load %arg2[%c0_3, %c0_4] : memref<128x100xbf16, #tpu.memory_space<vmem>>, vector<128x100xbf16>
    %cst_5 = arith.constant dense<0.000000e+00> : vector<2x100xf32>
    %7 = tpu.matmul %5, %6, %cst_5 {dimension_numbers = #tpu.dot_dimension_numbers<[1], [0], [0], [1], [0, 0, 1, 1], [], []>} : vector<2x128xbf16>, vector<128x100xbf16>, vector<2x100xf32> -> vector<2x100xf32>
    %c0_6 = arith.constant 0 : index
    %c0_7 = arith.constant 0 : index
    %8 = vector.load %arg3[%c0_6, %c0_7] : memref<1x100xf32, #tpu.memory_space<vmem>>, vector<1x100xf32>
    %9 = vector.broadcast %8 : vector<1x100xf32> to vector<2x100xf32>
    %10 = arith.addf %7, %9 : vector<2x100xf32>
    %c0_8 = arith.constant 0 : index
    %c0_9 = arith.constant 0 : index
    %11 = vector.load %arg4[%c0_8, %c0_9] : memref<2x100xf32, #tpu.memory_space<vmem>>, vector<2x100xf32>
    tpu.vector_store %arg4[%c0_8, %c0_9], %10 {strides = array<i32>} : memref<2x100xf32, #tpu.memory_space<vmem>>, vector<2x100xf32>,
    return
  }
  func.func @transform_0(%arg0: i32) -> (i32, i32, i32) {
    %c0_i32 = arith.constant 0 : i32
    %c0_i32_0 = arith.constant 0 : i32
    %c0_i32_1 = arith.constant 0 : i32
    %c0_i32_2 = arith.constant 0 : i32
    return %c0_i32, %c0_i32_0, %c0_i32_1 : i32, i32, i32
  }
  func.func @transform_1(%arg0: i32) -> (i32, i32) {
    %c0_i32 = arith.constant 0 : i32
    %c0_i32_0 = arith.constant 0 : i32
    %c0_i32_1 = arith.constant 0 : i32
    return %c0_i32, %c0_i32_0 : i32, i32
  }
  func.func @transform_2(%arg0: i32) -> (i32, i32) {
    %c0_i32 = arith.constant 0 : i32
    %c0_i32_0 = arith.constant 0 : i32
    %c0_i32_1 = arith.constant 0 : i32
    return %c0_i32, %c0_i32_0 : i32, i32
  }
  func.func @transform_3(%arg0: i32) -> (i32, i32) {
    %c0_i32 = arith.constant 0 : i32
    %c0_i32_0 = arith.constant 0 : i32
    %c0_i32_1 = arith.constant 0 : i32
    return %c0_i32, %c0_i32_0 : i32, i32
  }
}

</mosaic_0001>

<bundles_post_ra>
// kernel: _lambda_.16
= control target key start
LH: loop header
LB: loop body
LE: loop exit
PB: predicated region body
PF: predicated region fallthrough
CT: control target
= control target key end

     0   :  { %s544_s15 = smov 0   ;;  %s588_s0 = inlined_call_operand.vmem [shape: bf16[128,16], index: 0, kind: input, shape index: {}]   ;;  %s589_s1 = inlined_call_operand.vmem [shape: bf16[16,16], index: 1, kind: input, shape index: {}]   ;;  %s590_s2 = inlined_call_operand.vmem [shape: f32[1,16], index: 2, kind: input, shape index: {}]   ;;  %s591_s3 = inlined_call_operand.vmem [shape: f32[1,16], index: 3, kind: input, shape index: {}]   ;;  %s592_s4 = inlined_call_operand.vmem [shape: bf16[128,16], index: 4, kind: output, shape index: {}]  }
   0x1 LB: > { %s443_s16 = sadd.s32 4294967295, %s517_s15   ;;  %p447_p0 = scmp.ge.s32.totalorder %s517_s15, 1  ;;  %s517_s15 = sphi %s544_s15, %s14_s15  }
   0x2   : > { %p163_p1 = scmp.lt.s32.totalorder %s517_s15, 3 }
   0x4   : > { %p164_p2 = pnand %p447_p0, %p163_p1 }
   0x5   : > { %s448_s19 = sshll.u32 (!%p164_p2), %s443_s16, 3 }
   0x6   : > { %167 = sbr.rel (%p164_p2) target bundleno = 223 (0xdf), region = 36  ;;  %p190_p3 = scmp.lt.s32.totalorder (!%p164_p2), %s448_s19, 15 }
   0xb   : > { %v506_v0 = vld [vmem:[%s589_s1] sm:$0xff]   ;;  %s594_s19 = smov (!%p190_p3, %s448_s19), 15  ;;  %vm238_vm0 = vcmask 130048   ;;  %vm378_vm1 = vcmask 125952  }
   0xc   : > { %486 = vmatprep.subr.bf16.mxu0 %v506_v0  ;;  %496 = vmatprep.subr.bf16.mxu1 %v506_v0  ;;  %s449_s20 = sshll.u32 %s594_s19, 2  ;;  %v461_v5 = vld [vmem:[%s590_s2] ss:$0 sm:$0xff] }
   0xd   : > { %487 = vmatpush3.bf16.msra.mxu0 %v506_v0  ;;  %497 = vmatpush3.bf16.msra.mxu1 %v506_v0  ;;  %s193_s23 = scalar_lea.vmem %s588_s0, %s449_s20  ;;  %v462_v7 = vld [vmem:[%s591_s3] ss:$0 sm:$0xff]  ;;  %s567_s30 = scalar_lea.vmem %s592_s4, %s449_s20 }
   0xe   : > { %v507_v1 = vld [vmem:[%s193_s23] sm:$0xff]   ;;  %v508_v2 = vld [vmem:[%s193_s23 + $0x10] sm:$0xff]   ;;  %v509_v3 = vld [vmem:[%s193_s23 + $0x8] sm:$0xff]  }
   0xf   : > { %488 = vmatprep.mubr.msk.bf16.mxu0 %vm238_vm0, %v507_v1  ;;  %492 = vmatprep.mubr.msk.bf16.mxu1 %vm238_vm0, %v508_v2  ;;  %v510_v4 = vld [vmem:[%s193_s23 + $0x18] sm:$0xff]  }
  0x10   : > { %489 = vmatmul.mubr.msk.bf16.vlgmr.msra.gmra.mxu0 %vm238_vm0, %v509_v3  ;;  %493 = vmatmul.mubr.msk.bf16.vlgmr.msra.gmra.mxu1 %vm238_vm0, %v510_v4 }
  0xd0   : > { %v490_v6 = vpop.f32.mrf.mxu0  ;;  %v494_v9 = vpop.f32.mrf.mxu1 }
  0xd1   : > { %v325_v8 = vmul.f32 %v490_v6, %v461_v5  ;;  %v329_v10 = vmul.f32 %v494_v9, %v461_v5 }
  0xd2   : > { %v285_v11 = vpop.f32.mrf.mxu0  ;;  %v301_v14 = vpop.f32.mrf.mxu1 }
  0xd3   : > { %v340_v12 = vadd.f32 %v462_v7, %v325_v8  ;;  %v323_v13 = vmul.f32 %v461_v5, %v285_v11  ;;  %v344_v15 = vadd.f32 %v462_v7, %v329_v10  ;;  %v327_v16 = vmul.f32 %v461_v5, %v301_v14 }
  0xd4   : > { %v491_v17 = vpop.f32.mrf.mxu0  ;;  %v495_v21 = vpop.f32.mrf.mxu1 }
  0xd5   : > { %v475_v18 = vpack.c.bf16 %v340_v12, %v340_v12  ;;  %v338_v19 = vadd.f32 %v462_v7, %v323_v13  ;;  %v326_v20 = vmul.f32 %v491_v17, %v461_v5  ;;  %v479_v22 = vpack.c.bf16 %v344_v15, %v344_v15 }
  0xd6   : > { %v342_v23 = vadd.f32 %v462_v7, %v327_v16  ;;  %v330_v24 = vmul.f32 %v495_v21, %v461_v5  ;;  %v288_v25 = vpop.f32.mrf.mxu0  ;;  %v304_v29 = vpop.f32.mrf.mxu1 }
  0xd7   : > { %381 = vst.msk [vmem:[%s567_s30 + $0x8] sm:$0xf] %vm378_vm1, %v475_v18  ;;  %v473_v26 = vpack.c.bf16 %v338_v19, %v338_v19  ;;  %v341_v27 = vadd.f32 %v462_v7, %v326_v20  ;;  %v324_v28 = vmul.f32 %v461_v5, %v288_v25  ;;  %385 = vst.msk [vmem:[%s567_s30 + $0x18] sm:$0xf] %vm378_vm1, %v479_v22 }
  0xd8   : > { %v477_v30 = vpack.c.bf16 %v342_v23, %v342_v23  ;;  %v345_v31 = vadd.f32 %v462_v7, %v330_v24  ;;  %v328_v32 = vmul.f32 %v461_v5, %v304_v29 }
  0xd9   : > { %379 = vst.msk [vmem:[%s567_s30] sm:$0xf] %vm378_vm1, %v473_v26  ;;  %v476_v33 = vpack.c.bf16 %v341_v27, %v341_v27  ;;  %v339_v34 = vadd.f32 %v462_v7, %v324_v28 }
  0xda   : > { %383 = vst.msk [vmem:[%s567_s30 + $0x10] sm:$0xf] %vm378_vm1, %v477_v30  ;;  %v480_v35 = vpack.c.bf16 %v345_v31, %v345_v31  ;;  %v343_v36 = vadd.f32 %v462_v7, %v328_v32 }
  0xdb   : > { %382 = vst.msk [vmem:[%s567_s30 + $0xc] sm:$0xf] %vm378_vm1, %v476_v33  ;;  %v474_v37 = vpack.c.bf16 %v339_v34, %v339_v34 }
  0xdc   : > { %386 = vst.msk [vmem:[%s567_s30 + $0x1c] sm:$0xf] %vm378_vm1, %v480_v35  ;;  %v478_v38 = vpack.c.bf16 %v343_v36, %v343_v36 }
  0xdd   : > { %380 = vst.msk [vmem:[%s567_s30 + $0x4] sm:$0xf] %vm378_vm1, %v474_v37 }
  0xde   : > { %384 = vst.msk [vmem:[%s567_s30 + $0x14] sm:$0xf] %vm378_vm1, %v478_v38 }
  0xdf PF: > { %s14_s15 = sadd.s32 1, %s517_s15  }
  0xe0   : > { %p11_p4 = scmp.ge.s32.totalorder %s14_s15, 4  }
  0xe2   :  { %13 = sbr.rel (!%p11_p4) target bundleno = 1 (0x1), region = 66 }

// kernel: _lambda_.14
= control target key start
LH: loop header
LB: loop body
LE: loop exit
PB: predicated region body
PF: predicated region fallthrough
CT: control target
= control target key end

     0   :  { %s1103_s15 = smov 0   ;;  %s1307_s0 = inlined_call_operand.vmem [shape: bf16[512,27], index: 0, kind: input, shape index: {}]   ;;  %s1308_s1 = inlined_call_operand.vmem [shape: bf16[27,16], index: 1, kind: input, shape index: {}]   ;;  %s1309_s2 = inlined_call_operand.vmem [shape: f32[1,16], index: 2, kind: input, shape index: {}]   ;;  %s1310_s3 = inlined_call_operand.vmem [shape: f32[1,16], index: 3, kind: input, shape index: {}]   ;;  %s1311_s4 = inlined_call_operand.vmem [shape: bf16[512,16], index: 4, kind: output, shape index: {}]  }
   0x1 LB: > { %s873_s16 = sadd.s32 4294967295, %s1075_s15   ;;  %p877_p0 = scmp.ge.s32.totalorder %s1075_s15, 1  ;;  %s1075_s15 = sphi %s1103_s15, %s14_s15  }
   0x2   : > { %p163_p1 = scmp.lt.s32.totalorder %s1075_s15, 3 }
   0x4   : > { %p164_p2 = pnand %p877_p0, %p163_p1 }
   0x5   : > { %s878_s19 = sshll.u32 (!%p164_p2), %s873_s16, 5 }
   0x6   : > { %167 = sbr.rel (%p164_p2) target bundleno = 259 (0x103), region = 36  ;;  %p190_p3 = scmp.lt.s32.totalorder (!%p164_p2), %s878_s19, 63 }
   0xb   : > { %v1051_v0 = vld [vmem:[%s1308_s1 + $0x8] sm:$0x3f]   ;;  %vm378_vm0 = vcmask 1044480   ;;  %vm379_vm1 = vcmask 1045504   ;;  %v1077_v1 = vmov 65535   ;;  %v1052_v5 = vld [vmem:[%s1308_s1] sm:$0xff]  }
   0xc   : > { %v380_v2 = vsel %vm378_vm0, 4294967295, %v1077_v1  ;;  %s1313_s19 = smov (!%p190_p3, %s878_s19), 63  ;;  %vm329_vm2 = vcmask 220160   ;;  %v1162_v22 = vld [vmem:[%s1309_s2] ss:$0 sm:$0xff]  ;;  %vm784_vm3 = vcmask 125952  }
   0xd   : > { %v381_v3 = vsel %vm379_vm1, %v380_v2, 0  ;;  %s879_s22 = sshll.u32 %s1313_s19, 2  ;;  %v1167_v24 = vld [vmem:[%s1310_s3] ss:$0 sm:$0xff] }
   0xe   : > { %v383_v4 = vand.u32 %v1051_v0, %v381_v3  ;;  %s1125_s25 = scalar_lea.vmem %s1307_s0, %s879_s22  ;;  %s1182_s6 = scalar_lea.vmem %s1311_s4, %s879_s22 }
   0xf   : > { %v1053_v6 = vld [vmem:[%s1125_s25] sm:$0xff]   ;;  %v1055_v8 = vld [vmem:[%s1125_s25 + $0x8] sm:$0xff]   ;;  %v1057_v10 = vld [vmem:[%s1125_s25 + $0x10] sm:$0xff]  }
  0x10   : > { %1002 = vmatprep.subr.bf16.mxu0 %v383_v4  ;;  %1038 = vmatprep.subr.bf16.mxu1 %v383_v4  ;;  %v1054_v7 = vld [vmem:[%s1125_s25 + $0x40] sm:$0xff]   ;;  %v1056_v9 = vld [vmem:[%s1125_s25 + $0x48] sm:$0xff]   ;;  %v1058_v11 = vld [vmem:[%s1125_s25 + $0x50] sm:$0xff]  }
  0x11   : > { %1003 = vmatpush3.bf16.msra.mxu0 %v383_v4  ;;  %1040 = vmatpush3.bf16.msra.mxu1 %v383_v4  ;;  %v1059_v12 = vld [vmem:[%s1125_s25 + $0x18] sm:$0xff]   ;;  %v1061_v14 = vld [vmem:[%s1125_s25 + $0x20] sm:$0xff]   ;;  %v1063_v16 = vld [vmem:[%s1125_s25 + $0x28] sm:$0xff]  }
  0x12   : > { %1004 = vmatprep.subr.bf16.mxu0 %v1052_v5  ;;  %1039 = vmatprep.subr.bf16.mxu1 %v1052_v5  ;;  %v1060_v13 = vld [vmem:[%s1125_s25 + $0x58] sm:$0xff]   ;;  %v1062_v15 = vld [vmem:[%s1125_s25 + $0x60] sm:$0xff]   ;;  %v1064_v17 = vld [vmem:[%s1125_s25 + $0x68] sm:$0xff]  }
  0x13   : > { %1006 = vmatprep.mubr.msk.bf16.mxu0 %vm329_vm2, %v1053_v6  ;;  %1022 = vmatprep.mubr.msk.bf16.mxu1 %vm329_vm2, %v1054_v7  ;;  %v1065_v18 = vld [vmem:[%s1125_s25 + $0x30] sm:$0xff]   ;;  %v1067_v20 = vld [vmem:[%s1125_s25 + $0x38] sm:$0xff]  }
  0x14   : > { %v1066_v19 = vld [vmem:[%s1125_s25 + $0x70] sm:$0xff]   ;;  %v1068_v21 = vld [vmem:[%s1125_s25 + $0x78] sm:$0xff]  }
  0x15   : > { %1005 = vmatpush3.bf16.msra.mxu0 %v1052_v5  ;;  %1041 = vmatpush3.bf16.msra.mxu1 %v1052_v5 }
  0x18   : > { %1007 = vmatmul.mubr.msk.bf16.vlgmr.msra.gmra.mxu0 %vm329_vm2, %v1055_v8  ;;  %1023 = vmatmul.mubr.msk.bf16.vlgmr.msra.gmra.mxu1 %vm329_vm2, %v1056_v9 }
  0x19   : > { %1010 = vmatprep.mubr.msk.bf16.mxu0 %vm329_vm2, %v1057_v10  ;;  %1026 = vmatprep.mubr.msk.bf16.mxu1 %vm329_vm2, %v1058_v11 }
  0x20   : > { %1011 = vmatmul.mubr.msk.bf16.gmra.mxu0 %vm329_vm2, %v1059_v12  ;;  %1027 = vmatmul.mubr.msk.bf16.gmra.mxu1 %vm329_vm2, %v1060_v13 }
  0x21   : > { %1014 = vmatprep.mubr.msk.bf16.mxu0 %vm329_vm2, %v1061_v14  ;;  %1030 = vmatprep.mubr.msk.bf16.mxu1 %vm329_vm2, %v1062_v15 }
  0x28   : > { %1015 = vmatmul.mubr.msk.bf16.gmra.mxu0 %vm329_vm2, %v1063_v16  ;;  %1031 = vmatmul.mubr.msk.bf16.gmra.mxu1 %vm329_vm2, %v1064_v17 }
  0x29   : > { %1018 = vmatprep.mubr.msk.bf16.mxu0 %vm329_vm2, %v1065_v18  ;;  %1034 = vmatprep.mubr.msk.bf16.mxu1 %vm329_vm2, %v1066_v19 }
  0x30   : > { %1019 = vmatmul.mubr.msk.bf16.gmra.mxu0 %vm329_vm2, %v1067_v20  ;;  %1035 = vmatmul.mubr.msk.bf16.gmra.mxu1 %vm329_vm2, %v1068_v21 }
  0xd8   : > { %v1008_v23 = vpop.f32.mrf.mxu0  ;;  %v1024_v25 = vpop.f32.mrf.mxu1 }
  0xd9   : > { %v555_v26 = vmul.f32 %v1008_v23, %v1162_v22  ;;  %v571_v27 = vmul.f32 %v1024_v25, %v1162_v22 }
  0xda   : > { %v419_v28 = vpop.f32.mrf.mxu0  ;;  %v483_v29 = vpop.f32.mrf.mxu1 }
  0xdb   : > { %v594_v30 = vadd.f32 %v1167_v24, %v555_v26  ;;  %v610_v31 = vadd.f32 %v1167_v24, %v571_v27  ;;  %v553_v32 = vmul.f32 %v1162_v22, %v419_v28  ;;  %v569_v33 = vmul.f32 %v1162_v22, %v483_v29 }
  0xdc   : > { %v1009_v34 = vpop.f32.mrf.mxu0  ;;  %v1025_v35 = vpop.f32.mrf.mxu1 }
  0xdd   : > { %v626_v36 = vmax.f32 %v594_v30, 0.0  ;;  %v642_v37 = vmax.f32 %v610_v31, 0.0  ;;  %v592_v38 = vadd.f32 %v1167_v24, %v553_v32  ;;  %v608_v39 = vadd.f32 %v1167_v24, %v569_v33 }
  0xde   : > { %v556_v40 = vmul.f32 %v1009_v34, %v1162_v22  ;;  %v572_v41 = vmul.f32 %v1025_v35, %v1162_v22  ;;  %v422_v42 = vpop.f32.mrf.mxu0  ;;  %v486_v43 = vpop.f32.mrf.mxu1 }
  0xdf   : > { %v954_v44 = vpack.c.bf16 %v626_v36, %v626_v36  ;;  %v970_v45 = vpack.c.bf16 %v642_v37, %v642_v37  ;;  %v624_v46 = vmax.f32 %v592_v38, 0.0  ;;  %v640_v47 = vmax.f32 %v608_v39, 0.0 }
  0xe0   : > { %v595_v48 = vadd.f32 %v1167_v24, %v556_v40  ;;  %v611_v49 = vadd.f32 %v1167_v24, %v572_v41  ;;  %v554_v50 = vmul.f32 %v1162_v22, %v422_v42  ;;  %v570_v51 = vmul.f32 %v1162_v22, %v486_v43  ;;  %v1012_v52 = vpop.f32.mrf.mxu0  ;;  %v1028_v53 = vpop.f32.mrf.mxu1 }
  0xe1   : > { %787 = vst.msk [vmem:[%s1182_s6 + $0x8] sm:$0xf] %vm784_vm3, %v954_v44  ;;  %803 = vst.msk [vmem:[%s1182_s6 + $0x48] sm:$0xf] %vm784_vm3, %v970_v45  ;;  %v952_v54 = vpack.c.bf16 %v624_v46, %v624_v46  ;;  %v968_v55 = vpack.c.bf16 %v640_v47, %v640_v47  ;;  %v559_v56 = vmul.f32 %v1012_v52, %v1162_v22 }
  0xe2   : > { %v575_v57 = vmul.f32 %v1028_v53, %v1162_v22  ;;  %v627_v58 = vmax.f32 %v595_v48, 0.0  ;;  %v643_v59 = vmax.f32 %v611_v49, 0.0  ;;  %v593_v60 = vadd.f32 %v1167_v24, %v554_v50  ;;  %v435_v62 = vpop.f32.mrf.mxu0  ;;  %v499_v63 = vpop.f32.mrf.mxu1 }
  0xe3   : > { %v609_v61 = vadd.f32 %v1167_v24, %v570_v51  ;;  %785 = vst.msk [vmem:[%s1182_s6] sm:$0xf] %vm784_vm3, %v952_v54  ;;  %801 = vst.msk [vmem:[%s1182_s6 + $0x40] sm:$0xf] %vm784_vm3, %v968_v55  ;;  %v598_v0 = vadd.f32 %v1167_v24, %v559_v56  ;;  %v557_v2 = vmul.f32 %v1162_v22, %v435_v62 }
  0xe4   : > { %v614_v1 = vadd.f32 %v1167_v24, %v575_v57  ;;  %v573_v3 = vmul.f32 %v1162_v22, %v499_v63  ;;  %v955_v4 = vpack.c.bf16 %v627_v58, %v627_v58  ;;  %v971_v5 = vpack.c.bf16 %v643_v59, %v643_v59  ;;  %v1013_v8 = vpop.f32.mrf.mxu0  ;;  %v1029_v9 = vpop.f32.mrf.mxu1 }
  0xe5   : > { %v625_v6 = vmax.f32 %v593_v60, 0.0  ;;  %v641_v7 = vmax.f32 %v609_v61, 0.0  ;;  %v630_v10 = vmax.f32 %v598_v0, 0.0  ;;  %v596_v12 = vadd.f32 %v1167_v24, %v557_v2 }
  0xe6   : > { %v646_v11 = vmax.f32 %v614_v1, 0.0  ;;  %v612_v13 = vadd.f32 %v1167_v24, %v573_v3  ;;  %788 = vst.msk [vmem:[%s1182_s6 + $0xc] sm:$0xf] %vm784_vm3, %v955_v4  ;;  %804 = vst.msk [vmem:[%s1182_s6 + $0x4c] sm:$0xf] %vm784_vm3, %v971_v5  ;;  %v560_v16 = vmul.f32 %v1013_v8, %v1162_v22  ;;  %v576_v17 = vmul.f32 %v1029_v9, %v1162_v22  ;;  %v438_v18 = vpop.f32.mrf.mxu0  ;;  %v502_v19 = vpop.f32.mrf.mxu1 }
  0xe7   : > { %v953_v14 = vpack.c.bf16 %v625_v6, %v625_v6  ;;  %v969_v15 = vpack.c.bf16 %v641_v7, %v641_v7  ;;  %v958_v20 = vpack.c.bf16 %v630_v10, %v630_v10  ;;  %v628_v23 = vmax.f32 %v596_v12, 0.0 }
  0xe8   : > { %v974_v21 = vpack.c.bf16 %v646_v11, %v646_v11  ;;  %v644_v25 = vmax.f32 %v612_v13, 0.0  ;;  %v599_v26 = vadd.f32 %v1167_v24, %v560_v16  ;;  %v615_v27 = vadd.f32 %v1167_v24, %v576_v17  ;;  %v1016_v30 = vpop.f32.mrf.mxu0  ;;  %v1032_v31 = vpop.f32.mrf.mxu1 }
  0xe9   : > { %786 = vst.msk [vmem:[%s1182_s6 + $0x4] sm:$0xf] %vm784_vm3, %v953_v14  ;;  %802 = vst.msk [vmem:[%s1182_s6 + $0x44] sm:$0xf] %vm784_vm3, %v969_v15  ;;  %v558_v28 = vmul.f32 %v1162_v22, %v438_v18  ;;  %v574_v29 = vmul.f32 %v1162_v22, %v502_v19  ;;  %v956_v32 = vpack.c.bf16 %v628_v23, %v628_v23 }
  0xea   : > { %791 = vst.msk [vmem:[%s1182_s6 + $0x18] sm:$0xf] %vm784_vm3, %v958_v20  ;;  %807 = vst.msk [vmem:[%s1182_s6 + $0x58] sm:$0xf] %vm784_vm3, %v974_v21  ;;  %v972_v33 = vpack.c.bf16 %v644_v25, %v644_v25  ;;  %v563_v34 = vmul.f32 %v1016_v30, %v1162_v22  ;;  %v579_v35 = vmul.f32 %v1032_v31, %v1162_v22  ;;  %v631_v36 = vmax.f32 %v599_v26, 0.0  ;;  %v451_v40 = vpop.f32.mrf.mxu0  ;;  %v515_v41 = vpop.f32.mrf.mxu1 }
  0xeb   : > { %v647_v37 = vmax.f32 %v615_v27, 0.0  ;;  %v597_v38 = vadd.f32 %v1167_v24, %v558_v28  ;;  %v613_v39 = vadd.f32 %v1167_v24, %v574_v29  ;;  %789 = vst.msk [vmem:[%s1182_s6 + $0x10] sm:$0xf] %vm784_vm3, %v956_v32  ;;  %v561_v44 = vmul.f32 %v1162_v22, %v451_v40 }
  0xec   : > { %805 = vst.msk [vmem:[%s1182_s6 + $0x50] sm:$0xf] %vm784_vm3, %v972_v33  ;;  %v602_v42 = vadd.f32 %v1167_v24, %v563_v34  ;;  %v618_v43 = vadd.f32 %v1167_v24, %v579_v35  ;;  %v577_v45 = vmul.f32 %v1162_v22, %v515_v41  ;;  %v959_v46 = vpack.c.bf16 %v631_v36, %v631_v36  ;;  %v1017_v50 = vpop.f32.mrf.mxu0  ;;  %v1033_v51 = vpop.f32.mrf.mxu1 }
  0xed   : > { %v975_v47 = vpack.c.bf16 %v647_v37, %v647_v37  ;;  %v629_v48 = vmax.f32 %v597_v38, 0.0  ;;  %v645_v49 = vmax.f32 %v613_v39, 0.0  ;;  %v600_v54 = vadd.f32 %v1167_v24, %v561_v44 }
  0xee   : > { %v634_v52 = vmax.f32 %v602_v42, 0.0  ;;  %v650_v53 = vmax.f32 %v618_v43, 0.0  ;;  %v616_v55 = vadd.f32 %v1167_v24, %v577_v45  ;;  %792 = vst.msk [vmem:[%s1182_s6 + $0x1c] sm:$0xf] %vm784_vm3, %v959_v46  ;;  %v564_v58 = vmul.f32 %v1017_v50, %v1162_v22  ;;  %v454_v60 = vpop.f32.mrf.mxu0  ;;  %v518_v61 = vpop.f32.mrf.mxu1 }
  0xef   : > { %808 = vst.msk [vmem:[%s1182_s6 + $0x5c] sm:$0xf] %vm784_vm3, %v975_v47  ;;  %v957_v56 = vpack.c.bf16 %v629_v48, %v629_v48  ;;  %v973_v57 = vpack.c.bf16 %v645_v49, %v645_v49  ;;  %v580_v59 = vmul.f32 %v1033_v51, %v1162_v22  ;;  %v632_v0 = vmax.f32 %v600_v54, 0.0 }
  0xf0   : > { %v962_v62 = vpack.c.bf16 %v634_v52, %v634_v52  ;;  %v978_v63 = vpack.c.bf16 %v650_v53, %v650_v53  ;;  %v648_v1 = vmax.f32 %v616_v55, 0.0  ;;  %v603_v2 = vadd.f32 %v1167_v24, %v564_v58  ;;  %v1020_v6 = vpop.f32.mrf.mxu0  ;;  %v1036_v7 = vpop.f32.mrf.mxu1 }
  0xf1   : > { %790 = vst.msk [vmem:[%s1182_s6 + $0x14] sm:$0xf] %vm784_vm3, %v957_v56  ;;  %806 = vst.msk [vmem:[%s1182_s6 + $0x54] sm:$0xf] %vm784_vm3, %v973_v57  ;;  %v619_v3 = vadd.f32 %v1167_v24, %v580_v59  ;;  %v562_v4 = vmul.f32 %v1162_v22, %v454_v60  ;;  %v578_v5 = vmul.f32 %v1162_v22, %v518_v61 }
  0xf2   : > { %795 = vst.msk [vmem:[%s1182_s6 + $0x28] sm:$0xf] %vm784_vm3, %v962_v62  ;;  %811 = vst.msk [vmem:[%s1182_s6 + $0x68] sm:$0xf] %vm784_vm3, %v978_v63  ;;  %v960_v8 = vpack.c.bf16 %v632_v0, %v632_v0  ;;  %v976_v9 = vpack.c.bf16 %v648_v1, %v648_v1  ;;  %v567_v10 = vmul.f32 %v1020_v6, %v1162_v22  ;;  %v635_v12 = vmax.f32 %v603_v2, 0.0  ;;  %v467_v16 = vpop.f32.mrf.mxu0  ;;  %v531_v17 = vpop.f32.mrf.mxu1 }
  0xf3   : > { %v583_v11 = vmul.f32 %v1036_v7, %v1162_v22  ;;  %v651_v13 = vmax.f32 %v619_v3, 0.0  ;;  %v601_v14 = vadd.f32 %v1167_v24, %v562_v4  ;;  %v617_v15 = vadd.f32 %v1167_v24, %v578_v5 }
  0xf4   : > { %793 = vst.msk [vmem:[%s1182_s6 + $0x20] sm:$0xf] %vm784_vm3, %v960_v8  ;;  %809 = vst.msk [vmem:[%s1182_s6 + $0x60] sm:$0xf] %vm784_vm3, %v976_v9  ;;  %v606_v18 = vadd.f32 %v1167_v24, %v567_v10  ;;  %v565_v20 = vmul.f32 %v1162_v22, %v467_v16  ;;  %v581_v21 = vmul.f32 %v1162_v22, %v531_v17  ;;  %v1021_v28 = vpop.f32.mrf.mxu0  ;;  %v1037_v29 = vpop.f32.mrf.mxu1 }
  0xf5   : > { %v622_v19 = vadd.f32 %v1167_v24, %v583_v11  ;;  %v963_v23 = vpack.c.bf16 %v635_v12, %v635_v12  ;;  %v979_v25 = vpack.c.bf16 %v651_v13, %v651_v13  ;;  %v633_v26 = vmax.f32 %v601_v14, 0.0 }
  0xf6   : > { %v649_v27 = vmax.f32 %v617_v15, 0.0  ;;  %v638_v30 = vmax.f32 %v606_v18, 0.0  ;;  %v604_v32 = vadd.f32 %v1167_v24, %v565_v20  ;;  %v620_v33 = vadd.f32 %v1167_v24, %v581_v21  ;;  %v470_v38 = vpop.f32.mrf.mxu0  ;;  %v534_v39 = vpop.f32.mrf.mxu1 }
  0xf7   : > { %v654_v31 = vmax.f32 %v622_v19, 0.0  ;;  %796 = vst.msk [vmem:[%s1182_s6 + $0x2c] sm:$0xf] %vm784_vm3, %v963_v23  ;;  %812 = vst.msk [vmem:[%s1182_s6 + $0x6c] sm:$0xf] %vm784_vm3, %v979_v25  ;;  %v961_v34 = vpack.c.bf16 %v633_v26, %v633_v26  ;;  %v568_v36 = vmul.f32 %v1021_v28, %v1162_v22  ;;  %v584_v37 = vmul.f32 %v1037_v29, %v1162_v22 }
  0xf8   : > { %v977_v35 = vpack.c.bf16 %v649_v27, %v649_v27  ;;  %v966_v40 = vpack.c.bf16 %v638_v30, %v638_v30  ;;  %v636_v42 = vmax.f32 %v604_v32, 0.0  ;;  %v652_v43 = vmax.f32 %v620_v33, 0.0 }
  0xf9   : > { %v982_v41 = vpack.c.bf16 %v654_v31, %v654_v31  ;;  %794 = vst.msk [vmem:[%s1182_s6 + $0x24] sm:$0xf] %vm784_vm3, %v961_v34  ;;  %v607_v44 = vadd.f32 %v1167_v24, %v568_v36  ;;  %v623_v45 = vadd.f32 %v1167_v24, %v584_v37  ;;  %v566_v46 = vmul.f32 %v1162_v22, %v470_v38 }
  0xfa   : > { %810 = vst.msk [vmem:[%s1182_s6 + $0x64] sm:$0xf] %vm784_vm3, %v977_v35  ;;  %v582_v47 = vmul.f32 %v1162_v22, %v534_v39  ;;  %799 = vst.msk [vmem:[%s1182_s6 + $0x38] sm:$0xf] %vm784_vm3, %v966_v40  ;;  %v964_v48 = vpack.c.bf16 %v636_v42, %v636_v42  ;;  %v980_v49 = vpack.c.bf16 %v652_v43, %v652_v43 }
  0xfb   : > { %815 = vst.msk [vmem:[%s1182_s6 + $0x78] sm:$0xf] %vm784_vm3, %v982_v41  ;;  %v639_v50 = vmax.f32 %v607_v44, 0.0  ;;  %v655_v51 = vmax.f32 %v623_v45, 0.0  ;;  %v605_v52 = vadd.f32 %v1167_v24, %v566_v46 }
  0xfc   : > { %v621_v53 = vadd.f32 %v1167_v24, %v582_v47  ;;  %797 = vst.msk [vmem:[%s1182_s6 + $0x30] sm:$0xf] %vm784_vm3, %v964_v48  ;;  %813 = vst.msk [vmem:[%s1182_s6 + $0x70] sm:$0xf] %vm784_vm3, %v980_v49 }
  0xfd   : > { %v967_v22 = vpack.c.bf16 %v639_v50, %v639_v50  ;;  %v983_v54 = vpack.c.bf16 %v655_v51, %v655_v51  ;;  %v637_v55 = vmax.f32 %v605_v52, 0.0 }
  0xfe   : > { %v653_v56 = vmax.f32 %v621_v53, 0.0 }
  0xff   : > { %800 = vst.msk [vmem:[%s1182_s6 + $0x3c] sm:$0xf] %vm784_vm3, %v967_v22  ;;  %816 = vst.msk [vmem:[%s1182_s6 + $0x7c] sm:$0xf] %vm784_vm3, %v983_v54  ;;  %v965_v57 = vpack.c.bf16 %v637_v55, %v637_v55 }
 0x100   : > { %v981_v58 = vpack.c.bf16 %v653_v56, %v653_v56 }
 0x101   : > { %798 = vst.msk [vmem:[%s1182_s6 + $0x34] sm:$0xf] %vm784_vm3, %v965_v57 }
 0x102   : > { %814 = vst.msk [vmem:[%s1182_s6 + $0x74] sm:$0xf] %vm784_vm3, %v981_v58 }
 0x103 PF: > { %s14_s15 = sadd.s32 1, %s1075_s15  }
 0x104   : > { %p11_p4 = scmp.ge.s32.totalorder %s14_s15, 4  }
 0x106   :  { %13 = sbr.rel (!%p11_p4) target bundleno = 1 (0x1), region = 66 }

// kernel: _lambda_.15
= control target key start
LH: loop header
LB: loop body
LE: loop exit
PB: predicated region body
PF: predicated region fallthrough
CT: control target
= control target key end

     0   :  { %s668_s15 = smov 0   ;;  %s754_s0 = inlined_call_operand.vmem [shape: bf16[128,144], index: 0, kind: input, shape index: {}]   ;;  %s755_s1 = inlined_call_operand.vmem [shape: bf16[144,16], index: 1, kind: input, shape index: {}]   ;;  %s756_s2 = inlined_call_operand.vmem [shape: f32[1,16], index: 2, kind: input, shape index: {}]   ;;  %s757_s3 = inlined_call_operand.vmem [shape: f32[1,16], index: 3, kind: input, shape index: {}]   ;;  %s758_s4 = inlined_call_operand.vmem [shape: bf16[128,16], index: 4, kind: output, shape index: {}]  }
   0x1 LB: > { %s534_s16 = sadd.s32 4294967295, %s640_s15   ;;  %p538_p0 = scmp.ge.s32.totalorder %s640_s15, 1  ;;  %s640_s15 = sphi %s668_s15, %s14_s15  }
   0x2   : > { %p164_p1 = scmp.lt.s32.totalorder %s640_s15, 3 }
   0x4   : > { %p165_p2 = pnand %p538_p0, %p164_p1 }
   0x5   : > { %s539_s19 = sshll.u32 (!%p165_p2), %s534_s16, 3 }
   0x6   : > { %168 = sbr.rel (%p165_p2) target bundleno = 262 (0x106), region = 36  ;;  %p192_p3 = scmp.lt.s32.totalorder (!%p165_p2), %s539_s19, 15 }
   0xb   : > { %v613_v0 = vld [vmem:[%s755_s1 + $0x38] sm:$0xff]   ;;  %v642_v1 = vmov 0   ;;  %v614_v2 = vld [vmem:[%s755_s1 + $0x30] sm:$0xff]   ;;  %s760_s19 = smov (!%p192_p3, %s539_s19), 15  ;;  %v615_v3 = vld [vmem:[%s755_s1 + $0x28] sm:$0xff]   ;;  %vm321_vm0 = vcmask 130048  }
   0xc   : > { %334 = vmatprep.subr.bf16.mxu0 %v642_v1  ;;  %586 = vmatprep.subr.bf16.mxu1 %v642_v1  ;;  %s577_s24 = sshll.u32 %s760_s19, 3  ;;  %v616_v4 = vld [vmem:[%s755_s1 + $0x20] sm:$0xff]   ;;  %v617_v7 = vld [vmem:[%s755_s1 + $0x18] sm:$0xff]   ;;  %v618_v8 = vld [vmem:[%s755_s1 + $0x10] sm:$0xff]   ;;  %s543_s20 = sshll.u32 %s760_s19, 2  ;;  %vm469_vm1 = vcmask 125952  }
   0xd   : > { %335 = vmatpush1.bf16.msra.mxu0 %v613_v0  ;;  %595 = vmatpush1.bf16.msra.mxu1 %v613_v0  ;;  %s691_s27 = scalar_lea.vmem %s754_s0, %s577_s24  ;;  %v619_v9 = vld [vmem:[%s755_s1 + $0x8] sm:$0xff]   ;;  %v620_v10 = vld [vmem:[%s755_s1] sm:$0xff]   ;;  %s733_s23 = scalar_lea.vmem %s758_s4, %s543_s20 }
   0xe   : > { %336 = vmatprep.subr.bf16.mxu0 %v642_v1  ;;  %587 = vmatprep.subr.bf16.mxu1 %v642_v1  ;;  %v624_v5 = vld [vmem:[%s691_s27 + $0x4] ss:$8 sps:$4 sm:$0xff]   ;;  %v622_v12 = vld [vmem:[%s691_s27] ss:$8 sps:$4 sm:$0xff]   ;;  %v628_v14 = vld [vmem:[%s691_s27 + $0x14] ss:$8 sps:$4 sm:$0xff]  }
   0xf   : > { %v627_v6 = vld [vmem:[%s691_s27 + $0x24] ss:$8 sps:$4 sm:$0xff]   ;;  %561 = vmatprep.mubr.msk.bf16.mxu0 %vm321_vm0, %v624_v5  ;;  %v625_v13 = vld [vmem:[%s691_s27 + $0x20] ss:$8 sps:$4 sm:$0xff]   ;;  %v630_v15 = vld [vmem:[%s691_s27 + $0x34] ss:$8 sps:$4 sm:$0xff]  }
  0x10   : > { %563 = vmatprep.mubr.msk.bf16.mxu1 %vm321_vm0, %v627_v6  ;;  %v621_v11 = vld [vmem:[%s755_s1 + $0x40] sm:$0xff]   ;;  %v632_v16 = vld [vmem:[%s691_s27 + $0x10] ss:$8 sps:$4 sm:$0xff]  }
  0x11   : > { %337 = vmatpush1.bf16.msra.mxu0 %v614_v2  ;;  %596 = vmatpush1.bf16.msra.mxu1 %v614_v2  ;;  %v633_v17 = vld [vmem:[%s691_s27 + $0x30] ss:$8 sps:$4 sm:$0xff]   ;;  %v565_v18 = vld [vmem:[%s756_s2] ss:$0 sm:$0xff] }
  0x12   : > { %338 = vmatprep.subr.bf16.mxu0 %v642_v1  ;;  %588 = vmatprep.subr.bf16.mxu1 %v642_v1  ;;  %v566_v20 = vld [vmem:[%s757_s3] ss:$0 sm:$0xff] }
  0x15   : > { %339 = vmatpush1.bf16.msra.mxu0 %v615_v3  ;;  %597 = vmatpush1.bf16.msra.mxu1 %v615_v3 }
  0x16   : > { %340 = vmatprep.subr.bf16.mxu0 %v642_v1  ;;  %589 = vmatprep.subr.bf16.mxu1 %v642_v1 }
  0x19   : > { %341 = vmatpush1.bf16.msra.mxu0 %v616_v4  ;;  %598 = vmatpush1.bf16.msra.mxu1 %v616_v4 }
  0x1a   : > { %342 = vmatprep.subr.bf16.mxu0 %v642_v1  ;;  %590 = vmatprep.subr.bf16.mxu1 %v642_v1 }
  0x1d   : > { %343 = vmatpush1.bf16.msra.mxu0 %v617_v7  ;;  %599 = vmatpush1.bf16.msra.mxu1 %v617_v7 }
  0x1e   : > { %344 = vmatprep.subr.bf16.mxu0 %v642_v1  ;;  %591 = vmatprep.subr.bf16.mxu1 %v642_v1 }
  0x21   : > { %345 = vmatpush1.bf16.msra.mxu0 %v618_v8  ;;  %600 = vmatpush1.bf16.msra.mxu1 %v618_v8 }
  0x22   : > { %346 = vmatprep.subr.bf16.mxu0 %v642_v1  ;;  %592 = vmatprep.subr.bf16.mxu1 %v642_v1 }
  0x25   : > { %347 = vmatpush1.bf16.msra.mxu0 %v619_v9  ;;  %601 = vmatpush1.bf16.msra.mxu1 %v619_v9 }
  0x26   : > { %348 = vmatprep.subr.bf16.mxu0 %v642_v1  ;;  %593 = vmatprep.subr.bf16.mxu1 %v642_v1 }
  0x29   : > { %349 = vmatpush1.bf16.msra.mxu0 %v620_v10  ;;  %602 = vmatpush1.bf16.msra.mxu1 %v620_v10 }
  0x2a   : > { %364 = vmatprep.subr.bf16.mxu0 %v642_v1  ;;  %594 = vmatprep.subr.bf16.mxu1 %v642_v1 }
  0x2d   : > { %365 = vmatpush2.bf16.msra.mxu0 %v621_v11  ;;  %603 = vmatpush2.bf16.msra.mxu1 %v621_v11 }
  0x30   : > { %367 = vmatmul.mubr.bf16.vlgmr.msra.gmra.mxu0 %v622_v12  ;;  %383 = vmatmul.mubr.bf16.vlgmr.msra.gmra.mxu1 %v625_v13 }
  0x31   : > { %562 = vmatprep.mubr.msk.bf16.mxu0 %vm321_vm0, %v628_v14  ;;  %564 = vmatprep.mubr.msk.bf16.mxu1 %vm321_vm0, %v630_v15 }
  0x38   : > { %375 = vmatmul.mubr.bf16.gmra.mxu0 %v632_v16  ;;  %391 = vmatmul.mubr.bf16.gmra.mxu1 %v633_v17 }
  0xf0   : > { %v368_v19 = vpop.f32.mrf.mxu0  ;;  %v384_v21 = vpop.f32.mrf.mxu1 }
  0xf1   : > { %v406_v22 = vmul.f32 %v565_v18, %v368_v19  ;;  %v410_v23 = vmul.f32 %v565_v18, %v384_v21 }
  0xf2   : > { %v370_v24 = vpop.f32.mrf.mxu0  ;;  %v386_v25 = vpop.f32.mrf.mxu1 }
  0xf3   : > { %v421_v26 = vadd.f32 %v566_v20, %v406_v22  ;;  %v425_v27 = vadd.f32 %v566_v20, %v410_v23 }
  0xf4   : > { %v371_v28 = vpop.f32.mrf.mxu0  ;;  %v387_v29 = vpop.f32.mrf.mxu1 }
  0xf5   : > { %v429_v30 = vmax.f32 %v421_v26, 0.0  ;;  %v433_v31 = vmax.f32 %v425_v27, 0.0  ;;  %v407_v32 = vmul.f32 %v565_v18, %v371_v28  ;;  %v411_v33 = vmul.f32 %v565_v18, %v387_v29 }
  0xf6   : > { %v373_v34 = vpop.f32.mrf.mxu0  ;;  %v389_v35 = vpop.f32.mrf.mxu1 }
  0xf7   : > { %v578_v36 = vpack.c.bf16 %v429_v30, %v429_v30  ;;  %v582_v37 = vpack.c.bf16 %v433_v31, %v433_v31  ;;  %v422_v38 = vadd.f32 %v566_v20, %v407_v32  ;;  %v426_v39 = vadd.f32 %v566_v20, %v411_v33 }
  0xf8   : > { %v376_v40 = vpop.f32.mrf.mxu0  ;;  %v392_v41 = vpop.f32.mrf.mxu1 }
  0xf9   : > { %470 = vst.msk [vmem:[%s733_s23] sm:$0xf] %vm469_vm1, %v578_v36  ;;  %474 = vst.msk [vmem:[%s733_s23 + $0x10] sm:$0xf] %vm469_vm1, %v582_v37  ;;  %v430_v42 = vmax.f32 %v422_v38, 0.0  ;;  %v434_v43 = vmax.f32 %v426_v39, 0.0  ;;  %v408_v44 = vmul.f32 %v565_v18, %v376_v40  ;;  %v412_v45 = vmul.f32 %v565_v18, %v392_v41 }
  0xfa   : > { %v378_v46 = vpop.f32.mrf.mxu0  ;;  %v394_v47 = vpop.f32.mrf.mxu1 }
  0xfb   : > { %v579_v48 = vpack.c.bf16 %v430_v42, %v430_v42  ;;  %v583_v49 = vpack.c.bf16 %v434_v43, %v434_v43  ;;  %v423_v50 = vadd.f32 %v566_v20, %v408_v44  ;;  %v427_v51 = vadd.f32 %v566_v20, %v412_v45 }
  0xfc   : > { %v379_v52 = vpop.f32.mrf.mxu0  ;;  %v395_v53 = vpop.f32.mrf.mxu1 }
  0xfd   : > { %471 = vst.msk [vmem:[%s733_s23 + $0x4] sm:$0xf] %vm469_vm1, %v579_v48  ;;  %475 = vst.msk [vmem:[%s733_s23 + $0x14] sm:$0xf] %vm469_vm1, %v583_v49  ;;  %v431_v54 = vmax.f32 %v423_v50, 0.0  ;;  %v435_v55 = vmax.f32 %v427_v51, 0.0  ;;  %v409_v56 = vmul.f32 %v565_v18, %v379_v52  ;;  %v413_v57 = vmul.f32 %v565_v18, %v395_v53 }
  0xfe   : > { %v381_v58 = vpop.f32.mrf.mxu0  ;;  %v397_v59 = vpop.f32.mrf.mxu1 }
  0xff   : > { %v580_v60 = vpack.c.bf16 %v431_v54, %v431_v54  ;;  %v584_v61 = vpack.c.bf16 %v435_v55, %v435_v55  ;;  %v424_v62 = vadd.f32 %v566_v20, %v409_v56  ;;  %v428_v63 = vadd.f32 %v566_v20, %v413_v57 }
 0x101   : > { %472 = vst.msk [vmem:[%s733_s23 + $0x8] sm:$0xf] %vm469_vm1, %v580_v60  ;;  %476 = vst.msk [vmem:[%s733_s23 + $0x18] sm:$0xf] %vm469_vm1, %v584_v61  ;;  %v432_v0 = vmax.f32 %v424_v62, 0.0  ;;  %v436_v1 = vmax.f32 %v428_v63, 0.0 }
 0x103   : > { %v581_v2 = vpack.c.bf16 %v432_v0, %v432_v0  ;;  %v585_v3 = vpack.c.bf16 %v436_v1, %v436_v1 }
 0x105   : > { %473 = vst.msk [vmem:[%s733_s23 + $0xc] sm:$0xf] %vm469_vm1, %v581_v2  ;;  %477 = vst.msk [vmem:[%s733_s23 + $0x1c] sm:$0xf] %vm469_vm1, %v585_v3 }
 0x106 PF: > { %s14_s15 = sadd.s32 1, %s640_s15  }
 0x107   : > { %p11_p4 = scmp.ge.s32.totalorder %s14_s15, 4  }
 0x109   :  { %13 = sbr.rel (!%p11_p4) target bundleno = 1 (0x1), region = 66 }

// kernel: _lambda_.19
= control target key start
LH: loop header
LB: loop body
LE: loop exit
PB: predicated region body
PF: predicated region fallthrough
CT: control target
= control target key end

     0   :  { %s422_s15 = smov 0   ;;  %s448_s0 = inlined_call_operand.vmem [shape: bf16[32,16], index: 0, kind: input, shape index: {}]   ;;  %s449_s1 = inlined_call_operand.vmem [shape: bf16[16,32], index: 1, kind: input, shape index: {}]   ;;  %s450_s2 = inlined_call_operand.vmem [shape: f32[1,32], index: 2, kind: input, shape index: {}]   ;;  %s451_s3 = inlined_call_operand.vmem [shape: f32[1,32], index: 3, kind: input, shape index: {}]   ;;  %s452_s4 = inlined_call_operand.vmem [shape: bf16[32,32], index: 4, kind: output, shape index: {}]  }
   0x1 LB: > { %s347_s16 = sadd.s32 4294967295, %s393_s15   ;;  %p351_p0 = scmp.ge.s32.totalorder %s393_s15, 1  ;;  %s393_s15 = sphi %s422_s15, %s14_s15  }
   0x2   : > { %p163_p1 = scmp.lt.s32.totalorder %s393_s15, 3 }
   0x4   : > { %p164_p2 = pnand %p351_p0, %p163_p1 }
   0x5   : > { %s352_s19 = sshll.u32 (!%p164_p2), %s347_s16, 1 }
   0x6   : > { %167 = sbr.rel (%p164_p2) target bundleno = 220 (0xdc), region = 36  ;;  %p190_p3 = scmp.lt.s32.totalorder (!%p164_p2), %s352_s19, 3 }
   0xb   : > { %v385_v0 = vld [vmem:[%s449_s1] sm:$0xff]   ;;  %v395_v1 = vmov 0.0   ;;  %vm396_vm0 = vmmov 0   ;;  %s454_s19 = smov (!%p190_p3, %s352_s19), 3  ;;  %vm217_vm1 = vcmask 130048   ;;  %vm288_vm2 = vcmask 257024  }
   0xc   : > { %369 = vmatprep.subr.bf16.mxu0 %v395_v1  ;;  %371 = vmatprep.mubr.msk.bf16.mxu0 %vm396_vm0, %v395_v1  ;;  %s353_s20 = sshll.u32 %s454_s19, 2  ;;  %v359_v3 = vld [vmem:[%s450_s2] ss:$0 sm:$0xff] }
   0xd   : > { %370 = vmatpush3.bf16.msra.mxu0 %v385_v0  ;;  %s193_s23 = scalar_lea.vmem %s448_s0, %s353_s20  ;;  %v360_v5 = vld [vmem:[%s451_s3] ss:$0 sm:$0xff]  ;;  %s199_s30 = scalar_lea.vmem %s452_s4, %s353_s20 }
   0xe   : > { %v386_v2 = vld [vmem:[%s193_s23] sm:$0xff]  }
  0x10   : > { %372 = vmatmul.mubr.msk.bf16.vlgmr.msra.gmra.mxu0 %vm217_vm1, %v386_v2 }
  0xd0   : > { %v255_v4 = vpop.f32.mrf.mxu0 }
  0xd1   : > { %v269_v6 = vmul.f32 %v359_v3, %v255_v4 }
  0xd2   : > { %v373_v7 = vpop.f32.mrf.mxu0 }
  0xd3   : > { %v278_v8 = vadd.f32 %v360_v5, %v269_v6 }
  0xd4   : > { %v258_v9 = vpop.f32.mrf.mxu0 }
  0xd5   : > { %v365_v10 = vpack.c.bf16 %v278_v8, %v278_v8  ;;  %v270_v11 = vmul.f32 %v359_v3, %v258_v9 }
  0xd6   : > { %v374_v12 = vpop.f32.mrf.mxu0 }
  0xd7   : > { %289 = vst.msk [vmem:[%s199_s30] sm:$0xf] %vm288_vm2, %v365_v10  ;;  %v279_v13 = vadd.f32 %v360_v5, %v270_v11 }
  0xd9   : > { %v366_v14 = vpack.c.bf16 %v279_v13, %v279_v13 }
  0xdb   : > { %290 = vst.msk [vmem:[%s199_s30 + $0x4] sm:$0xf] %vm288_vm2, %v366_v14 }
  0xdc PF: > { %s14_s15 = sadd.s32 1, %s393_s15  }
  0xdd   : > { %p11_p4 = scmp.ge.s32.totalorder %s14_s15, 4  }
  0xdf   :  { %13 = sbr.rel (!%p11_p4) target bundleno = 1 (0x1), region = 66 }

// kernel: _lambda_.17
= control target key start
LH: loop header
LB: loop body
LE: loop exit
PB: predicated region body
PF: predicated region fallthrough
CT: control target
= control target key end

     0   :  { %s779_s18 = smov 0   ;;  %s872_s0 = inlined_call_operand.vmem [shape: bf16[128,144], index: 0, kind: input, shape index: {}]   ;;  %s873_s1 = inlined_call_operand.vmem [shape: bf16[144,16], index: 1, kind: input, shape index: {}]   ;;  %s874_s2 = inlined_call_operand.vmem [shape: f32[1,16], index: 2, kind: input, shape index: {}]   ;;  %s875_s3 = inlined_call_operand.vmem [shape: f32[1,16], index: 3, kind: input, shape index: {}]   ;;  %s876_s4 = inlined_call_operand.vmem [shape: bf16[128,16], index: 4, kind: input, shape index: {}]   ;;  %s877_s5 = inlined_call_operand.vmem [shape: bf16[128,16], index: 5, kind: output, shape index: {}]  }
   0x1 LB: > { %s619_s19 = sadd.s32 4294967295, %s746_s18   ;;  %p623_p0 = scmp.ge.s32.totalorder %s746_s18, 1  ;;  %s746_s18 = sphi %s779_s18, %s15_s18  }
   0x2   : > { %p200_p1 = scmp.lt.s32.totalorder %s746_s18, 3 }
   0x4   : > { %p201_p2 = pnand %p623_p0, %p200_p1 }
   0x5   : > { %s624_s22 = sshll.u32 (!%p201_p2), %s619_s19, 3 }
   0x6   : > { %204 = sbr.rel (%p201_p2) target bundleno = 264 (0x108), region = 40  ;;  %p235_p3 = scmp.lt.s32.totalorder (!%p201_p2), %s624_s22, 15 }
   0xb   : > { %v719_v0 = vld [vmem:[%s873_s1 + $0x38] sm:$0xff]   ;;  %v748_v1 = vmov 0   ;;  %v720_v2 = vld [vmem:[%s873_s1 + $0x30] sm:$0xff]   ;;  %s879_s22 = smov (!%p235_p3, %s624_s22), 15  ;;  %v721_v3 = vld [vmem:[%s873_s1 + $0x28] sm:$0xff]   ;;  %vm370_vm0 = vcmask 130048  }
   0xc   : > { %383 = vmatprep.subr.bf16.mxu0 %v748_v1  ;;  %692 = vmatprep.subr.bf16.mxu1 %v748_v1  ;;  %s664_s27 = sshll.u32 %s879_s22, 3  ;;  %v722_v4 = vld [vmem:[%s873_s1 + $0x20] sm:$0xff]   ;;  %v723_v7 = vld [vmem:[%s873_s1 + $0x18] sm:$0xff]   ;;  %v724_v8 = vld [vmem:[%s873_s1 + $0x10] sm:$0xff]   ;;  %s628_s19 = sshll.u32 %s879_s22, 2  ;;  %vm542_vm1 = vcmask 125952  }
   0xd   : > { %384 = vmatpush1.bf16.msra.mxu0 %v719_v0  ;;  %701 = vmatpush1.bf16.msra.mxu1 %v719_v0  ;;  %s802_s30 = scalar_lea.vmem %s872_s0, %s664_s27  ;;  %v725_v9 = vld [vmem:[%s873_s1 + $0x8] sm:$0xff]   ;;  %v726_v10 = vld [vmem:[%s873_s1] sm:$0xff]   ;;  %s245_s23 = scalar_lea.vmem %s876_s4, %s628_s19 }
   0xe   : > { %385 = vmatprep.subr.bf16.mxu0 %v748_v1  ;;  %693 = vmatprep.subr.bf16.mxu1 %v748_v1  ;;  %v730_v5 = vld [vmem:[%s802_s30 + $0x4] ss:$8 sps:$4 sm:$0xff]   ;;  %v728_v12 = vld [vmem:[%s802_s30] ss:$8 sps:$4 sm:$0xff]   ;;  %v734_v14 = vld [vmem:[%s802_s30 + $0x14] ss:$8 sps:$4 sm:$0xff]  }
   0xf   : > { %v733_v6 = vld [vmem:[%s802_s30 + $0x24] ss:$8 sps:$4 sm:$0xff]   ;;  %648 = vmatprep.mubr.msk.bf16.mxu0 %vm370_vm0, %v730_v5  ;;  %v731_v13 = vld [vmem:[%s802_s30 + $0x20] ss:$8 sps:$4 sm:$0xff]   ;;  %v736_v15 = vld [vmem:[%s802_s30 + $0x34] ss:$8 sps:$4 sm:$0xff]  }
  0x10   : > { %650 = vmatprep.mubr.msk.bf16.mxu1 %vm370_vm0, %v733_v6  ;;  %v727_v11 = vld [vmem:[%s873_s1 + $0x40] sm:$0xff]   ;;  %v738_v16 = vld [vmem:[%s802_s30 + $0x10] ss:$8 sps:$4 sm:$0xff]   ;;  %v689_v46 = vld [vmem:[%s245_s23 + $0x8] sm:$0xff]  }
  0x11   : > { %386 = vmatpush1.bf16.msra.mxu0 %v720_v2  ;;  %702 = vmatpush1.bf16.msra.mxu1 %v720_v2  ;;  %v739_v17 = vld [vmem:[%s802_s30 + $0x30] ss:$8 sps:$4 sm:$0xff]   ;;  %v652_v18 = vld [vmem:[%s874_s2] ss:$0 sm:$0xff]  ;;  %s851_s30 = scalar_lea.vmem %s877_s5, %s628_s19  ;;  %v679_v55 = vunpack.c.l.bf16 %v689_v46 }
  0x12   : > { %387 = vmatprep.subr.bf16.mxu0 %v748_v1  ;;  %694 = vmatprep.subr.bf16.mxu1 %v748_v1  ;;  %v674_v19 = vld [vmem:[%s245_s23] sm:$0xff]   ;;  %v690_v20 = vld [vmem:[%s245_s23 + $0x10] sm:$0xff]   ;;  %v691_v47 = vld [vmem:[%s245_s23 + $0x18] sm:$0xff]  }
  0x13   : > { %v653_v22 = vld [vmem:[%s875_s3] ss:$0 sm:$0xff]  ;;  %v675_v25 = vunpack.c.l.bf16 %v674_v19  ;;  %v683_v27 = vunpack.c.l.bf16 %v690_v20  ;;  %v676_v33 = vunpack.c.h.bf16 %v674_v19  ;;  %v684_v35 = vunpack.c.h.bf16 %v690_v20 }
  0x14   : > { %v687_v57 = vunpack.c.l.bf16 %v691_v47 }
  0x15   : > { %388 = vmatpush1.bf16.msra.mxu0 %v721_v3  ;;  %703 = vmatpush1.bf16.msra.mxu1 %v721_v3  ;;  %v688_v3 = vunpack.c.h.bf16 %v691_v47 }
  0x16   : > { %389 = vmatprep.subr.bf16.mxu0 %v748_v1  ;;  %695 = vmatprep.subr.bf16.mxu1 %v748_v1 }
  0x19   : > { %390 = vmatpush1.bf16.msra.mxu0 %v722_v4  ;;  %704 = vmatpush1.bf16.msra.mxu1 %v722_v4 }
  0x1a   : > { %391 = vmatprep.subr.bf16.mxu0 %v748_v1  ;;  %696 = vmatprep.subr.bf16.mxu1 %v748_v1 }
  0x1d   : > { %392 = vmatpush1.bf16.msra.mxu0 %v723_v7  ;;  %705 = vmatpush1.bf16.msra.mxu1 %v723_v7 }
  0x1e   : > { %393 = vmatprep.subr.bf16.mxu0 %v748_v1  ;;  %697 = vmatprep.subr.bf16.mxu1 %v748_v1 }
  0x21   : > { %394 = vmatpush1.bf16.msra.mxu0 %v724_v8  ;;  %706 = vmatpush1.bf16.msra.mxu1 %v724_v8 }
  0x22   : > { %395 = vmatprep.subr.bf16.mxu0 %v748_v1  ;;  %698 = vmatprep.subr.bf16.mxu1 %v748_v1 }
  0x25   : > { %396 = vmatpush1.bf16.msra.mxu0 %v725_v9  ;;  %707 = vmatpush1.bf16.msra.mxu1 %v725_v9 }
  0x26   : > { %397 = vmatprep.subr.bf16.mxu0 %v748_v1  ;;  %699 = vmatprep.subr.bf16.mxu1 %v748_v1 }
  0x29   : > { %398 = vmatpush1.bf16.msra.mxu0 %v726_v10  ;;  %708 = vmatpush1.bf16.msra.mxu1 %v726_v10 }
  0x2a   : > { %413 = vmatprep.subr.bf16.mxu0 %v748_v1  ;;  %700 = vmatprep.subr.bf16.mxu1 %v748_v1  ;;  %v680_v1 = vunpack.c.h.bf16 %v689_v46 }
  0x2d   : > { %414 = vmatpush2.bf16.msra.mxu0 %v727_v11  ;;  %709 = vmatpush2.bf16.msra.mxu1 %v727_v11 }
  0x30   : > { %416 = vmatmul.mubr.bf16.vlgmr.msra.gmra.mxu0 %v728_v12  ;;  %432 = vmatmul.mubr.bf16.vlgmr.msra.gmra.mxu1 %v731_v13 }
  0x31   : > { %649 = vmatprep.mubr.msk.bf16.mxu0 %vm370_vm0, %v734_v14  ;;  %651 = vmatprep.mubr.msk.bf16.mxu1 %vm370_vm0, %v736_v15 }
  0x38   : > { %424 = vmatmul.mubr.bf16.gmra.mxu0 %v738_v16  ;;  %440 = vmatmul.mubr.bf16.gmra.mxu1 %v739_v17 }
  0xf0   : > { %v417_v21 = vpop.f32.mrf.mxu0  ;;  %v433_v23 = vpop.f32.mrf.mxu1 }
  0xf1   : > { %v455_v24 = vmul.f32 %v652_v18, %v417_v21  ;;  %v459_v26 = vmul.f32 %v652_v18, %v433_v23 }
  0xf2   : > { %v419_v28 = vpop.f32.mrf.mxu0  ;;  %v435_v29 = vpop.f32.mrf.mxu1 }
  0xf3   : > { %v470_v30 = vadd.f32 %v653_v22, %v455_v24  ;;  %v474_v31 = vadd.f32 %v653_v22, %v459_v26 }
  0xf4   : > { %v420_v32 = vpop.f32.mrf.mxu0  ;;  %v436_v34 = vpop.f32.mrf.mxu1 }
  0xf5   : > { %v494_v36 = vadd.f32 %v675_v25, %v470_v30  ;;  %v498_v37 = vadd.f32 %v683_v27, %v474_v31  ;;  %v456_v38 = vmul.f32 %v652_v18, %v420_v32  ;;  %v460_v39 = vmul.f32 %v652_v18, %v436_v34 }
  0xf6   : > { %v422_v40 = vpop.f32.mrf.mxu0  ;;  %v438_v41 = vpop.f32.mrf.mxu1 }
  0xf7   : > { %v502_v42 = vmax.f32 %v494_v36, 0.0  ;;  %v506_v43 = vmax.f32 %v498_v37, 0.0  ;;  %v471_v44 = vadd.f32 %v653_v22, %v456_v38  ;;  %v475_v45 = vadd.f32 %v653_v22, %v460_v39 }
  0xf8   : > { %v425_v48 = vpop.f32.mrf.mxu0  ;;  %v441_v49 = vpop.f32.mrf.mxu1 }
  0xf9   : > { %v665_v50 = vpack.c.bf16 %v502_v42, %v502_v42  ;;  %v669_v51 = vpack.c.bf16 %v506_v43, %v506_v43  ;;  %v495_v52 = vadd.f32 %v676_v33, %v471_v44  ;;  %v499_v53 = vadd.f32 %v684_v35, %v475_v45 }
  0xfa   : > { %v457_v54 = vmul.f32 %v652_v18, %v425_v48  ;;  %v461_v56 = vmul.f32 %v652_v18, %v441_v49  ;;  %v427_v58 = vpop.f32.mrf.mxu0  ;;  %v443_v59 = vpop.f32.mrf.mxu1 }
  0xfb   : > { %543 = vst.msk [vmem:[%s851_s30] sm:$0xf] %vm542_vm1, %v665_v50  ;;  %547 = vst.msk [vmem:[%s851_s30 + $0x10] sm:$0xf] %vm542_vm1, %v669_v51  ;;  %v503_v60 = vmax.f32 %v495_v52, 0.0  ;;  %v507_v61 = vmax.f32 %v499_v53, 0.0 }
  0xfc   : > { %v472_v62 = vadd.f32 %v653_v22, %v457_v54  ;;  %v476_v63 = vadd.f32 %v653_v22, %v461_v56  ;;  %v428_v0 = vpop.f32.mrf.mxu0  ;;  %v444_v2 = vpop.f32.mrf.mxu1 }
  0xfd   : > { %v666_v4 = vpack.c.bf16 %v503_v60, %v503_v60  ;;  %v670_v5 = vpack.c.bf16 %v507_v61, %v507_v61  ;;  %v458_v6 = vmul.f32 %v652_v18, %v428_v0  ;;  %v462_v7 = vmul.f32 %v652_v18, %v444_v2 }
  0xfe   : > { %v496_v8 = vadd.f32 %v679_v55, %v472_v62  ;;  %v500_v9 = vadd.f32 %v687_v57, %v476_v63  ;;  %v430_v10 = vpop.f32.mrf.mxu0  ;;  %v446_v11 = vpop.f32.mrf.mxu1 }
  0xff   : > { %544 = vst.msk [vmem:[%s851_s30 + $0x4] sm:$0xf] %vm542_vm1, %v666_v4  ;;  %548 = vst.msk [vmem:[%s851_s30 + $0x14] sm:$0xf] %vm542_vm1, %v670_v5  ;;  %v473_v12 = vadd.f32 %v653_v22, %v458_v6  ;;  %v477_v13 = vadd.f32 %v653_v22, %v462_v7 }
 0x100   : > { %v504_v14 = vmax.f32 %v496_v8, 0.0  ;;  %v508_v15 = vmax.f32 %v500_v9, 0.0 }
 0x101   : > { %v497_v16 = vadd.f32 %v680_v1, %v473_v12  ;;  %v501_v17 = vadd.f32 %v688_v3, %v477_v13 }
 0x102   : > { %v667_v19 = vpack.c.bf16 %v504_v14, %v504_v14  ;;  %v671_v18 = vpack.c.bf16 %v508_v15, %v508_v15 }
 0x103   : > { %v505_v20 = vmax.f32 %v497_v16, 0.0  ;;  %v509_v21 = vmax.f32 %v501_v17, 0.0 }
 0x104   : > { %545 = vst.msk [vmem:[%s851_s30 + $0x8] sm:$0xf] %vm542_vm1, %v667_v19  ;;  %549 = vst.msk [vmem:[%s851_s30 + $0x18] sm:$0xf] %vm542_vm1, %v671_v18 }
 0x105   : > { %v668_v23 = vpack.c.bf16 %v505_v20, %v505_v20  ;;  %v672_v24 = vpack.c.bf16 %v509_v21, %v509_v21 }
 0x107   : > { %546 = vst.msk [vmem:[%s851_s30 + $0xc] sm:$0xf] %vm542_vm1, %v668_v23  ;;  %550 = vst.msk [vmem:[%s851_s30 + $0x1c] sm:$0xf] %vm542_vm1, %v672_v24 }
 0x108 PF: > { %s15_s18 = sadd.s32 1, %s746_s18  }
 0x109   : > { %p12_p4 = scmp.ge.s32.totalorder %s15_s18, 4  }
 0x10b   :  { %14 = sbr.rel (!%p12_p4) target bundleno = 1 (0x1), region = 73 }

// kernel: _lambda_.18
= control target key start
LH: loop header
LB: loop body
LE: loop exit
PB: predicated region body
PF: predicated region fallthrough
CT: control target
= control target key end

     0   :  { %s506_s15 = smov 0   ;;  %s560_s0 = inlined_call_operand.vmem [shape: bf16[32,144], index: 0, kind: input, shape index: {}]   ;;  %s561_s1 = inlined_call_operand.vmem [shape: bf16[144,32], index: 1, kind: input, shape index: {}]   ;;  %s562_s2 = inlined_call_operand.vmem [shape: f32[1,32], index: 2, kind: input, shape index: {}]   ;;  %s563_s3 = inlined_call_operand.vmem [shape: f32[1,32], index: 3, kind: input, shape index: {}]   ;;  %s564_s4 = inlined_call_operand.vmem [shape: bf16[32,32], index: 4, kind: output, shape index: {}]  }
   0x1 LB: > { %s420_s16 = sadd.s32 4294967295, %s478_s15   ;;  %p424_p0 = scmp.ge.s32.totalorder %s478_s15, 1  ;;  %s478_s15 = sphi %s506_s15, %s14_s15  }
   0x2   : > { %p164_p1 = scmp.lt.s32.totalorder %s478_s15, 3 }
   0x4   : > { %p165_p2 = pnand %p424_p0, %p164_p1 }
   0x5   : > { %s425_s19 = sshll.u32 (!%p165_p2), %s420_s16, 1 }
   0x6   : > { %168 = sbr.rel (%p165_p2) target bundleno = 254 (0xfe), region = 36  ;;  %p192_p3 = scmp.lt.s32.totalorder (!%p165_p2), %s425_s19, 3 }
   0xb   : > { %v460_v0 = vld [vmem:[%s561_s1 + $0x38] sm:$0xff]   ;;  %v480_v1 = vmov 0   ;;  %v461_v2 = vld [vmem:[%s561_s1 + $0x30] sm:$0xff]   ;;  %s566_s19 = smov (!%p192_p3, %s425_s19), 3  ;;  %v462_v3 = vld [vmem:[%s561_s1 + $0x28] sm:$0xff]   ;;  %vm288_vm0 = vcmask 130048  }
   0xc   : > { %292 = vmatprep.subr.bf16.mxu0 %v480_v1  ;;  %s448_s24 = sshll.u32 %s566_s19, 3  ;;  %v463_v4 = vld [vmem:[%s561_s1 + $0x20] sm:$0xff]   ;;  %v464_v6 = vld [vmem:[%s561_s1 + $0x18] sm:$0xff]   ;;  %v465_v7 = vld [vmem:[%s561_s1 + $0x10] sm:$0xff]   ;;  %s429_s20 = sshll.u32 %s566_s19, 2  ;;  %vm361_vm1 = vcmask 257024  }
   0xd   : > { %293 = vmatpush1.bf16.msra.mxu0 %v460_v0  ;;  %s196_s27 = scalar_lea.vmem %s560_s0, %s448_s24  ;;  %v466_v8 = vld [vmem:[%s561_s1 + $0x8] sm:$0xff]   ;;  %v467_v9 = vld [vmem:[%s561_s1] sm:$0xff]   ;;  %s202_s23 = scalar_lea.vmem %s564_s4, %s429_s20 }
   0xe   : > { %294 = vmatprep.subr.bf16.mxu0 %v480_v1  ;;  %v471_v5 = vld [vmem:[%s196_s27 + $0x4] ss:$8 sps:$4 sm:$0xff]   ;;  %v469_v11 = vld [vmem:[%s196_s27] ss:$8 sps:$4 sm:$0xff]  }
   0xf   : > { %441 = vmatprep.mubr.msk.bf16.mxu0 %vm288_vm0, %v471_v5  ;;  %v468_v10 = vld [vmem:[%s561_s1 + $0x40] sm:$0xff]  }
  0x10   : > { %v442_v12 = vld [vmem:[%s562_s2] ss:$0 sm:$0xff] }
  0x11   : > { %295 = vmatpush1.bf16.msra.mxu0 %v461_v2  ;;  %v443_v14 = vld [vmem:[%s563_s3] ss:$0 sm:$0xff] }
  0x12   : > { %296 = vmatprep.subr.bf16.mxu0 %v480_v1 }
  0x15   : > { %297 = vmatpush1.bf16.msra.mxu0 %v462_v3 }
  0x16   : > { %298 = vmatprep.subr.bf16.mxu0 %v480_v1 }
  0x19   : > { %299 = vmatpush1.bf16.msra.mxu0 %v463_v4 }
  0x1a   : > { %300 = vmatprep.subr.bf16.mxu0 %v480_v1 }
  0x1d   : > { %301 = vmatpush1.bf16.msra.mxu0 %v464_v6 }
  0x1e   : > { %302 = vmatprep.subr.bf16.mxu0 %v480_v1 }
  0x21   : > { %303 = vmatpush1.bf16.msra.mxu0 %v465_v7 }
  0x22   : > { %304 = vmatprep.subr.bf16.mxu0 %v480_v1 }
  0x25   : > { %305 = vmatpush1.bf16.msra.mxu0 %v466_v8 }
  0x26   : > { %306 = vmatprep.subr.bf16.mxu0 %v480_v1 }
  0x29   : > { %307 = vmatpush1.bf16.msra.mxu0 %v467_v9 }
  0x2a   : > { %322 = vmatprep.subr.bf16.mxu0 %v480_v1 }
  0x2d   : > { %323 = vmatpush2.bf16.msra.mxu0 %v468_v10 }
  0x30   : > { %325 = vmatmul.mubr.bf16.vlgmr.msra.gmra.mxu0 %v469_v11 }
  0xf0   : > { %v326_v13 = vpop.f32.mrf.mxu0 }
  0xf1   : > { %v340_v15 = vmul.f32 %v442_v12, %v326_v13 }
  0xf2   : > { %v328_v16 = vpop.f32.mrf.mxu0 }
  0xf3   : > { %v349_v17 = vadd.f32 %v443_v14, %v340_v15 }
  0xf4   : > { %v329_v18 = vpop.f32.mrf.mxu0 }
  0xf5   : > { %v351_v19 = vmax.f32 %v349_v17, 0.0  ;;  %v341_v20 = vmul.f32 %v442_v12, %v329_v18 }
  0xf6   : > { %v331_v21 = vpop.f32.mrf.mxu0 }
  0xf7   : > { %v449_v22 = vpack.c.bf16 %v351_v19, %v351_v19  ;;  %v350_v23 = vadd.f32 %v443_v14, %v341_v20 }
  0xf9   : > { %362 = vst.msk [vmem:[%s202_s23] sm:$0xf] %vm361_vm1, %v449_v22  ;;  %v352_v24 = vmax.f32 %v350_v23, 0.0 }
  0xfb   : > { %v450_v25 = vpack.c.bf16 %v352_v24, %v352_v24 }
  0xfd   : > { %363 = vst.msk [vmem:[%s202_s23 + $0x4] sm:$0xf] %vm361_vm1, %v450_v25 }
  0xfe PF: > { %s14_s15 = sadd.s32 1, %s478_s15  }
  0xff   : > { %p11_p4 = scmp.ge.s32.totalorder %s14_s15, 4  }
 0x101   :  { %13 = sbr.rel (!%p11_p4) target bundleno = 1 (0x1), region = 66 }

// kernel: _lambda_.22
= control target key start
LH: loop header
LB: loop body
LE: loop exit
PB: predicated region body
PF: predicated region fallthrough
CT: control target
= control target key end

     0   :  { %v122_v0 = vmov 0.0   ;;  %vm123_vm0 = vmmov 0   ;;  %vm35_vm1 = vcmask 261120   ;;  %vm96_vm2 = vcmask 519168   ;;  %s167_s1 = inlined_call_operand.vmem [shape: bf16[32,64], index: 1, kind: input, shape index: {}]   ;;  %s168_s0 = inlined_call_operand.vmem [shape: bf16[8,32], index: 0, kind: input, shape index: {}]   ;;  %s169_s2 = inlined_call_operand.vmem [shape: f32[1,64], index: 2, kind: input, shape index: {}]   ;;  %s170_s3 = inlined_call_operand.vmem [shape: f32[1,64], index: 3, kind: input, shape index: {}]   ;;  %s171_s4 = inlined_call_operand.vmem [shape: bf16[8,64], index: 4, kind: output, shape index: {}]  }
   0x1   :  { %110 = vmatprep.subr.bf16.mxu0 %v122_v0  ;;  %v120_v1 = vld [vmem:[%s167_s1 + $0x8] sm:$0xff]   ;;  %114 = vmatprep.mubr.msk.bf16.mxu0 %vm123_vm0, %v122_v0  ;;  %v121_v2 = vld [vmem:[%s167_s1] sm:$0xff]  }
   0x2   :  { %111 = vmatpush3.bf16.msra.mxu0 %v120_v1  ;;  %v18_v3 = vld [vmem:[%s168_s0] sm:$0xf] }
   0x3   :  { %112 = vmatprep.subr.bf16.mxu0 %v122_v0  ;;  %v105_v4 = vld [vmem:[%s169_s2] ss:$0 sm:$0xff] }
   0x4   :  { %v106_v6 = vld [vmem:[%s170_s3] ss:$0 sm:$0xff] }
   0x6   :  { %113 = vmatpush3.bf16.msra.mxu0 %v121_v2 }
   0x9   :  { %115 = vmatmul.mubr.msk.bf16.vlgmr.msra.gmra.mxu0 %vm35_vm1, %v18_v3 }
  0xc9   :  { %v73_v5 = vpop.f32.mrf.mxu0 }
  0xca   :  { %v86_v7 = vmul.f32 %v105_v4, %v73_v5 }
  0xcb   :  { %v116_v8 = vpop.f32.mrf.mxu0 }
  0xcc   :  { %v94_v9 = vadd.f32 %v106_v6, %v86_v7 }
  0xcd   :  { %v76_v10 = vpop.f32.mrf.mxu0 }
  0xce   :  { %v95_v11 = vpack.c.bf16 %v94_v9, %v94_v9 }
  0xcf   :  { %v117_v12 = vpop.f32.mrf.mxu0 }
  0xd0   :  { %97 = vst.msk [vmem:[%s171_s4] sm:$0xf] %vm96_vm2, %v95_v11 }

// kernel: _lambda_.20
= control target key start
LH: loop header
LB: loop body
LE: loop exit
PB: predicated region body
PF: predicated region fallthrough
CT: control target
= control target key end

     0   :  { %s759_s18 = smov 0   ;;  %s843_s0 = inlined_call_operand.vmem [shape: bf16[32,288], index: 0, kind: input, shape index: {}]   ;;  %s844_s1 = inlined_call_operand.vmem [shape: bf16[288,32], index: 1, kind: input, shape index: {}]   ;;  %s845_s2 = inlined_call_operand.vmem [shape: f32[1,32], index: 2, kind: input, shape index: {}]   ;;  %s846_s3 = inlined_call_operand.vmem [shape: f32[1,32], index: 3, kind: input, shape index: {}]   ;;  %s847_s4 = inlined_call_operand.vmem [shape: bf16[32,32], index: 4, kind: input, shape index: {}]   ;;  %s848_s5 = inlined_call_operand.vmem [shape: bf16[32,32], index: 5, kind: output, shape index: {}]  }
   0x1 LB: > { %s608_s19 = sadd.s32 4294967295, %s725_s18   ;;  %p612_p0 = scmp.ge.s32.totalorder %s725_s18, 1  ;;  %s725_s18 = sphi %s759_s18, %s15_s18  }
   0x2   : > { %p200_p1 = scmp.lt.s32.totalorder %s725_s18, 3 }
   0x4   : > { %p201_p2 = pnand %p612_p0, %p200_p1 }
   0x5   : > { %s613_s26 = sshll.u32 (!%p201_p2), %s608_s19, 1 }
   0x6   : > { %204 = sbr.rel (%p201_p2) target bundleno = 258 (0x102), region = 40  ;;  %p235_p3 = scmp.lt.s32.totalorder (!%p201_p2), %s613_s26, 3 }
   0xb   : > { %v697_v0 = vld [vmem:[%s844_s1 + $0x78] sm:$0xff]   ;;  %v727_v2 = vmov 0.0   ;;  %v699_v3 = vld [vmem:[%s844_s1 + $0x70] sm:$0xff]   ;;  %vm728_vm0 = vmmov 0   ;;  %v701_v5 = vld [vmem:[%s844_s1 + $0x68] sm:$0xff]   ;;  %s850_s26 = smov (!%p235_p3, %s613_s26), 3 }
   0xc   : > { %v698_v1 = vld [vmem:[%s844_s1 + $0x38] sm:$0xff]   ;;  %678 = vmatprep.subr.bf16.mxu1 %v727_v2  ;;  %653 = vmatprep.subr.bf16.mxu0 %v697_v0  ;;  %v700_v4 = vld [vmem:[%s844_s1 + $0x30] sm:$0xff]   ;;  %v702_v6 = vld [vmem:[%s844_s1 + $0x28] sm:$0xff]   ;;  %s686_s14 = smul.u32 12, %s850_s26  ;;  %vm417_vm1 = vcmask 261120   ;;  %s616_s13 = sshll.u32 %s850_s26, 2 }
   0xd   : > { %682 = vmatprep.mubr.msk.bf16.mxu1 %vm728_vm0, %v727_v2  ;;  %654 = vmatpush3.bf16.msra.mxu0 %v698_v1  ;;  %v703_v7 = vld [vmem:[%s844_s1 + $0x60] sm:$0xff]   ;;  %v705_v9 = vld [vmem:[%s844_s1 + $0x58] sm:$0xff]   ;;  %v709_v10 = vld [vmem:[%s844_s1 + $0x88] sm:$0xff]   ;;  %s245_s16 = scalar_lea.vmem %s847_s4, %s616_s13  ;;  %s251_s23 = scalar_lea.vmem %s848_s5, %s616_s13  ;;  %vm537_vm2 = vcmask 257024  }
   0xe   : > { %655 = vmatprep.subr.bf16.mxu0 %v699_v3  ;;  %v704_v8 = vld [vmem:[%s844_s1 + $0x20] sm:$0xff]   ;;  %v706_v11 = vld [vmem:[%s844_s1 + $0x18] sm:$0xff]   ;;  %679 = vmatpush3.bf16.msra.mxu1 %v709_v10  ;;  %s239_s24 = scalar_lea.vmem %s843_s0, %s686_s14  ;;  %v707_v13 = vld [vmem:[%s844_s1 + $0x50] sm:$0xff]  }
   0xf   : > { %680 = vmatprep.subr.bf16.mxu1 %v727_v2  ;;  %v712_v12 = vld [vmem:[%s844_s1 + $0x80] sm:$0xff]   ;;  %v715_v14 = vld [vmem:[%s239_s24 + $0x8] ss:$12 sps:$4 sm:$0xff]  }
  0x10   : > { %v708_v15 = vld [vmem:[%s844_s1 + $0x10] sm:$0xff]   ;;  %v710_v16 = vld [vmem:[%s844_s1 + $0x48] sm:$0xff]   ;;  %v713_v19 = vld [vmem:[%s844_s1 + $0x40] sm:$0xff]  }
  0x11   : > { %656 = vmatpush3.bf16.msra.mxu0 %v700_v4  ;;  %v718_v17 = vld [vmem:[%s239_s24 + $0x4] ss:$12 sps:$4 sm:$0xff]   ;;  %v711_v18 = vld [vmem:[%s844_s1 + $0x8] sm:$0xff]   ;;  %v641_v29 = vld [vmem:[%s845_s2] ss:$0 sm:$0xff] }
  0x12   : > { %657 = vmatprep.subr.bf16.mxu0 %v701_v5  ;;  %681 = vmatpush3.bf16.msra.mxu1 %v712_v12  ;;  %v714_v20 = vld [vmem:[%s844_s1] sm:$0xff]  }
  0x13   : > { %453 = vmatprep.mubr.bf16.mxu0 %v718_v17  ;;  %v716_v21 = vld [vmem:[%s239_s24] ss:$12 sps:$4 sm:$0xff]  }
  0x14   : > { %v650_v30 = vld [vmem:[%s245_s16] sm:$0xff]  }
  0x15   : > { %658 = vmatpush3.bf16.msra.mxu0 %v702_v6  ;;  %683 = vmatmul.mubr.msk.bf16.vlgmr.msra.gmra.mxu1 %vm417_vm1, %v715_v14  ;;  %v642_v33 = vld [vmem:[%s846_s3] ss:$0 sm:$0xff]  ;;  %v651_v36 = vunpack.c.l.bf16 %v650_v30  ;;  %v652_v42 = vunpack.c.h.bf16 %v650_v30 }
  0x16   : > { %659 = vmatprep.subr.bf16.mxu0 %v703_v7 }
  0x19   : > { %660 = vmatpush3.bf16.msra.mxu0 %v704_v8 }
  0x1a   : > { %661 = vmatprep.subr.bf16.mxu0 %v705_v9 }
  0x1d   : > { %662 = vmatpush3.bf16.msra.mxu0 %v706_v11 }
  0x1e   : > { %663 = vmatprep.subr.bf16.mxu0 %v707_v13 }
  0x21   : > { %664 = vmatpush3.bf16.msra.mxu0 %v708_v15 }
  0x22   : > { %665 = vmatprep.subr.bf16.mxu0 %v710_v16 }
  0x25   : > { %666 = vmatpush3.bf16.msra.mxu0 %v711_v18 }
  0x26   : > { %667 = vmatprep.subr.bf16.mxu0 %v713_v19 }
  0x29   : > { %668 = vmatpush3.bf16.msra.mxu0 %v714_v20 }
  0x2c   : > { %454 = vmatmul.mubr.bf16.vlgmr.msra.gmra.mxu0 %v716_v21 }
  0xd5   : > { %v496_v22 = vpop.f32.mrf.mxu1 }
  0xd7   : > { %v684_v23 = vpop.f32.mrf.mxu1 }
  0xd9   : > { %v499_v24 = vpop.f32.mrf.mxu1 }
  0xdb   : > { %v685_v25 = vpop.f32.mrf.mxu1 }
  0xec   : > { %v669_v26 = vpop.f32.mrf.mxu0 }
  0xee   : > { %v670_v27 = vpop.f32.mrf.mxu0 }
  0xef   : > { %v671_v28 = vadd.f32 %v670_v27, %v669_v26 }
  0xf0   : > { %v672_v31 = vpop.f32.mrf.mxu0 }
  0xf1   : > { %v497_v32 = vadd.f32 %v671_v28, %v496_v22 }
  0xf2   : > { %v673_v34 = vpop.f32.mrf.mxu0 }
  0xf3   : > { %v510_v35 = vmul.f32 %v641_v29, %v497_v32  ;;  %v674_v37 = vadd.f32 %v673_v34, %v672_v31 }
  0xf5   : > { %v519_v38 = vadd.f32 %v642_v33, %v510_v35  ;;  %v500_v39 = vadd.f32 %v674_v37, %v499_v24 }
  0xf7   : > { %v525_v40 = vadd.f32 %v651_v36, %v519_v38  ;;  %v511_v41 = vmul.f32 %v641_v29, %v500_v39 }
  0xf9   : > { %v527_v43 = vmax.f32 %v525_v40, 0.0  ;;  %v520_v44 = vadd.f32 %v642_v33, %v511_v41 }
  0xfb   : > { %v647_v45 = vpack.c.bf16 %v527_v43, %v527_v43  ;;  %v526_v46 = vadd.f32 %v652_v42, %v520_v44 }
  0xfd   : > { %538 = vst.msk [vmem:[%s251_s23] sm:$0xf] %vm537_vm2, %v647_v45  ;;  %v528_v47 = vmax.f32 %v526_v46, 0.0 }
  0xff   : > { %v648_v48 = vpack.c.bf16 %v528_v47, %v528_v47 }
 0x101   : > { %539 = vst.msk [vmem:[%s251_s23 + $0x4] sm:$0xf] %vm537_vm2, %v648_v48 }
 0x102 PF: > { %s15_s18 = sadd.s32 1, %s725_s18  }
 0x103   : > { %p12_p4 = scmp.ge.s32.totalorder %s15_s18, 4  }
 0x105   :  { %14 = sbr.rel (!%p12_p4) target bundleno = 1 (0x1), region = 73 }

// kernel: _lambda_.25
= control target key start
LH: loop header
LB: loop body
LE: loop exit
PB: predicated region body
PF: predicated region fallthrough
CT: control target
= control target key end

     0   :  { %v147_v0 = vmov 0.0   ;;  %vm148_vm0 = vmmov 0   ;;  %vm51_vm1 = vcmask 523264   ;;  %s198_s1 = inlined_call_operand.vmem [shape: bf16[64,128], index: 1, kind: input, shape index: {}]   ;;  %s199_s0 = inlined_call_operand.vmem [shape: bf16[8,64], index: 0, kind: input, shape index: {}]   ;;  %s200_s2 = inlined_call_operand.vmem [shape: f32[1,128], index: 2, kind: input, shape index: {}]   ;;  %s201_s3 = inlined_call_operand.vmem [shape: f32[1,128], index: 3, kind: input, shape index: {}]   ;;  %s202_s4 = inlined_call_operand.vmem [shape: bf16[8,128], index: 4, kind: output, shape index: {}]  }
   0x1   :  { %129 = vmatprep.subr.bf16.mxu0 %v147_v0  ;;  %v143_v1 = vld [vmem:[%s198_s1 + $0x18] sm:$0xff]   ;;  %137 = vmatprep.mubr.msk.bf16.mxu0 %vm148_vm0, %v147_v0  ;;  %v144_v2 = vld [vmem:[%s198_s1 + $0x10] sm:$0xff]   ;;  %v145_v3 = vld [vmem:[%s198_s1 + $0x8] sm:$0xff]  }
   0x2   :  { %130 = vmatpush3.bf16.msra.mxu0 %v143_v1  ;;  %v146_v4 = vld [vmem:[%s198_s1] sm:$0xff]  }
   0x3   :  { %131 = vmatprep.subr.bf16.mxu0 %v147_v0  ;;  %v18_v5 = vld [vmem:[%s199_s0] sm:$0xf] }
   0x4   :  { %v122_v6 = vld [vmem:[%s200_s2] ss:$0 sm:$0xff] }
   0x5   :  { %v123_v8 = vld [vmem:[%s201_s3] ss:$0 sm:$0xff] }
   0x6   :  { %132 = vmatpush3.bf16.msra.mxu0 %v144_v2 }
   0x7   :  { %133 = vmatprep.subr.bf16.mxu0 %v147_v0 }
   0xa   :  { %134 = vmatpush3.bf16.msra.mxu0 %v145_v3 }
   0xb   :  { %135 = vmatprep.subr.bf16.mxu0 %v147_v0 }
   0xe   :  { %136 = vmatpush3.bf16.msra.mxu0 %v146_v4 }
  0x11   :  { %138 = vmatmul.mubr.msk.bf16.vlgmr.msra.gmra.mxu0 %vm51_vm1, %v18_v5 }
  0xd1   :  { %v89_v7 = vpop.f32.mrf.mxu0 }
  0xd2   :  { %v102_v9 = vmul.f32 %v122_v6, %v89_v7 }
  0xd3   :  { %v139_v10 = vpop.f32.mrf.mxu0 }
  0xd4   :  { %v110_v11 = vadd.f32 %v123_v8, %v102_v9 }
  0xd5   :  { %v92_v12 = vpop.f32.mrf.mxu0 }
  0xd6   :  { %v111_v13 = vpack.c.bf16 %v110_v11, %v110_v11 }
  0xd7   :  { %v140_v14 = vpop.f32.mrf.mxu0 }
  0xd8   :  { %112 = vst [vmem:[%s202_s4] sm:$0xf] %v111_v13 }

// kernel: _lambda_.21
= control target key start
LH: loop header
LB: loop body
LE: loop exit
PB: predicated region body
PF: predicated region fallthrough
CT: control target
= control target key end

     0   :  { %v362_v1 = vmov 0.0   ;;  %vm363_vm0 = vmmov 0   ;;  %vm174_vm1 = vcmask 261120   ;;  %vm276_vm2 = vcmask 519168   ;;  %s458_s1 = inlined_call_operand.vmem [shape: bf16[288,64], index: 1, kind: input, shape index: {}]   ;;  %s459_s0 = inlined_call_operand.vmem [shape: bf16[8,288], index: 0, kind: input, shape index: {}]   ;;  %s460_s2 = inlined_call_operand.vmem [shape: f32[1,64], index: 2, kind: input, shape index: {}]   ;;  %s461_s3 = inlined_call_operand.vmem [shape: f32[1,64], index: 3, kind: input, shape index: {}]   ;;  %s462_s4 = inlined_call_operand.vmem [shape: bf16[8,64], index: 4, kind: output, shape index: {}]  }
   0x1   :  { %v341_v0 = vld [vmem:[%s458_s1 + $0x78] sm:$0xff]   ;;  %331 = vmatprep.subr.bf16.mxu1 %v362_v1  ;;  %335 = vmatprep.mubr.msk.bf16.mxu1 %vm363_vm0, %v362_v1  ;;  %v343_v3 = vld [vmem:[%s458_s1 + $0x70] sm:$0xff]   ;;  %v345_v5 = vld [vmem:[%s458_s1 + $0x68] sm:$0xff]  }
   0x2   :  { %v342_v2 = vld [vmem:[%s458_s1 + $0x38] sm:$0xff]   ;;  %306 = vmatprep.subr.bf16.mxu0 %v341_v0  ;;  %v344_v4 = vld [vmem:[%s458_s1 + $0x30] sm:$0xff]   ;;  %v346_v6 = vld [vmem:[%s458_s1 + $0x28] sm:$0xff]  }
   0x3   :  { %307 = vmatpush3.bf16.msra.mxu0 %v342_v2  ;;  %v347_v7 = vld [vmem:[%s458_s1 + $0x60] sm:$0xff]   ;;  %v349_v9 = vld [vmem:[%s458_s1 + $0x58] sm:$0xff]   ;;  %v353_v10 = vld [vmem:[%s458_s1 + $0x88] sm:$0xff]  }
   0x4   :  { %308 = vmatprep.subr.bf16.mxu0 %v343_v3  ;;  %v348_v8 = vld [vmem:[%s458_s1 + $0x20] sm:$0xff]   ;;  %v350_v11 = vld [vmem:[%s458_s1 + $0x18] sm:$0xff]   ;;  %332 = vmatpush3.bf16.msra.mxu1 %v353_v10  ;;  %v351_v13 = vld [vmem:[%s458_s1 + $0x50] sm:$0xff]  }
   0x5   :  { %333 = vmatprep.subr.bf16.mxu1 %v362_v1  ;;  %v356_v12 = vld [vmem:[%s458_s1 + $0x80] sm:$0xff]   ;;  %v359_v14 = vld [vmem:[%s459_s0 + $0x8] ss:$0 sps:$4 sm:$0xff]   ;;  %v352_v16 = vld [vmem:[%s458_s1 + $0x10] sm:$0xff]  }
   0x6   :  { %v18_v15 = vld [vmem:[%s459_s0] sm:$0xff]  ;;  %v354_v18 = vld [vmem:[%s458_s1 + $0x48] sm:$0xff]  }
   0x7   :  { %309 = vmatpush3.bf16.msra.mxu0 %v344_v4  ;;  %v283_v17 = vcombine.high %v18_v15, %v18_v15  ;;  %v355_v19 = vld [vmem:[%s458_s1 + $0x8] sm:$0xff]   ;;  %v357_v20 = vld [vmem:[%s458_s1 + $0x40] sm:$0xff]   ;;  %v282_v22 = vcombine.low %v18_v15, %v18_v15 }
   0x8   :  { %310 = vmatprep.subr.bf16.mxu0 %v345_v5  ;;  %334 = vmatpush3.bf16.msra.mxu1 %v356_v12  ;;  %v358_v21 = vld [vmem:[%s458_s1] sm:$0xff]  }
   0x9   :  { %210 = vmatprep.mubr.bf16.mxu0 %v283_v17  ;;  %v304_v30 = vld [vmem:[%s460_s2] ss:$0 sm:$0xff] }
   0xa   :  { %v305_v33 = vld [vmem:[%s461_s3] ss:$0 sm:$0xff] }
   0xb   :  { %311 = vmatpush3.bf16.msra.mxu0 %v346_v6  ;;  %336 = vmatmul.mubr.msk.bf16.vlgmr.msra.gmra.mxu1 %vm174_vm1, %v359_v14 }
   0xc   :  { %312 = vmatprep.subr.bf16.mxu0 %v347_v7 }
   0xf   :  { %313 = vmatpush3.bf16.msra.mxu0 %v348_v8 }
  0x10   :  { %314 = vmatprep.subr.bf16.mxu0 %v349_v9 }
  0x13   :  { %315 = vmatpush3.bf16.msra.mxu0 %v350_v11 }
  0x14   :  { %316 = vmatprep.subr.bf16.mxu0 %v351_v13 }
  0x17   :  { %317 = vmatpush3.bf16.msra.mxu0 %v352_v16 }
  0x18   :  { %318 = vmatprep.subr.bf16.mxu0 %v354_v18 }
  0x1b   :  { %319 = vmatpush3.bf16.msra.mxu0 %v355_v19 }
  0x1c   :  { %320 = vmatprep.subr.bf16.mxu0 %v357_v20 }
  0x1f   :  { %321 = vmatpush3.bf16.msra.mxu0 %v358_v21 }
  0x22   :  { %211 = vmatmul.mubr.bf16.vlgmr.msra.gmra.mxu0 %v282_v22 }
  0xcb   :  { %v252_v23 = vpop.f32.mrf.mxu1 }
  0xcd   :  { %v337_v24 = vpop.f32.mrf.mxu1 }
  0xcf   :  { %v255_v25 = vpop.f32.mrf.mxu1 }
  0xd1   :  { %v338_v26 = vpop.f32.mrf.mxu1 }
  0xe2   :  { %v322_v27 = vpop.f32.mrf.mxu0 }
  0xe4   :  { %v323_v28 = vpop.f32.mrf.mxu0 }
  0xe5   :  { %v324_v29 = vadd.f32 %v323_v28, %v322_v27 }
  0xe6   :  { %v325_v31 = vpop.f32.mrf.mxu0 }
  0xe7   :  { %v253_v32 = vadd.f32 %v324_v29, %v252_v23 }
  0xe8   :  { %v326_v34 = vpop.f32.mrf.mxu0 }
  0xe9   :  { %v265_v35 = vmul.f32 %v304_v30, %v253_v32 }
  0xeb   :  { %v273_v36 = vadd.f32 %v305_v33, %v265_v35 }
  0xed   :  { %v274_v37 = vmax.f32 %v273_v36, 0.0 }
  0xef   :  { %v275_v38 = vpack.c.bf16 %v274_v37, %v274_v37 }
  0xf1   :  { %277 = vst.msk [vmem:[%s462_s4] sm:$0xf] %vm276_vm2, %v275_v38 }

// kernel: _lambda_.23
= control target key start
LH: loop header
LB: loop body
LE: loop exit
PB: predicated region body
PF: predicated region fallthrough
CT: control target
= control target key end

     0   :  { %v628_v36 = vmov 0.0   ;;  %vm629_vm0 = vmmov 0   ;;  %vm329_vm1 = vcmask 523264   ;;  %vm474_vm2 = vcmask 519168   ;;  %s789_s1 = inlined_call_operand.vmem [shape: bf16[576,64], index: 1, kind: input, shape index: {}]   ;;  %s790_s0 = inlined_call_operand.vmem [shape: bf16[8,576], index: 0, kind: input, shape index: {}]   ;;  %s791_s2 = inlined_call_operand.vmem [shape: f32[1,64], index: 2, kind: input, shape index: {}]   ;;  %s792_s4 = inlined_call_operand.vmem [shape: bf16[8,64], index: 4, kind: input, shape index: {}]   ;;  %s793_s3 = inlined_call_operand.vmem [shape: f32[1,64], index: 3, kind: input, shape index: {}]   ;;  %s794_s5 = inlined_call_operand.vmem [shape: bf16[8,64], index: 5, kind: output, shape index: {}]  }
   0x1   :  { %v587_v0 = vld [vmem:[%s789_s1 + $0x78] sm:$0xff]   ;;  %v591_v4 = vld [vmem:[%s789_s1 + $0x70] sm:$0xff]   ;;  %v595_v8 = vld [vmem:[%s789_s1 + $0x68] sm:$0xff]  }
   0x2   :  { %v588_v1 = vld [vmem:[%s789_s1 + $0xf8] sm:$0xff]   ;;  %524 = vmatprep.subr.bf16.mxu0 %v587_v0  ;;  %v592_v5 = vld [vmem:[%s789_s1 + $0xf0] sm:$0xff]   ;;  %v596_v9 = vld [vmem:[%s789_s1 + $0xe8] sm:$0xff]  }
   0x3   :  { %v589_v2 = vld [vmem:[%s789_s1 + $0x38] sm:$0xff]   ;;  %546 = vmatprep.subr.bf16.mxu1 %v588_v1  ;;  %v593_v6 = vld [vmem:[%s789_s1 + $0x30] sm:$0xff]   ;;  %v597_v10 = vld [vmem:[%s789_s1 + $0x28] sm:$0xff]  }
   0x4   :  { %v590_v3 = vld [vmem:[%s789_s1 + $0xb8] sm:$0xff]   ;;  %525 = vmatpush3.bf16.msra.mxu0 %v589_v2  ;;  %v594_v7 = vld [vmem:[%s789_s1 + $0xb0] sm:$0xff]   ;;  %v598_v11 = vld [vmem:[%s789_s1 + $0xa8] sm:$0xff]  }
   0x5   :  { %547 = vmatpush3.bf16.msra.mxu1 %v590_v3  ;;  %526 = vmatprep.subr.bf16.mxu0 %v591_v4  ;;  %v599_v12 = vld [vmem:[%s789_s1 + $0x60] sm:$0xff]   ;;  %v603_v16 = vld [vmem:[%s789_s1 + $0x58] sm:$0xff]   ;;  %v607_v20 = vld [vmem:[%s789_s1 + $0x50] sm:$0xff]  }
   0x6   :  { %548 = vmatprep.subr.bf16.mxu1 %v592_v5  ;;  %v600_v13 = vld [vmem:[%s789_s1 + $0xe0] sm:$0xff]   ;;  %v604_v17 = vld [vmem:[%s789_s1 + $0xd8] sm:$0xff]   ;;  %v608_v21 = vld [vmem:[%s789_s1 + $0xd0] sm:$0xff]  }
   0x7   :  { %v601_v14 = vld [vmem:[%s789_s1 + $0x20] sm:$0xff]   ;;  %v605_v18 = vld [vmem:[%s789_s1 + $0x18] sm:$0xff]   ;;  %v609_v22 = vld [vmem:[%s789_s1 + $0x10] sm:$0xff]  }
   0x8   :  { %527 = vmatpush3.bf16.msra.mxu0 %v593_v6  ;;  %v602_v15 = vld [vmem:[%s789_s1 + $0xa0] sm:$0xff]   ;;  %v606_v19 = vld [vmem:[%s789_s1 + $0x98] sm:$0xff]   ;;  %v610_v23 = vld [vmem:[%s789_s1 + $0x90] sm:$0xff]  }
   0x9   :  { %549 = vmatpush3.bf16.msra.mxu1 %v594_v7  ;;  %528 = vmatprep.subr.bf16.mxu0 %v595_v8  ;;  %v611_v24 = vld [vmem:[%s789_s1 + $0x48] sm:$0xff]   ;;  %v615_v28 = vld [vmem:[%s789_s1 + $0x40] sm:$0xff]   ;;  %v624_v39 = vld [vmem:[%s789_s1 + $0x118] sm:$0xff]  }
   0xa   :  { %550 = vmatprep.subr.bf16.mxu1 %v596_v9  ;;  %v612_v25 = vld [vmem:[%s789_s1 + $0xc8] sm:$0xff]   ;;  %v616_v29 = vld [vmem:[%s789_s1 + $0xc0] sm:$0xff]   ;;  %v625_v40 = vld [vmem:[%s789_s1 + $0x110] sm:$0xff]  }
   0xb   :  { %v613_v26 = vld [vmem:[%s789_s1 + $0x8] sm:$0xff]   ;;  %v617_v30 = vld [vmem:[%s789_s1] sm:$0xff]   ;;  %v621_v43 = vld [vmem:[%s790_s0 + $0x10] ss:$0 sps:$4 sm:$0xff]  }
   0xc   :  { %529 = vmatpush3.bf16.msra.mxu0 %v597_v10  ;;  %v614_v27 = vld [vmem:[%s789_s1 + $0x88] sm:$0xff]   ;;  %v618_v31 = vld [vmem:[%s789_s1 + $0x80] sm:$0xff]  }
   0xd   :  { %551 = vmatpush3.bf16.msra.mxu1 %v598_v11  ;;  %530 = vmatprep.subr.bf16.mxu0 %v599_v12  ;;  %v21_v32 = vld [vmem:[%s790_s0] sm:$0xff]  ;;  %v22_v35 = vld [vmem:[%s790_s0 + $0x8] sm:$0xff] }
   0xe   :  { %552 = vmatprep.subr.bf16.mxu1 %v600_v13  ;;  %v480_v33 = vcombine.low %v21_v32, %v21_v32  ;;  %v481_v34 = vcombine.high %v21_v32, %v21_v32  ;;  %v482_v37 = vcombine.low %v22_v35, %v22_v35  ;;  %v483_v38 = vcombine.high %v22_v35, %v22_v35  ;;  %v626_v41 = vld [vmem:[%s789_s1 + $0x108] sm:$0xff]   ;;  %v627_v42 = vld [vmem:[%s789_s1 + $0x100] sm:$0xff]  }
   0xf   :  { %v522_v56 = vld [vmem:[%s791_s2] ss:$0 sm:$0xff] }
  0x10   :  { %531 = vmatpush3.bf16.msra.mxu0 %v601_v14  ;;  %365 = vmatprep.mubr.bf16.mxu0 %v481_v34  ;;  %v469_v57 = vld [vmem:[%s792_s4] sm:$0xf] }
  0x11   :  { %553 = vmatpush3.bf16.msra.mxu1 %v602_v15  ;;  %532 = vmatprep.subr.bf16.mxu0 %v603_v16  ;;  %v523_v59 = vld [vmem:[%s793_s3] ss:$0 sm:$0xff]  ;;  %v470_v62 = vunpack.c.l.bf16 %v469_v57 }
  0x12   :  { %554 = vmatprep.subr.bf16.mxu1 %v604_v17  ;;  %405 = vmatprep.mubr.bf16.mxu1 %v483_v38 }
  0x14   :  { %533 = vmatpush3.bf16.msra.mxu0 %v605_v18 }
  0x15   :  { %555 = vmatpush3.bf16.msra.mxu1 %v606_v19  ;;  %534 = vmatprep.subr.bf16.mxu0 %v607_v20 }
  0x16   :  { %556 = vmatprep.subr.bf16.mxu1 %v608_v21 }
  0x18   :  { %535 = vmatpush3.bf16.msra.mxu0 %v609_v22 }
  0x19   :  { %557 = vmatpush3.bf16.msra.mxu1 %v610_v23  ;;  %536 = vmatprep.subr.bf16.mxu0 %v611_v24 }
  0x1a   :  { %558 = vmatprep.subr.bf16.mxu1 %v612_v25 }
  0x1c   :  { %537 = vmatpush3.bf16.msra.mxu0 %v613_v26 }
  0x1d   :  { %559 = vmatpush3.bf16.msra.mxu1 %v614_v27  ;;  %538 = vmatprep.subr.bf16.mxu0 %v615_v28 }
  0x1e   :  { %560 = vmatprep.subr.bf16.mxu1 %v616_v29 }
  0x20   :  { %539 = vmatpush3.bf16.msra.mxu0 %v617_v30 }
  0x21   :  { %561 = vmatpush3.bf16.msra.mxu1 %v618_v31  ;;  %573 = vmatprep.subr.bf16.mxu0 %v628_v36 }
  0x23   :  { %366 = vmatmul.mubr.bf16.vlgmr.msra.gmra.mxu0 %v480_v33 }
  0x24   :  { %406 = vmatmul.mubr.bf16.vlgmr.msra.gmra.mxu1 %v482_v37  ;;  %574 = vmatpush3.bf16.msra.mxu0 %v624_v39 }
  0x25   :  { %575 = vmatprep.subr.bf16.mxu0 %v628_v36  ;;  %581 = vmatprep.mubr.msk.bf16.mxu0 %vm629_vm0, %v628_v36 }
  0x28   :  { %576 = vmatpush3.bf16.msra.mxu0 %v625_v40 }
  0x29   :  { %577 = vmatprep.subr.bf16.mxu0 %v628_v36 }
  0x2c   :  { %578 = vmatpush3.bf16.msra.mxu0 %v626_v41 }
  0x2d   :  { %579 = vmatprep.subr.bf16.mxu0 %v628_v36 }
  0x30   :  { %580 = vmatpush3.bf16.msra.mxu0 %v627_v42 }
  0x33   :  { %582 = vmatmul.mubr.msk.bf16.vlgmr.msra.gmra.mxu0 %vm329_vm1, %v621_v43 }
  0xe3   :  { %v540_v44 = vpop.f32.mrf.mxu0 }
  0xe4   :  { %v562_v45 = vpop.f32.mrf.mxu1 }
  0xe5   :  { %v541_v46 = vpop.f32.mrf.mxu0 }
  0xe6   :  { %v563_v47 = vpop.f32.mrf.mxu1  ;;  %v542_v52 = vadd.f32 %v541_v46, %v540_v44 }
  0xe7   :  { %v543_v48 = vpop.f32.mrf.mxu0  ;;  %v564_v53 = vadd.f32 %v563_v47, %v562_v45 }
  0xe8   :  { %v565_v49 = vpop.f32.mrf.mxu1 }
  0xe9   :  { %v544_v50 = vpop.f32.mrf.mxu0  ;;  %v408_v54 = vadd.f32 %v564_v53, %v542_v52 }
  0xea   :  { %v566_v51 = vpop.f32.mrf.mxu1 }
  0xf3   :  { %v447_v55 = vpop.f32.mrf.mxu0 }
  0xf4   :  { %v448_v58 = vadd.f32 %v447_v55, %v408_v54 }
  0xf5   :  { %v583_v60 = vpop.f32.mrf.mxu0 }
  0xf6   :  { %v460_v61 = vmul.f32 %v522_v56, %v448_v58 }
  0xf7   :  { %v450_v63 = vpop.f32.mrf.mxu0 }
  0xf8   :  { %v468_v0 = vadd.f32 %v523_v59, %v460_v61 }
  0xf9   :  { %v584_v1 = vpop.f32.mrf.mxu0 }
  0xfa   :  { %v471_v2 = vadd.f32 %v470_v62, %v468_v0 }
  0xfc   :  { %v472_v3 = vmax.f32 %v471_v2, 0.0 }
  0xfe   :  { %v473_v4 = vpack.c.bf16 %v472_v3, %v472_v3 }
 0x100   :  { %475 = vst.msk [vmem:[%s794_s5] sm:$0xf] %vm474_vm2, %v473_v4 }

// kernel: _lambda_.24
= control target key start
LH: loop header
LB: loop body
LE: loop exit
PB: predicated region body
PF: predicated region fallthrough
CT: control target
= control target key end

     0   :  { %v621_v36 = vmov 0.0   ;;  %vm622_vm0 = vmmov 0   ;;  %vm326_vm1 = vcmask 523264   ;;  %s774_s1 = inlined_call_operand.vmem [shape: bf16[576,128], index: 1, kind: input, shape index: {}]   ;;  %s775_s0 = inlined_call_operand.vmem [shape: bf16[8,576], index: 0, kind: input, shape index: {}]   ;;  %s776_s2 = inlined_call_operand.vmem [shape: f32[1,128], index: 2, kind: input, shape index: {}]   ;;  %s777_s3 = inlined_call_operand.vmem [shape: f32[1,128], index: 3, kind: input, shape index: {}]   ;;  %s778_s4 = inlined_call_operand.vmem [shape: bf16[8,128], index: 4, kind: output, shape index: {}]  }
   0x1   :  { %v580_v0 = vld [vmem:[%s774_s1 + $0x78] sm:$0xff]   ;;  %v584_v4 = vld [vmem:[%s774_s1 + $0x70] sm:$0xff]   ;;  %v588_v8 = vld [vmem:[%s774_s1 + $0x68] sm:$0xff]  }
   0x2   :  { %v581_v1 = vld [vmem:[%s774_s1 + $0xf8] sm:$0xff]   ;;  %517 = vmatprep.subr.bf16.mxu0 %v580_v0  ;;  %v585_v5 = vld [vmem:[%s774_s1 + $0xf0] sm:$0xff]   ;;  %v589_v9 = vld [vmem:[%s774_s1 + $0xe8] sm:$0xff]  }
   0x3   :  { %v582_v2 = vld [vmem:[%s774_s1 + $0x38] sm:$0xff]   ;;  %539 = vmatprep.subr.bf16.mxu1 %v581_v1  ;;  %v586_v6 = vld [vmem:[%s774_s1 + $0x30] sm:$0xff]   ;;  %v590_v10 = vld [vmem:[%s774_s1 + $0x28] sm:$0xff]  }
   0x4   :  { %v583_v3 = vld [vmem:[%s774_s1 + $0xb8] sm:$0xff]   ;;  %518 = vmatpush3.bf16.msra.mxu0 %v582_v2  ;;  %v587_v7 = vld [vmem:[%s774_s1 + $0xb0] sm:$0xff]   ;;  %v591_v11 = vld [vmem:[%s774_s1 + $0xa8] sm:$0xff]  }
   0x5   :  { %540 = vmatpush3.bf16.msra.mxu1 %v583_v3  ;;  %519 = vmatprep.subr.bf16.mxu0 %v584_v4  ;;  %v592_v12 = vld [vmem:[%s774_s1 + $0x60] sm:$0xff]   ;;  %v596_v16 = vld [vmem:[%s774_s1 + $0x58] sm:$0xff]   ;;  %v600_v20 = vld [vmem:[%s774_s1 + $0x50] sm:$0xff]  }
   0x6   :  { %541 = vmatprep.subr.bf16.mxu1 %v585_v5  ;;  %v593_v13 = vld [vmem:[%s774_s1 + $0xe0] sm:$0xff]   ;;  %v597_v17 = vld [vmem:[%s774_s1 + $0xd8] sm:$0xff]   ;;  %v601_v21 = vld [vmem:[%s774_s1 + $0xd0] sm:$0xff]  }
   0x7   :  { %v594_v14 = vld [vmem:[%s774_s1 + $0x20] sm:$0xff]   ;;  %v598_v18 = vld [vmem:[%s774_s1 + $0x18] sm:$0xff]   ;;  %v602_v22 = vld [vmem:[%s774_s1 + $0x10] sm:$0xff]  }
   0x8   :  { %520 = vmatpush3.bf16.msra.mxu0 %v586_v6  ;;  %v595_v15 = vld [vmem:[%s774_s1 + $0xa0] sm:$0xff]   ;;  %v599_v19 = vld [vmem:[%s774_s1 + $0x98] sm:$0xff]   ;;  %v603_v23 = vld [vmem:[%s774_s1 + $0x90] sm:$0xff]  }
   0x9   :  { %542 = vmatpush3.bf16.msra.mxu1 %v587_v7  ;;  %521 = vmatprep.subr.bf16.mxu0 %v588_v8  ;;  %v604_v24 = vld [vmem:[%s774_s1 + $0x48] sm:$0xff]   ;;  %v608_v28 = vld [vmem:[%s774_s1 + $0x40] sm:$0xff]   ;;  %v617_v39 = vld [vmem:[%s774_s1 + $0x118] sm:$0xff]  }
   0xa   :  { %543 = vmatprep.subr.bf16.mxu1 %v589_v9  ;;  %v605_v25 = vld [vmem:[%s774_s1 + $0xc8] sm:$0xff]   ;;  %v609_v29 = vld [vmem:[%s774_s1 + $0xc0] sm:$0xff]   ;;  %v618_v40 = vld [vmem:[%s774_s1 + $0x110] sm:$0xff]  }
   0xb   :  { %v606_v26 = vld [vmem:[%s774_s1 + $0x8] sm:$0xff]   ;;  %v610_v30 = vld [vmem:[%s774_s1] sm:$0xff]   ;;  %v614_v43 = vld [vmem:[%s775_s0 + $0x10] ss:$0 sps:$4 sm:$0xff]  }
   0xc   :  { %522 = vmatpush3.bf16.msra.mxu0 %v590_v10  ;;  %v607_v27 = vld [vmem:[%s774_s1 + $0x88] sm:$0xff]   ;;  %v611_v31 = vld [vmem:[%s774_s1 + $0x80] sm:$0xff]  }
   0xd   :  { %544 = vmatpush3.bf16.msra.mxu1 %v591_v11  ;;  %523 = vmatprep.subr.bf16.mxu0 %v592_v12  ;;  %v18_v32 = vld [vmem:[%s775_s0] sm:$0xff]  ;;  %v19_v35 = vld [vmem:[%s775_s0 + $0x8] sm:$0xff] }
   0xe   :  { %545 = vmatprep.subr.bf16.mxu1 %v593_v13  ;;  %v473_v33 = vcombine.low %v18_v32, %v18_v32  ;;  %v474_v34 = vcombine.high %v18_v32, %v18_v32  ;;  %v475_v37 = vcombine.low %v19_v35, %v19_v35  ;;  %v476_v38 = vcombine.high %v19_v35, %v19_v35  ;;  %v619_v41 = vld [vmem:[%s774_s1 + $0x108] sm:$0xff]   ;;  %v620_v42 = vld [vmem:[%s774_s1 + $0x100] sm:$0xff]  }
   0xf   :  { %v515_v56 = vld [vmem:[%s776_s2] ss:$0 sm:$0xff] }
  0x10   :  { %524 = vmatpush3.bf16.msra.mxu0 %v594_v14  ;;  %362 = vmatprep.mubr.bf16.mxu0 %v474_v34  ;;  %v516_v58 = vld [vmem:[%s777_s3] ss:$0 sm:$0xff] }
  0x11   :  { %546 = vmatpush3.bf16.msra.mxu1 %v595_v15  ;;  %525 = vmatprep.subr.bf16.mxu0 %v596_v16 }
  0x12   :  { %547 = vmatprep.subr.bf16.mxu1 %v597_v17  ;;  %402 = vmatprep.mubr.bf16.mxu1 %v476_v38 }
  0x14   :  { %526 = vmatpush3.bf16.msra.mxu0 %v598_v18 }
  0x15   :  { %548 = vmatpush3.bf16.msra.mxu1 %v599_v19  ;;  %527 = vmatprep.subr.bf16.mxu0 %v600_v20 }
  0x16   :  { %549 = vmatprep.subr.bf16.mxu1 %v601_v21 }
  0x18   :  { %528 = vmatpush3.bf16.msra.mxu0 %v602_v22 }
  0x19   :  { %550 = vmatpush3.bf16.msra.mxu1 %v603_v23  ;;  %529 = vmatprep.subr.bf16.mxu0 %v604_v24 }
  0x1a   :  { %551 = vmatprep.subr.bf16.mxu1 %v605_v25 }
  0x1c   :  { %530 = vmatpush3.bf16.msra.mxu0 %v606_v26 }
  0x1d   :  { %552 = vmatpush3.bf16.msra.mxu1 %v607_v27  ;;  %531 = vmatprep.subr.bf16.mxu0 %v608_v28 }
  0x1e   :  { %553 = vmatprep.subr.bf16.mxu1 %v609_v29 }
  0x20   :  { %532 = vmatpush3.bf16.msra.mxu0 %v610_v30 }
  0x21   :  { %554 = vmatpush3.bf16.msra.mxu1 %v611_v31  ;;  %566 = vmatprep.subr.bf16.mxu0 %v621_v36 }
  0x23   :  { %363 = vmatmul.mubr.bf16.vlgmr.msra.gmra.mxu0 %v473_v33 }
  0x24   :  { %403 = vmatmul.mubr.bf16.vlgmr.msra.gmra.mxu1 %v475_v37  ;;  %567 = vmatpush3.bf16.msra.mxu0 %v617_v39 }
  0x25   :  { %568 = vmatprep.subr.bf16.mxu0 %v621_v36  ;;  %574 = vmatprep.mubr.msk.bf16.mxu0 %vm622_vm0, %v621_v36 }
  0x28   :  { %569 = vmatpush3.bf16.msra.mxu0 %v618_v40 }
  0x29   :  { %570 = vmatprep.subr.bf16.mxu0 %v621_v36 }
  0x2c   :  { %571 = vmatpush3.bf16.msra.mxu0 %v619_v41 }
  0x2d   :  { %572 = vmatprep.subr.bf16.mxu0 %v621_v36 }
  0x30   :  { %573 = vmatpush3.bf16.msra.mxu0 %v620_v42 }
  0x33   :  { %575 = vmatmul.mubr.msk.bf16.vlgmr.msra.gmra.mxu0 %vm326_vm1, %v614_v43 }
  0xe3   :  { %v533_v44 = vpop.f32.mrf.mxu0 }
  0xe4   :  { %v555_v45 = vpop.f32.mrf.mxu1 }
  0xe5   :  { %v534_v46 = vpop.f32.mrf.mxu0 }
  0xe6   :  { %v556_v47 = vpop.f32.mrf.mxu1  ;;  %v535_v52 = vadd.f32 %v534_v46, %v533_v44 }
  0xe7   :  { %v536_v48 = vpop.f32.mrf.mxu0  ;;  %v557_v53 = vadd.f32 %v556_v47, %v555_v45 }
  0xe8   :  { %v558_v49 = vpop.f32.mrf.mxu1 }
  0xe9   :  { %v537_v50 = vpop.f32.mrf.mxu0  ;;  %v405_v54 = vadd.f32 %v557_v53, %v535_v52 }
  0xea   :  { %v559_v51 = vpop.f32.mrf.mxu1 }
  0xf3   :  { %v444_v55 = vpop.f32.mrf.mxu0 }
  0xf4   :  { %v445_v57 = vadd.f32 %v444_v55, %v405_v54 }
  0xf5   :  { %v576_v59 = vpop.f32.mrf.mxu0 }
  0xf6   :  { %v457_v60 = vmul.f32 %v515_v56, %v445_v57 }
  0xf7   :  { %v447_v61 = vpop.f32.mrf.mxu0 }
  0xf8   :  { %v465_v62 = vadd.f32 %v516_v58, %v457_v60 }
  0xf9   :  { %v577_v63 = vpop.f32.mrf.mxu0 }
  0xfa   :  { %v466_v0 = vmax.f32 %v465_v62, 0.0 }
  0xfc   :  { %v467_v1 = vpack.c.bf16 %v466_v0, %v466_v0 }
  0xfe   :  { %468 = vst [vmem:[%s778_s4] sm:$0xf] %v467_v1 }

// kernel: _lambda_.27
= control target key start
LH: loop header
LB: loop body
LE: loop exit
PB: predicated region body
PF: predicated region fallthrough
CT: control target
= control target key end

     0   :  { %v246_v1 = vmov 0.0   ;;  %vm247_vm0 = vmmov 0   ;;  %vm20_vm1 = vcmask 1043456   ;;  %s305_s0 = inlined_call_operand.vmem [shape: bf16[2,4,128], index: 0, kind: input, shape index: {}]   ;;  %s306_s1 = inlined_call_operand.vmem [shape: bf16[128,100], index: 1, kind: input, shape index: {}]   ;;  %s307_s2 = inlined_call_operand.vmem [shape: f32[1,100], index: 2, kind: input, shape index: {}]   ;;  %s308_s3 = inlined_call_operand.hbm [shape: f32[2,100], index: 3, kind: output, shape index: {}]  }
   0x1   :  { %v216_v0 = vld [vmem:[%s306_s1 + $0x38] sm:$0xff]   ;;  %193 = vmatprep.subr.bf16.mxu0 %v246_v1  ;;  %v217_v2 = vld [vmem:[%s306_s1 + $0x30] sm:$0xff]   ;;  %209 = vmatprep.mubr.msk.bf16.mxu0 %vm247_vm0, %v246_v1  ;;  %v218_v3 = vld [vmem:[%s306_s1 + $0x28] sm:$0xff]  }
   0x2   :  { %194 = vmatpush3.bf16.msra.mxu0 %v216_v0  ;;  %v16_v4 = vld [vmem:[%s305_s0] sm:$0x3]  ;;  %v17_v5 = vld [vmem:[%s305_s0 + $0x2] sm:$0x3] }
   0x3   :  { %195 = vmatprep.subr.bf16.mxu0 %v246_v1  ;;  %v18_v6 = vunpack.c.l.bf16 %v16_v4  ;;  %v19_v7 = vunpack.c.l.bf16 %v17_v5 }
   0x6   :  { %196 = vmatpush3.bf16.msra.mxu0 %v217_v2 }
   0x7   :  { %197 = vmatprep.subr.bf16.mxu0 %v246_v1 }
   0x8   :  { %8 = vsyncpa [#allocation3], 0  ;;  %v219_v8 = vld [vmem:[%s306_s1 + $0x20] sm:$0xff]   ;;  %v21_v9 = vsel %vm20_vm1, %v18_v6, 0.0  ;;  %v28_v10 = vsel %vm20_vm1, %v19_v7, 0.0  ;;  %v220_v13 = vld [vmem:[%s306_s1 + $0x18] sm:$0xff]  }
   0x9   :  { %v22_v11 = vrot.slane %v21_v9, 4  ;;  %v29_v12 = vrot.slane %v28_v10, 4  ;;  %v221_v18 = vld [vmem:[%s306_s1 + $0x10] sm:$0xff]   ;;  %v222_v23 = vld [vmem:[%s306_s1 + $0x8] sm:$0xff]   ;;  %v223_v28 = vld [vmem:[%s306_s1] sm:$0xff]   ;;  %vm67_vm2 = vcmask 1041409  }
   0xa   :  { %198 = vmatpush3.bf16.msra.mxu0 %v218_v3  ;;  %v175_v35 = vld [vmem:[%s307_s2] ss:$0 sm:$0xff]  ;;  %s248_s6 = smov [#allocation2]   ;;  %vm159_vm3 = vcmask 812032  }
   0xb   :  { %199 = vmatprep.subr.bf16.mxu0 %v246_v1  ;;  %v23_v14 = vadd.f32 %v22_v11, %v21_v9  ;;  %v30_v15 = vadd.f32 %v29_v12, %v28_v10  ;;  %s167_s7 = sshll.u32 %s248_s6, 4  ;;  %s168_s7 = int_to_ptr.vmem [resolvable:$true] %s167_s7 }
   0xc   :  { %s224_s1 = scalar_lea.vmem %s168_s7, 32  ;;  %p229_p1 = scmp.lt.s32.totalorder %s168_s7, %s168_s7 }
   0xd   :  { %v24_v16 = vrot.slane %v23_v14, 2  ;;  %v31_v17 = vrot.slane %v30_v15, 2  ;;  %p225_p0 = scmp.ne.s32.totalorder %s168_s7, %s224_s1  ;;  %p230_p2 = scmp.lt.s32.totalorder %s224_s1, %s224_s1 }
   0xe   :  { %200 = vmatpush3.bf16.msra.mxu0 %v219_v8 }
   0xf   :  { %201 = vmatprep.subr.bf16.mxu0 %v246_v1  ;;  %v25_v19 = vadd.f32 %v24_v16, %v23_v14  ;;  %v32_v20 = vadd.f32 %v31_v17, %v30_v15  ;;  %p231_p3 = por %p230_p2, %p229_p1 }
  0x11   :  { %v26_v21 = vrot.slane %v25_v19, 1  ;;  %v33_v22 = vrot.slane %v32_v20, 1  ;;  %p232_p4 = pnand %p231_p3, %p225_p0 }
  0x12   :  { %202 = vmatpush3.bf16.msra.mxu0 %v220_v13 }
  0x13   :  { %203 = vmatprep.subr.bf16.mxu0 %v246_v1  ;;  %v27_v24 = vadd.f32 %v26_v21, %v25_v19  ;;  %v34_v25 = vadd.f32 %v33_v22, %v32_v20 }
  0x15   :  { %v36_v26 = vmul.f32 0.25, %v27_v24  ;;  %v37_v27 = vmul.f32 0.25, %v34_v25 }
  0x16   :  { %204 = vmatpush3.bf16.msra.mxu0 %v221_v18 }
  0x17   :  { %205 = vmatprep.subr.bf16.mxu0 %v246_v1  ;;  %v38_v29 = vpack.c.bf16 %v36_v26, %v36_v26  ;;  %v39_v30 = vpack.c.bf16 %v37_v27, %v37_v27 }
  0x19   :  { %v65_v31 = vunpack.c.l.b16 %v38_v29  ;;  %v66_v32 = vunpack.c.l.b16 %v39_v30 }
  0x1a   :  { %206 = vmatpush3.bf16.msra.mxu0 %v222_v23 }
  0x1b   :  { %207 = vmatprep.subr.bf16.mxu0 %v246_v1  ;;  %v68_v33 = vsel %vm67_vm2, %v66_v32, %v65_v31 }
  0x1c   :  { %v69_v34 = vpack.c.b16 %v68_v33, %v68_v33 }
  0x1e   :  { %208 = vmatpush3.bf16.msra.mxu0 %v223_v28 }
  0x21   :  { %210 = vmatmul.mubr.bf16.vlgmr.msra.gmra.mxu0 %v69_v34 }
  0xe1   :  { %v153_v36 = vpop.f32.mrf.mxu0 }
  0xe2   :  { %v154_v37 = vadd.f32 %v175_v35, %v153_v36 }
  0xe3   :  { %v211_v38 = vpop.f32.mrf.mxu0 }
  0xe4   :  { %160 = vst.msk [vmem:[#allocation2] sm:$0x3] %vm159_vm3, %v154_v37 }
  0xe5   :  { %v156_v39 = vpop.f32.mrf.mxu0 }
  0xe6   :  { %235 = shalt.err (!%p232_p4)
}
  0xe7   :  { %170 = dma.vmem_to_hbm [thread:$0]  %s168_s7, 32, %s308_s3, [#allocation3]   ;;  %v212_v40 = vpop.f32.mrf.mxu0 }
  0xe8   :  { %244 = dma.done.wait [#allocation3], 32  }
  0xe9   :  { %245 = vsyncadd [#allocation3], 4294967264 }
  0xea   :  { %174 = vsyncpa [#allocation3], 1 }

// kernel: _lambda_.26
= control target key start
LH: loop header
LB: loop body
LE: loop exit
PB: predicated region body
PF: predicated region fallthrough
CT: control target
= control target key end

     0   :  { %vm1144_vm0 = vmmov 0   ;;  %s1418_s1 = inlined_call_operand.vmem [shape: bf16[1152,128], index: 1, kind: input, shape index: {}]   ;;  %s1419_s0 = inlined_call_operand.vmem [shape: bf16[8,1152], index: 0, kind: input, shape index: {}]   ;;  %s1420_s2 = inlined_call_operand.vmem [shape: f32[1,128], index: 2, kind: input, shape index: {}]   ;;  %s1421_s4 = inlined_call_operand.vmem [shape: bf16[8,128], index: 4, kind: input, shape index: {}]   ;;  %s1422_s3 = inlined_call_operand.vmem [shape: f32[1,128], index: 3, kind: input, shape index: {}]   ;;  %s1423_s5 = inlined_call_operand.vmem [shape: bf16[8,128], index: 5, kind: output, shape index: {}]  }
   0x1   :  { %v1062_v0 = vld [vmem:[%s1418_s1 + $0x78] sm:$0xff]   ;;  %v1066_v4 = vld [vmem:[%s1418_s1 + $0x70] sm:$0xff]   ;;  %v1070_v8 = vld [vmem:[%s1418_s1 + $0x68] sm:$0xff]  }
   0x2   :  { %v1063_v1 = vld [vmem:[%s1418_s1 + $0xf8] sm:$0xff]   ;;  %943 = vmatprep.subr.bf16.mxu0 %v1062_v0  ;;  %v1067_v5 = vld [vmem:[%s1418_s1 + $0xf0] sm:$0xff]   ;;  %v1071_v9 = vld [vmem:[%s1418_s1 + $0xe8] sm:$0xff]  }
   0x3   :  { %v1064_v2 = vld [vmem:[%s1418_s1 + $0x38] sm:$0xff]   ;;  %965 = vmatprep.subr.bf16.mxu1 %v1063_v1  ;;  %v1068_v6 = vld [vmem:[%s1418_s1 + $0x30] sm:$0xff]   ;;  %v1072_v10 = vld [vmem:[%s1418_s1 + $0x28] sm:$0xff]  }
   0x4   :  { %v1065_v3 = vld [vmem:[%s1418_s1 + $0xb8] sm:$0xff]   ;;  %944 = vmatpush3.bf16.msra.mxu0 %v1064_v2  ;;  %v1069_v7 = vld [vmem:[%s1418_s1 + $0xb0] sm:$0xff]   ;;  %v1073_v11 = vld [vmem:[%s1418_s1 + $0xa8] sm:$0xff]  }
   0x5   :  { %966 = vmatpush3.bf16.msra.mxu1 %v1065_v3  ;;  %945 = vmatprep.subr.bf16.mxu0 %v1066_v4  ;;  %v1074_v12 = vld [vmem:[%s1418_s1 + $0x60] sm:$0xff]   ;;  %v1078_v16 = vld [vmem:[%s1418_s1 + $0x58] sm:$0xff]   ;;  %v1082_v20 = vld [vmem:[%s1418_s1 + $0x50] sm:$0xff]  }
   0x6   :  { %967 = vmatprep.subr.bf16.mxu1 %v1067_v5  ;;  %v1075_v13 = vld [vmem:[%s1418_s1 + $0xe0] sm:$0xff]   ;;  %v1079_v17 = vld [vmem:[%s1418_s1 + $0xd8] sm:$0xff]   ;;  %v1083_v21 = vld [vmem:[%s1418_s1 + $0xd0] sm:$0xff]  }
   0x7   :  { %v1076_v14 = vld [vmem:[%s1418_s1 + $0x20] sm:$0xff]   ;;  %v1080_v18 = vld [vmem:[%s1418_s1 + $0x18] sm:$0xff]   ;;  %v1084_v22 = vld [vmem:[%s1418_s1 + $0x10] sm:$0xff]  }
   0x8   :  { %946 = vmatpush3.bf16.msra.mxu0 %v1068_v6  ;;  %v1077_v15 = vld [vmem:[%s1418_s1 + $0xa0] sm:$0xff]   ;;  %v1081_v19 = vld [vmem:[%s1418_s1 + $0x98] sm:$0xff]   ;;  %v1085_v23 = vld [vmem:[%s1418_s1 + $0x90] sm:$0xff]  }
   0x9   :  { %968 = vmatpush3.bf16.msra.mxu1 %v1069_v7  ;;  %947 = vmatprep.subr.bf16.mxu0 %v1070_v8  ;;  %v1086_v24 = vld [vmem:[%s1418_s1 + $0x48] sm:$0xff]   ;;  %v1090_v28 = vld [vmem:[%s1418_s1 + $0x40] sm:$0xff]   ;;  %v1098_v38 = vld [vmem:[%s1418_s1 + $0x178] sm:$0xff]  }
   0xa   :  { %969 = vmatprep.subr.bf16.mxu1 %v1071_v9  ;;  %v1087_v25 = vld [vmem:[%s1418_s1 + $0xc8] sm:$0xff]   ;;  %v1091_v29 = vld [vmem:[%s1418_s1 + $0xc0] sm:$0xff]   ;;  %v1099_v39 = vld [vmem:[%s1418_s1 + $0x138] sm:$0xff]  }
   0xb   :  { %v1088_v26 = vld [vmem:[%s1418_s1 + $0x8] sm:$0xff]   ;;  %v1092_v30 = vld [vmem:[%s1418_s1] sm:$0xff]   ;;  %v1100_v40 = vld [vmem:[%s1418_s1 + $0x1f8] sm:$0xff]  }
   0xc   :  { %948 = vmatpush3.bf16.msra.mxu0 %v1072_v10  ;;  %v1089_v27 = vld [vmem:[%s1418_s1 + $0x88] sm:$0xff]   ;;  %v1093_v31 = vld [vmem:[%s1418_s1 + $0x80] sm:$0xff]   ;;  %v1101_v41 = vld [vmem:[%s1418_s1 + $0x1b8] sm:$0xff]  }
   0xd   :  { %970 = vmatpush3.bf16.msra.mxu1 %v1073_v11  ;;  %949 = vmatprep.subr.bf16.mxu0 %v1074_v12  ;;  %v21_v32 = vld [vmem:[%s1419_s0] sm:$0xff]  ;;  %v22_v33 = vld [vmem:[%s1419_s0 + $0x8] sm:$0xff]  ;;  %v1102_v42 = vld [vmem:[%s1418_s1 + $0x170] sm:$0xff]  }
   0xe   :  { %971 = vmatprep.subr.bf16.mxu1 %v1075_v13  ;;  %v860_v34 = vcombine.low %v21_v32, %v21_v32  ;;  %v861_v35 = vcombine.high %v21_v32, %v21_v32  ;;  %v862_v36 = vcombine.low %v22_v33, %v22_v33  ;;  %v863_v37 = vcombine.high %v22_v33, %v22_v33  ;;  %v1103_v43 = vld [vmem:[%s1418_s1 + $0x130] sm:$0xff]   ;;  %v1106_v46 = vld [vmem:[%s1418_s1 + $0x168] sm:$0xff]   ;;  %v1110_v50 = vld [vmem:[%s1418_s1 + $0x160] sm:$0xff]  }
   0xf   :  { %v1104_v44 = vld [vmem:[%s1418_s1 + $0x1f0] sm:$0xff]   ;;  %v1107_v47 = vld [vmem:[%s1418_s1 + $0x128] sm:$0xff]   ;;  %v1111_v51 = vld [vmem:[%s1418_s1 + $0x120] sm:$0xff]   ;;  %v1143_v13 = vmov 0.0  }
  0x10   :  { %950 = vmatpush3.bf16.msra.mxu0 %v1076_v14  ;;  %666 = vmatprep.mubr.bf16.mxu0 %v861_v35  ;;  %v1105_v45 = vld [vmem:[%s1418_s1 + $0x1b0] sm:$0xff]   ;;  %v1108_v48 = vld [vmem:[%s1418_s1 + $0x1e8] sm:$0xff]   ;;  %v1112_v52 = vld [vmem:[%s1418_s1 + $0x1e0] sm:$0xff]  }
  0x11   :  { %972 = vmatpush3.bf16.msra.mxu1 %v1077_v15  ;;  %951 = vmatprep.subr.bf16.mxu0 %v1078_v16  ;;  %v1109_v49 = vld [vmem:[%s1418_s1 + $0x1a8] sm:$0xff]   ;;  %v1113_v53 = vld [vmem:[%s1418_s1 + $0x1a0] sm:$0xff]   ;;  %v1114_v54 = vld [vmem:[%s1418_s1 + $0x158] sm:$0xff]  }
  0x12   :  { %973 = vmatprep.subr.bf16.mxu1 %v1079_v17  ;;  %706 = vmatprep.mubr.bf16.mxu1 %v863_v37  ;;  %v1115_v55 = vld [vmem:[%s1418_s1 + $0x118] sm:$0xff]   ;;  %v1118_v58 = vld [vmem:[%s1418_s1 + $0x150] sm:$0xff]   ;;  %v1122_v62 = vld [vmem:[%s1418_s1 + $0x148] sm:$0xff]  }
  0x13   :  { %v1116_v56 = vld [vmem:[%s1418_s1 + $0x1d8] sm:$0xff]   ;;  %v1119_v59 = vld [vmem:[%s1418_s1 + $0x110] sm:$0xff]   ;;  %v1123_v63 = vld [vmem:[%s1418_s1 + $0x108] sm:$0xff]  }
  0x14   :  { %952 = vmatpush3.bf16.msra.mxu0 %v1080_v18  ;;  %v1117_v57 = vld [vmem:[%s1418_s1 + $0x198] sm:$0xff]   ;;  %v1120_v60 = vld [vmem:[%s1418_s1 + $0x1d0] sm:$0xff]   ;;  %v1124_v0 = vld [vmem:[%s1418_s1 + $0x1c8] sm:$0xff]  }
  0x15   :  { %974 = vmatpush3.bf16.msra.mxu1 %v1081_v19  ;;  %953 = vmatprep.subr.bf16.mxu0 %v1082_v20  ;;  %v1121_v61 = vld [vmem:[%s1418_s1 + $0x190] sm:$0xff]   ;;  %v1125_v1 = vld [vmem:[%s1418_s1 + $0x188] sm:$0xff]   ;;  %v1126_v2 = vld [vmem:[%s1418_s1 + $0x140] sm:$0xff]  }
  0x16   :  { %975 = vmatprep.subr.bf16.mxu1 %v1083_v21  ;;  %v1127_v3 = vld [vmem:[%s1418_s1 + $0x100] sm:$0xff]   ;;  %v23_v5 = vld [vmem:[%s1419_s0 + $0x10] sm:$0xff]  ;;  %v24_v9 = vld [vmem:[%s1419_s0 + $0x18] sm:$0xff] }
  0x17   :  { %v1128_v4 = vld [vmem:[%s1418_s1 + $0x1c0] sm:$0xff]   ;;  %v865_v6 = vcombine.high %v23_v5, %v23_v5  ;;  %v864_v8 = vcombine.low %v23_v5, %v23_v5  ;;  %v866_v10 = vcombine.low %v24_v9, %v24_v9  ;;  %v867_v11 = vcombine.high %v24_v9, %v24_v9  ;;  %v1134_v12 = vld [vmem:[%s1418_s1 + $0x238] sm:$0xff]   ;;  %v1135_v14 = vld [vmem:[%s1418_s1 + $0x230] sm:$0xff]  }
  0x18   :  { %954 = vmatpush3.bf16.msra.mxu0 %v1084_v22  ;;  %v1131_v7 = vld [vmem:[%s1418_s1 + $0x180] sm:$0xff]   ;;  %v1136_v15 = vld [vmem:[%s1418_s1 + $0x228] sm:$0xff]   ;;  %v1138_v17 = vld [vmem:[%s1418_s1 + $0x218] sm:$0xff]  }
  0x19   :  { %976 = vmatpush3.bf16.msra.mxu1 %v1085_v23  ;;  %955 = vmatprep.subr.bf16.mxu0 %v1086_v24  ;;  %v1137_v16 = vld [vmem:[%s1418_s1 + $0x220] sm:$0xff]   ;;  %v1139_v18 = vld [vmem:[%s1418_s1 + $0x210] sm:$0xff]   ;;  %v1140_v19 = vld [vmem:[%s1418_s1 + $0x208] sm:$0xff]  }
  0x1a   :  { %977 = vmatprep.subr.bf16.mxu1 %v1087_v25  ;;  %v1141_v20 = vld [vmem:[%s1418_s1 + $0x200] sm:$0xff]  }
  0x1b   :  { %v1142_v21 = vld [vmem:[%s1419_s0 + $0x20] ss:$0 sps:$4 sm:$0xff]  }
  0x1c   :  { %956 = vmatpush3.bf16.msra.mxu0 %v1088_v26 }
  0x1d   :  { %978 = vmatpush3.bf16.msra.mxu1 %v1089_v27  ;;  %957 = vmatprep.subr.bf16.mxu0 %v1090_v28 }
  0x1e   :  { %979 = vmatprep.subr.bf16.mxu1 %v1091_v29 }
  0x20   :  { %958 = vmatpush3.bf16.msra.mxu0 %v1092_v30 }
  0x21   :  { %980 = vmatpush3.bf16.msra.mxu1 %v1093_v31  ;;  %987 = vmatprep.subr.bf16.mxu0 %v1098_v38 }
  0x22   :  { %1009 = vmatprep.subr.bf16.mxu1 %v1100_v40 }
  0x23   :  { %667 = vmatmul.mubr.bf16.vlgmr.msra.gmra.mxu0 %v860_v34 }
  0x24   :  { %707 = vmatmul.mubr.bf16.vlgmr.msra.gmra.mxu1 %v862_v36  ;;  %988 = vmatpush3.bf16.msra.mxu0 %v1099_v39 }
  0x25   :  { %1010 = vmatpush3.bf16.msra.mxu1 %v1101_v41  ;;  %989 = vmatprep.subr.bf16.mxu0 %v1102_v42 }
  0x26   :  { %1011 = vmatprep.subr.bf16.mxu1 %v1104_v44  ;;  %746 = vmatprep.mubr.bf16.mxu0 %v865_v6 }
  0x27   :  { %786 = vmatprep.mubr.bf16.mxu1 %v867_v11 }
  0x28   :  { %990 = vmatpush3.bf16.msra.mxu0 %v1103_v43 }
  0x29   :  { %1012 = vmatpush3.bf16.msra.mxu1 %v1105_v45  ;;  %991 = vmatprep.subr.bf16.mxu0 %v1106_v46  ;;  %v941_v46 = vld [vmem:[%s1420_s2] ss:$0 sm:$0xff] }
  0x2a   :  { %1013 = vmatprep.subr.bf16.mxu1 %v1108_v48 }
  0x2c   :  { %992 = vmatpush3.bf16.msra.mxu0 %v1107_v47  ;;  %v850_v47 = vld [vmem:[%s1421_s4] sm:$0xf] }
  0x2d   :  { %1014 = vmatpush3.bf16.msra.mxu1 %v1109_v49  ;;  %993 = vmatprep.subr.bf16.mxu0 %v1110_v50  ;;  %v942_v49 = vld [vmem:[%s1422_s3] ss:$0 sm:$0xff] }
  0x2e   :  { %1015 = vmatprep.subr.bf16.mxu1 %v1112_v52  ;;  %v851_v52 = vunpack.c.l.bf16 %v850_v47 }
  0x30   :  { %994 = vmatpush3.bf16.msra.mxu0 %v1111_v51 }
  0x31   :  { %1016 = vmatpush3.bf16.msra.mxu1 %v1113_v53  ;;  %995 = vmatprep.subr.bf16.mxu0 %v1114_v54 }
  0x32   :  { %1017 = vmatprep.subr.bf16.mxu1 %v1116_v56 }
  0x34   :  { %996 = vmatpush3.bf16.msra.mxu0 %v1115_v55 }
  0x35   :  { %1018 = vmatpush3.bf16.msra.mxu1 %v1117_v57  ;;  %997 = vmatprep.subr.bf16.mxu0 %v1118_v58 }
  0x36   :  { %1019 = vmatprep.subr.bf16.mxu1 %v1120_v60 }
  0x38   :  { %998 = vmatpush3.bf16.msra.mxu0 %v1119_v59 }
  0x39   :  { %1020 = vmatpush3.bf16.msra.mxu1 %v1121_v61  ;;  %999 = vmatprep.subr.bf16.mxu0 %v1122_v62 }
  0x3a   :  { %1021 = vmatprep.subr.bf16.mxu1 %v1124_v0 }
  0x3c   :  { %1000 = vmatpush3.bf16.msra.mxu0 %v1123_v63 }
  0x3d   :  { %1022 = vmatpush3.bf16.msra.mxu1 %v1125_v1  ;;  %1001 = vmatprep.subr.bf16.mxu0 %v1126_v2 }
  0x3e   :  { %1023 = vmatprep.subr.bf16.mxu1 %v1128_v4 }
  0x40   :  { %1002 = vmatpush3.bf16.msra.mxu0 %v1127_v3 }
  0x41   :  { %1024 = vmatpush3.bf16.msra.mxu1 %v1131_v7  ;;  %1040 = vmatprep.subr.bf16.mxu0 %v1143_v13 }
  0x43   :  { %747 = vmatmul.mubr.bf16.vlgmr.msra.gmra.mxu0 %v864_v8 }
  0x44   :  { %1041 = vmatpush3.bf16.msra.mxu0 %v1134_v12  ;;  %787 = vmatmul.mubr.bf16.vlgmr.msra.gmra.mxu1 %v866_v10 }
  0x45   :  { %1042 = vmatprep.subr.bf16.mxu0 %v1143_v13  ;;  %1056 = vmatprep.mubr.msk.bf16.mxu0 %vm1144_vm0, %v1143_v13 }
  0x48   :  { %1043 = vmatpush3.bf16.msra.mxu0 %v1135_v14 }
  0x49   :  { %1044 = vmatprep.subr.bf16.mxu0 %v1143_v13 }
  0x4c   :  { %1045 = vmatpush3.bf16.msra.mxu0 %v1136_v15 }
  0x4d   :  { %1046 = vmatprep.subr.bf16.mxu0 %v1143_v13 }
  0x50   :  { %1047 = vmatpush3.bf16.msra.mxu0 %v1137_v16 }
  0x51   :  { %1048 = vmatprep.subr.bf16.mxu0 %v1143_v13 }
  0x54   :  { %1049 = vmatpush3.bf16.msra.mxu0 %v1138_v17 }
  0x55   :  { %1050 = vmatprep.subr.bf16.mxu0 %v1143_v13 }
  0x58   :  { %1051 = vmatpush3.bf16.msra.mxu0 %v1139_v18 }
  0x59   :  { %1052 = vmatprep.subr.bf16.mxu0 %v1143_v13 }
  0x5c   :  { %1053 = vmatpush3.bf16.msra.mxu0 %v1140_v19 }
  0x5d   :  { %1054 = vmatprep.subr.bf16.mxu0 %v1143_v13 }
  0x60   :  { %1055 = vmatpush3.bf16.msra.mxu0 %v1141_v20 }
  0x63   :  { %1057 = vmatmul.mubr.bf16.vlgmr.msra.gmra.mxu0 %v1142_v21 }
  0xe3   :  { %v959_v22 = vpop.f32.mrf.mxu0 }
  0xe4   :  { %v981_v23 = vpop.f32.mrf.mxu1 }
  0xe5   :  { %v960_v24 = vpop.f32.mrf.mxu0 }
  0xe6   :  { %v982_v25 = vpop.f32.mrf.mxu1  ;;  %v961_v38 = vadd.f32 %v960_v24, %v959_v22 }
  0xe7   :  { %v962_v26 = vpop.f32.mrf.mxu0  ;;  %v983_v39 = vadd.f32 %v982_v25, %v981_v23 }
  0xe8   :  { %v984_v27 = vpop.f32.mrf.mxu1 }
  0xe9   :  { %v963_v28 = vpop.f32.mrf.mxu0  ;;  %v709_v41 = vadd.f32 %v983_v39, %v961_v38 }
  0xea   :  { %v985_v29 = vpop.f32.mrf.mxu1 }
 0x103   :  { %v1003_v30 = vpop.f32.mrf.mxu0 }
 0x104   :  { %v1025_v31 = vpop.f32.mrf.mxu1 }
 0x105   :  { %v1004_v32 = vpop.f32.mrf.mxu0 }
 0x106   :  { %v1026_v33 = vpop.f32.mrf.mxu1  ;;  %v1005_v40 = vadd.f32 %v1004_v32, %v1003_v30 }
 0x107   :  { %v1006_v34 = vpop.f32.mrf.mxu0  ;;  %v1027_v43 = vadd.f32 %v1026_v33, %v1025_v31 }
 0x108   :  { %v1028_v35 = vpop.f32.mrf.mxu1  ;;  %v749_v42 = vadd.f32 %v1005_v40, %v709_v41 }
 0x109   :  { %v1007_v36 = vpop.f32.mrf.mxu0 }
 0x10a   :  { %v1029_v37 = vpop.f32.mrf.mxu1  ;;  %v789_v44 = vadd.f32 %v1027_v43, %v749_v42 }
 0x123   :  { %v828_v45 = vpop.f32.mrf.mxu0 }
 0x124   :  { %v829_v48 = vadd.f32 %v828_v45, %v789_v44 }
 0x125   :  { %v1058_v50 = vpop.f32.mrf.mxu0 }
 0x126   :  { %v841_v51 = vmul.f32 %v941_v46, %v829_v48 }
 0x127   :  { %v831_v53 = vpop.f32.mrf.mxu0 }
 0x128   :  { %v849_v54 = vadd.f32 %v942_v49, %v841_v51 }
 0x129   :  { %v1059_v55 = vpop.f32.mrf.mxu0 }
 0x12a   :  { %v852_v56 = vadd.f32 %v851_v52, %v849_v54 }
 0x12c   :  { %v853_v57 = vmax.f32 %v852_v56, 0.0 }
 0x12e   :  { %v854_v58 = vpack.c.bf16 %v853_v57, %v853_v57 }
 0x130   :  { %855 = vst [vmem:[%s1423_s5] sm:$0xf] %v854_v58 }

</bundles_post_ra>
